<compile_context>
chip_gen: v7x
topology: tpu7x:2x2x1
jax: 0.10.0
libtpu: 0.0.40
codegen_flags: <defaults>
</compile_context>

<pallas_src>
import jax
import jax.numpy as jnp
from jax import lax
from jax.experimental import pallas as pl
from jax.experimental.pallas import tpu as pltpu

INPUT_ATTENTION_HEADS = 4  # ls2ic: MultiheadAttention(..., embed=hidden_dim, 4)
LN_EPS = 1e-5
_NT_DIMS = (((1,), (1,)), ((), ()))   # contract last dims of both operands


# ---------------------------------------------------------------------------
# Fused kernel: one grid step == one batch element.
#   rows for attention  : na * num_link   (block-diag over agents)
#   rows for the trunk  : na
# ---------------------------------------------------------------------------
def _ls2ic_kernel(
    x_ref, hprev_ref,
    amask_ref, e_exp_ref, msk_link_ref, gT_ref,
    wq_ref, bq_ref, wk_ref, bk_ref, wv_ref, bv_ref, wo_ref, bo_ref,
    ln1_g_ref, ln1_b_ref,
    w_in_ref, b_in_ref,
    w_ih_ref, b_ih_ref, w_hh_ref, b_hh_ref,
    w_ms_ref, b_ms_ref,
    w_mg_ref, b_mg_ref, msk_mg_ref, sum_mg_ref,
    wv2_ref, bv2_ref, wo2_ref, bo2_ref,
    mln_g_ref, mln_b_ref,
    w_qs_h_ref, w_qs_a_ref, b_qs_ref,
    w_head_ref, b_head_ref, msk_head_ref, sum_head_ref,
    out_ref,
):
    f32 = jnp.float32

    def dot(a, b):
        return jnp.dot(a, b, preferred_element_type=f32)

    x = x_ref[...]            # [na*sl, fd]
    hprev = hprev_ref[...]    # [na, hid]
    nsl, fd = x.shape
    na, hid = hprev.shape
    num_heads = wq_ref.shape[0]
    hd = wq_ref.shape[2]
    msg = sum_mg_ref.shape[1]
    adim = sum_head_ref.shape[1]

    # ---- input attention over the link axis: block-diagonal masked attention
    # over all (agent, link) rows at once; per-head weights indexed on the
    # leading ref dim (free), so no sub-128-lane weight slices are needed.
    amask = amask_ref[...]                                  # [nsl, nsl]
    scale = 1.0 / (float(hd) ** 0.5)
    acc = jnp.zeros((nsl, fd), f32)
    for h in range(num_heads):
        qh = dot(x, wq_ref[h]) + bq_ref[h]                  # [nsl, hd]
        kh = dot(x, wk_ref[h]) + bk_ref[h]
        vh = dot(x, wv_ref[h]) + bv_ref[h]
        s = lax.dot_general(qh, kh, _NT_DIMS,
                            preferred_element_type=f32) * scale + amask
        s = s - jnp.max(s, axis=-1, keepdims=True)
        p = jnp.exp(s)
        p = p * pl.reciprocal(jnp.sum(p, axis=-1, keepdims=True), approx=True)
        acc = acc + dot(dot(p, vh), wo_ref[h])
    pre = x + acc + bo_ref[...]                             # residual
    mu = jnp.mean(pre, axis=-1, keepdims=True)
    d = pre - mu
    var = jnp.mean(d * d, axis=-1, keepdims=True)
    y = d * lax.rsqrt(var + LN_EPS) * ln1_g_ref[...] + ln1_b_ref[...]   # [nsl, fd]

    # ---- [na*sl, fd] -> [na, sl*fd] folded into input_linear, all matmuls:
    # lane-expand (y @ E), keep only the slot of this row's link (mask), then
    # sum rows of the same agent (gT @ .) -- no in-kernel reshape.
    y_wide = dot(y, e_exp_ref[...]) * msk_link_ref[...]     # [nsl, sl*fd]
    enc = dot(gT_ref[...], dot(y_wide, w_in_ref[...])) + b_in_ref[...]   # [na, hid]

    # ---- GRU cell (gate stacks on the leading dim: r, z, n) ----
    gi_r = dot(enc, w_ih_ref[0]) + b_ih_ref[0]
    gi_z = dot(enc, w_ih_ref[1]) + b_ih_ref[1]
    gi_n = dot(enc, w_ih_ref[2]) + b_ih_ref[2]
    gh_r = dot(hprev, w_hh_ref[0]) + b_hh_ref[0]
    gh_z = dot(hprev, w_hh_ref[1]) + b_hh_ref[1]
    gh_n = dot(hprev, w_hh_ref[2]) + b_hh_ref[2]
    r = 1.0 / (1.0 + jnp.exp(-(gi_r + gh_r)))
    z = 1.0 / (1.0 + jnp.exp(-(gi_z + gh_z)))
    n = jnp.tanh(gi_n + r * gh_n)
    h_new = (1.0 - z) * n + z * hprev                       # [na, hid]

    # ---- per-agent message generators: one 128-lane fused matmul + select ----
    me = jnp.maximum(dot(h_new, w_ms_ref[...]) + b_ms_ref[...], 0.0)
    y_all = dot(me, w_mg_ref[...]) + b_mg_ref[...]          # [na, na*msg]
    msgs = dot(y_all * msk_mg_ref[...], sum_mg_ref[...])    # [na, msg]
    # mean message over the agents of this batch element (forward value of the
    # .detach() trick), broadcast back to every agent row via a tiny matmul.
    mean_msg = dot(jnp.full((na, na), 1.0 / na, f32), msgs)  # [na, msg]

    # ---- single-token message attention: softmax over one key == 1, so the
    # output reduces to out_proj(V) with V from keyvalue_proj(mean_msg).
    v2 = dot(mean_msg, wv2_ref[...]) + bv2_ref[...]
    after = dot(v2, wo2_ref[...]) + bo2_ref[...]
    pre2 = h_new + after
    mu2 = jnp.mean(pre2, axis=-1, keepdims=True)
    d2 = pre2 - mu2
    var2 = jnp.mean(d2 * d2, axis=-1, keepdims=True)
    after_ln = d2 * lax.rsqrt(var2 + LN_EPS) * mln_g_ref[...] + mln_b_ref[...]

    # ---- q_shared_net on cat(h, after_ln), decomposed (no lane concat) ----
    qe = jnp.maximum(dot(h_new, w_qs_h_ref[...]) +
                     dot(after_ln, w_qs_a_ref[...]) + b_qs_ref[...], 0.0)

    # ---- per-agent Q heads, lane-fused ----
    q_all = dot(qe, w_head_ref[...]) + b_head_ref[...]      # [na, na*adim]
    qv = dot(q_all * msk_head_ref[...], sum_head_ref[...])  # [na, adim]

    # ---- single lane-dense, unmasked output store: [h | mean | q | pad] ----
    pad = out_ref.shape[-1] - (hid + msg + adim)
    pieces = [h_new, mean_msg, qv]
    if pad > 0:
        pieces.append(jnp.zeros((na, pad), f32))
    out_ref[...] = jnp.concatenate(pieces, axis=-1).astype(out_ref.dtype)


# ---------------------------------------------------------------------------
# Wrapper: layout plumbing (weight repacking, constant masks) is pure XLA.
# ---------------------------------------------------------------------------
def ls2ic_forward(states, hidden_state, params):
    """Full ls2ic forward: returns (q_values, h, mean_message)."""
    f32 = jnp.float32
    bs, na, sl, fd = states.shape
    hid = params["w_in"].shape[1]
    msg = params["w_mg"].shape[2]
    adim = params["w_head"].shape[2]
    nh = INPUT_ATTENTION_HEADS
    hd = hid // nh
    nsl = na * sl
    out_w = 128 * pl.cdiv(hid + msg + adim, 128)

    x3 = states.reshape(bs, nsl, fd).astype(f32)
    h3 = hidden_state.reshape(bs, na, hid).astype(f32)

    # ---- constant masks / selection matrices (built once, outside kernel) ----
    row_grp = jnp.arange(nsl, dtype=jnp.int32) // sl           # agent of row
    amask = jnp.where(row_grp[:, None] == row_grp[None, :], 0.0, -1e9).astype(f32)
    link_id = jnp.arange(nsl, dtype=jnp.int32) % sl             # link of row
    col_link = jnp.arange(sl * fd, dtype=jnp.int32) // fd
    msk_link = (link_id[:, None] == col_link[None, :]).astype(f32)   # [nsl, sl*fd]
    e_exp = jnp.tile(jnp.eye(fd, dtype=f32), (1, sl))                 # [fd, sl*fd]
    gT = (jnp.arange(na, dtype=jnp.int32)[:, None] ==
          row_grp[None, :]).astype(f32)                              # [na, nsl]

    mg_col = jnp.arange(na * msg, dtype=jnp.int32) // msg
    msk_mg = (jnp.arange(na, dtype=jnp.int32)[:, None] ==
              mg_col[None, :]).astype(f32)                           # [na, na*msg]
    sum_mg = jnp.tile(jnp.eye(msg, dtype=f32), (na, 1))              # [na*msg, msg]
    hdc = jnp.arange(na * adim, dtype=jnp.int32) // adim
    msk_head = (jnp.arange(na, dtype=jnp.int32)[:, None] ==
                hdc[None, :]).astype(f32)                            # [na, na*adim]
    sum_head = jnp.tile(jnp.eye(adim, dtype=f32), (na, 1))           # [na*adim, adim]

    # ---- repack weights (pure XLA; keeps the kernel free of lane slices) ----
    wq_s = params["wq1"].reshape(fd, nh, hd).transpose(1, 0, 2)       # [nh, fd, hd]
    bq_s = params["bq1"].reshape(nh, hd)[:, None, :]                  # [nh, 1, hd]
    wk1 = params["wkv1"][:, :hid]
    wv1 = params["wkv1"][:, hid:]
    bk1 = params["bkv1"][:, :hid]
    bv1 = params["bkv1"][:, hid:]
    wk_s = wk1.reshape(fd, nh, hd).transpose(1, 0, 2)
    bk_s = bk1.reshape(nh, hd)[:, None, :]
    wv_s = wv1.reshape(fd, nh, hd).transpose(1, 0, 2)
    bv_s = bv1.reshape(nh, hd)[:, None, :]
    wo_s = params["wo1"].reshape(nh, hd, fd)                          # [nh, hd, fd]

    w_ih_s = params["w_ih"].reshape(hid, 3, hid).transpose(1, 0, 2)   # [3, hid, hid]
    b_ih_s = params["b_ih"].reshape(3, hid)[:, None, :]               # [3, 1, hid]
    w_hh_s = params["w_hh"].reshape(hid, 3, hid).transpose(1, 0, 2)
    b_hh_s = params["b_hh"].reshape(3, hid)[:, None, :]

    w_mg_f = params["w_mg"].transpose(1, 0, 2).reshape(hid, na * msg)
    b_mg_f = params["b_mg"].reshape(1, na * msg)
    w_head_f = params["w_head"].transpose(1, 0, 2).reshape(hid, na * adim)
    b_head_f = params["b_head"].reshape(1, na * adim)

    wv2 = params["wkv2"][:, hid:]          # only the V half is needed (1 key)
    bv2 = params["bkv2"][:, hid:]
    w_qs_h = params["w_qs"][:hid, :]
    w_qs_a = params["w_qs"][hid:, :]

    inputs = [
        x3, h3, amask, e_exp, msk_link, gT,
        wq_s, bq_s, wk_s, bk_s, wv_s, bv_s, wo_s,
        params["bo1"], params["ln1_g"], params["ln1_b"],
        params["w_in"], params["b_in"],
        w_ih_s, b_ih_s, w_hh_s, b_hh_s,
        params["w_ms"], params["b_ms"],
        w_mg_f, b_mg_f, msk_mg, sum_mg,
        wv2, bv2, params["wo2"], params["bo2"],
        params["mln_g"], params["mln_b"],
        w_qs_h, w_qs_a, params["b_qs"],
        w_head_f, b_head_f, msk_head, sum_head,
    ]
    inputs = [a.astype(f32) for a in inputs]

    def _const_spec(a):
        nd = a.ndim
        return pl.BlockSpec(a.shape, lambda i, _nd=nd: (0,) * _nd)

    in_specs = [
        pl.BlockSpec((None, nsl, fd), lambda i: (i, 0, 0)),
        pl.BlockSpec((None, na, hid), lambda i: (i, 0, 0)),
    ] + [_const_spec(a) for a in inputs[2:]]
    out_spec = pl.BlockSpec((None, na, out_w), lambda i: (i, 0, 0))

    # ---- cost estimate (per-step flops x bs; weights fetched once) ----
    flops_head = 6 * nsl * fd * hd + 4 * nsl * nsl * hd + 2 * nsl * hd * fd
    flops_step = (
        nh * flops_head
        + 2 * nsl * fd * (sl * fd) + 2 * nsl * (sl * fd) * hid + 2 * na * nsl * hid
        + 12 * na * hid * hid                     # GRU
        + 2 * na * hid * hid                      # message shared net
        + 2 * na * hid * (na * msg) + 2 * na * (na * msg) * msg + 2 * na * na * msg
        + 2 * na * msg * hid + 2 * na * hid * hid  # message attention (V, out)
        + 2 * na * (hid + msg) * hid               # q shared net
        + 2 * na * hid * (na * adim) + 2 * na * (na * adim) * adim
    )
    transc_step = nh * nsl * nsl + nsl + 3 * na * hid + 2 * na
    bytes_const = 4 * sum(int(a.size) for a in inputs[2:])
    bytes_step = 4 * (nsl * fd + na * hid + na * out_w)
    cost = pl.CostEstimate(flops=int(bs * flops_step),
                           transcendentals=int(bs * transc_step),
                           bytes_accessed=int(bytes_const + bs * bytes_step))

    slab = pl.pallas_call(
        _ls2ic_kernel,
        out_shape=jax.ShapeDtypeStruct((bs, na, out_w), f32),
        grid=(bs,),
        in_specs=in_specs,
        out_specs=out_spec,
        compiler_params=pltpu.CompilerParams(
            dimension_semantics=("parallel",)),
        cost_estimate=cost,
    )(*inputs)

    h = slab[:, :, :hid]
    mean_message = slab[:, :, hid:hid + msg]
    q_values = slab[:, :, hid + msg:hid + msg + adim]
    return q_values, h, mean_message


# ---------------------------------------------------------------------------
# Parameter init (nn.Linear / nn.GRUCell style uniform; LayerNorm gamma/beta
# perturbed so the affine code paths are exercised).
# ---------------------------------------------------------------------------
def init_params(key, num_agents, num_link, num_link_fea,
                hidden_dim, message_dim, action_dim):
    def linear(k, fan_in, fan_out):
        kw, kb = jax.random.split(k)
        bound = 1.0 / (fan_in ** 0.5)
        w = jax.random.uniform(kw, (fan_in, fan_out), jnp.float32, -bound, bound)
        b = jax.random.uniform(kb, (1, fan_out), jnp.float32, -bound, bound)
        return w, b

    keys = jax.random.split(key, 16)
    p = {}
    # input_attention: MultiheadAttention(fea, fea, fea, hidden_dim, 4)
    p["wq1"], p["bq1"] = linear(keys[0], num_link_fea, hidden_dim)
    p["wkv1"], p["bkv1"] = linear(keys[1], num_link_fea, 2 * hidden_dim)
    p["wo1"], p["bo1"] = linear(keys[2], hidden_dim, num_link_fea)
    kg, kb = jax.random.split(keys[3])
    p["ln1_g"] = 1.0 + 0.1 * jax.random.normal(kg, (1, num_link_fea), jnp.float32)
    p["ln1_b"] = 0.1 * jax.random.normal(kb, (1, num_link_fea), jnp.float32)
    # input_linear
    p["w_in"], p["b_in"] = linear(keys[4], num_link * num_link_fea, hidden_dim)
    # GRUCell (gate order r|z|n fused along the output axis)
    gb = 1.0 / (hidden_dim ** 0.5)
    k_ih, k_hh, k_bih, k_bhh = jax.random.split(keys[5], 4)
    p["w_ih"] = jax.random.uniform(k_ih, (hidden_dim, 3 * hidden_dim), jnp.float32, -gb, gb)
    p["w_hh"] = jax.random.uniform(k_hh, (hidden_dim, 3 * hidden_dim), jnp.float32, -gb, gb)
    p["b_ih"] = jax.random.uniform(k_bih, (1, 3 * hidden_dim), jnp.float32, -gb, gb)
    p["b_hh"] = jax.random.uniform(k_bhh, (1, 3 * hidden_dim), jnp.float32, -gb, gb)
    # message shared net
    p["w_ms"], p["b_ms"] = linear(keys[6], hidden_dim, hidden_dim)
    # per-agent message generators (stacked)
    wmg, bmg = [], []
    for i in range(num_agents):
        w, b = linear(jax.random.fold_in(keys[7], i), hidden_dim, message_dim)
        wmg.append(w)
        bmg.append(b)
    p["w_mg"] = jnp.stack(wmg)           # [na, hid, msg]
    p["b_mg"] = jnp.stack(bmg)           # [na, 1, msg]
    # attention_message: MultiheadAttention(hid, msg, hid, hid, 2)
    p["wq2"], p["bq2"] = linear(keys[8], hidden_dim, hidden_dim)   # reference only
    p["wkv2"], p["bkv2"] = linear(keys[9], message_dim, 2 * hidden_dim)
    p["wo2"], p["bo2"] = linear(keys[10], hidden_dim, hidden_dim)
    kg2, kb2 = jax.random.split(keys[11])
    p["mln_g"] = 1.0 + 0.1 * jax.random.normal(kg2, (1, hidden_dim), jnp.float32)
    p["mln_b"] = 0.1 * jax.random.normal(kb2, (1, hidden_dim), jnp.float32)
    # q shared net: Linear(hid + msg, hid)
    p["w_qs"], p["b_qs"] = linear(keys[12], hidden_dim + message_dim, hidden_dim)
    # per-agent Q heads (stacked)
    wh, bh = [], []
    for i in range(num_agents):
        w, b = linear(jax.random.fold_in(keys[13], i), hidden_dim, action_dim)
        wh.append(w)
        bh.append(b)
    p["w_head"] = jnp.stack(wh)          # [na, hid, adim]
    p["b_head"] = jnp.stack(bh)          # [na, 1, adim]
    return p


# ---------------------------------------------------------------------------
# Pure-JAX reference matching the PyTorch module semantics.
# ---------------------------------------------------------------------------
def _mha_reference(query, keyvalue, wq, bq, wkv, bkv, wo, bo, num_heads):
    bs, na, sl, _ = query.shape
    q2 = query.reshape(bs * na, sl, -1)
    kv2 = keyvalue.reshape(bs * na, sl, -1)
    Q = q2 @ wq + bq
    KV = kv2 @ wkv + bkv
    E = wq.shape[1]
    K, V = KV[..., :E], KV[..., E:]
    hd = E // num_heads

    def split(t):
        return t.reshape(bs * na, sl, num_heads, hd).transpose(0, 2, 1, 3)

    Qh, Kh, Vh = split(Q), split(K), split(V)
    s = jnp.einsum("bhqd,bhkd->bhqk", Qh, Kh) / (hd ** 0.5)
    w = jax.nn.softmax(s, axis=-1)
    o = jnp.einsum("bhqk,bhkd->bhqd", w, Vh)
    o = o.transpose(0, 2, 1, 3).reshape(bs * na, sl, E)
    out = o @ wo + bo
    return out.reshape(bs, na, sl, -1)


def reference_forward(states, hidden_state, p):
    bs, na, sl, fd = states.shape
    hid = p["w_in"].shape[1]
    aft = _mha_reference(states, states, p["wq1"], p["bq1"], p["wkv1"],
                         p["bkv1"], p["wo1"], p["bo1"], INPUT_ATTENTION_HEADS)
    x = states + aft
    mu = x.mean(-1, keepdims=True)
    var = ((x - mu) ** 2).mean(-1, keepdims=True)
    x = (x - mu) / jnp.sqrt(var + LN_EPS) * p["ln1_g"] + p["ln1_b"]
    x = x.reshape(bs * na, sl * fd)
    enc = x @ p["w_in"] + p["b_in"]
    hprev = hidden_state.reshape(bs * na, hid)
    gi = enc @ p["w_ih"] + p["b_ih"]
    gh = hprev @ p["w_hh"] + p["b_hh"]
    r = jax.nn.sigmoid(gi[:, :hid] + gh[:, :hid])
    z = jax.nn.sigmoid(gi[:, hid:2 * hid] + gh[:, hid:2 * hid])
    n = jnp.tanh(gi[:, 2 * hid:] + r * gh[:, 2 * hid:])
    h = (1.0 - z) * n + z * hprev
    h3 = h.reshape(bs, na, hid)
    me = jnp.maximum(h3 @ p["w_ms"] + p["b_ms"], 0.0)
    msgs = jnp.stack([me[:, i, :] @ p["w_mg"][i] + p["b_mg"][i, 0]
                      for i in range(na)], axis=1)
    mean_msg = jnp.broadcast_to(msgs.sum(axis=1, keepdims=True) / na, msgs.shape)
    after = _mha_reference(h3[:, :, None, :], mean_msg[:, :, None, :],
                           p["wq2"], p["bq2"], p["wkv2"], p["bkv2"],
                           p["wo2"], p["bo2"], 2)[:, :, 0, :]
    pre = h3 + after
    mu2 = pre.mean(-1, keepdims=True)
    var2 = ((pre - mu2) ** 2).mean(-1, keepdims=True)
    after_ln = (pre - mu2) / jnp.sqrt(var2 + LN_EPS) * p["mln_g"] + p["mln_b"]
    feat = jnp.concatenate([h3, after_ln], axis=-1)
    qe = jnp.maximum(feat @ p["w_qs"] + p["b_qs"], 0.0)
    qv = jnp.stack([qe[:, i, :] @ p["w_head"][i] + p["b_head"][i, 0]
                    for i in range(na)], axis=1)
    return qv, h3, mean_msg


if __name__ == "__main__":
    # small shapes consistent with the module defaults
    bs, num_agents = 2, 4
    num_link, num_link_fea = 8, 4
    hidden_dim, message_dim, action_dim = 32, 32, 8

    key = jax.random.PRNGKey(0)
    k_s, k_h, k_p = jax.random.split(key, 3)
    states = jax.random.normal(k_s, (bs, num_agents, num_link, num_link_fea),
                               dtype=jnp.float32)
    hidden_state = jax.random.normal(k_h, (bs, num_agents, hidden_dim),
                                     dtype=jnp.float32)
    params = init_params(k_p, num_agents, num_link, num_link_fea,
                         hidden_dim, message_dim, action_dim)

    fwd = jax.jit(ls2ic_forward)
    q_values, h, mean_message = fwd(states, hidden_state, params)
    jax.block_until_ready((q_values, h, mean_message))

    with jax.default_matmul_precision("highest"):
        q_ref, h_ref, mm_ref = reference_forward(states, hidden_state, params)

    assert q_values.shape == (bs, num_agents, action_dim)
    assert h.shape == (bs, num_agents, hidden_dim)
    assert mean_message.shape == (bs, num_agents, message_dim)
    assert jnp.allclose(q_values, q_ref, atol=2e-3, rtol=2e-3), \
        float(jnp.max(jnp.abs(q_values - q_ref)))
    assert jnp.allclose(h, h_ref, atol=2e-3, rtol=2e-3), \
        float(jnp.max(jnp.abs(h - h_ref)))
    assert jnp.allclose(mean_message, mm_ref, atol=2e-3, rtol=2e-3), \
        float(jnp.max(jnp.abs(mean_message - mm_ref)))

    print("KERNEL_OK")
</pallas_src>

<mosaic_0001>
module attributes {stable_mosaic.version = 11 : i64} {
  func.func @_ls2ic_kernel(%arg0: i32, %arg1: memref<1x32x4xf32, #tpu.memory_space<vmem>>, %arg2: memref<1x4x32xf32, #tpu.memory_space<vmem>>, %arg3: memref<32x32xf32, #tpu.memory_space<vmem>>, %arg4: memref<4x32xf32, #tpu.memory_space<vmem>>, %arg5: memref<32x32xf32, #tpu.memory_space<vmem>>, %arg6: memref<4x32xf32, #tpu.memory_space<vmem>>, %arg7: memref<4x4x8xf32, #tpu.memory_space<vmem>>, %arg8: memref<4x1x8xf32, #tpu.memory_space<vmem>>, %arg9: memref<4x4x8xf32, #tpu.memory_space<vmem>>, %arg10: memref<4x1x8xf32, #tpu.memory_space<vmem>>, %arg11: memref<4x4x8xf32, #tpu.memory_space<vmem>>, %arg12: memref<4x1x8xf32, #tpu.memory_space<vmem>>, %arg13: memref<4x8x4xf32, #tpu.memory_space<vmem>>, %arg14: memref<1x4xf32, #tpu.memory_space<vmem>>, %arg15: memref<1x4xf32, #tpu.memory_space<vmem>>, %arg16: memref<1x4xf32, #tpu.memory_space<vmem>>, %arg17: memref<32x32xf32, #tpu.memory_space<vmem>>, %arg18: memref<1x32xf32, #tpu.memory_space<vmem>>, %arg19: memref<3x32x32xf32, #tpu.memory_space<vmem>>, %arg20: memref<3x1x32xf32, #tpu.memory_space<vmem>>, %arg21: memref<3x32x32xf32, #tpu.memory_space<vmem>>, %arg22: memref<3x1x32xf32, #tpu.memory_space<vmem>>, %arg23: memref<32x32xf32, #tpu.memory_space<vmem>>, %arg24: memref<1x32xf32, #tpu.memory_space<vmem>>, %arg25: memref<32x128xf32, #tpu.memory_space<vmem>>, %arg26: memref<1x128xf32, #tpu.memory_space<vmem>>, %arg27: memref<4x128xf32, #tpu.memory_space<vmem>>, %arg28: memref<128x32xf32, #tpu.memory_space<vmem>>, %arg29: memref<32x32xf32, #tpu.memory_space<vmem>>, %arg30: memref<1x32xf32, #tpu.memory_space<vmem>>, %arg31: memref<32x32xf32, #tpu.memory_space<vmem>>, %arg32: memref<1x32xf32, #tpu.memory_space<vmem>>, %arg33: memref<1x32xf32, #tpu.memory_space<vmem>>, %arg34: memref<1x32xf32, #tpu.memory_space<vmem>>, %arg35: memref<32x32xf32, #tpu.memory_space<vmem>>, %arg36: memref<32x32xf32, #tpu.memory_space<vmem>>, %arg37: memref<1x32xf32, #tpu.memory_space<vmem>>, %arg38: memref<32x32xf32, #tpu.memory_space<vmem>>, %arg39: memref<1x32xf32, #tpu.memory_space<vmem>>, %arg40: memref<4x32xf32, #tpu.memory_space<vmem>>, %arg41: memref<32x8xf32, #tpu.memory_space<vmem>>, %arg42: memref<1x4x128xf32, #tpu.memory_space<vmem>>) attributes {dimension_semantics = [#tpu.dimension_semantics<parallel>], iteration_bounds = array<i64: 2>, scalar_prefetch = 0 : i64, scratch_operands = 0 : i64, tpu.core_type = #tpu.core_type<tc>, window_params = [{transform_indices = @transform_0, window_bounds = array<i64: 1, 32, 4>}, {transform_indices = @transform_1, window_bounds = array<i64: 1, 4, 32>}, {pipeline_mode = #tpu.pipeline_mode<synchronous>, transform_indices = @transform_2, window_bounds = array<i64: 32, 32>}, {pipeline_mode = #tpu.pipeline_mode<synchronous>, transform_indices = @transform_3, window_bounds = array<i64: 4, 32>}, {pipeline_mode = #tpu.pipeline_mode<synchronous>, transform_indices = @transform_4, window_bounds = array<i64: 32, 32>}, {pipeline_mode = #tpu.pipeline_mode<synchronous>, transform_indices = @transform_5, window_bounds = array<i64: 4, 32>}, {pipeline_mode = #tpu.pipeline_mode<synchronous>, transform_indices = @transform_6, window_bounds = array<i64: 4, 4, 8>}, {pipeline_mode = #tpu.pipeline_mode<synchronous>, transform_indices = @transform_7, window_bounds = array<i64: 4, 1, 8>}, {pipeline_mode = #tpu.pipeline_mode<synchronous>, transform_indices = @transform_8, window_bounds = array<i64: 4, 4, 8>}, {pipeline_mode = #tpu.pipeline_mode<synchronous>, transform_indices = @transform_9, window_bounds = array<i64: 4, 1, 8>}, {pipeline_mode = #tpu.pipeline_mode<synchronous>, transform_indices = @transform_10, window_bounds = array<i64: 4, 4, 8>}, {pipeline_mode = #tpu.pipeline_mode<synchronous>, transform_indices = @transform_11, window_bounds = array<i64: 4, 1, 8>}, {pipeline_mode = #tpu.pipeline_mode<synchronous>, transform_indices = @transform_12, window_bounds = array<i64: 4, 8, 4>}, {pipeline_mode = #tpu.pipeline_mode<synchronous>, transform_indices = @transform_13, window_bounds = array<i64: 1, 4>}, {pipeline_mode = #tpu.pipeline_mode<synchronous>, transform_indices = @transform_14, window_bounds = array<i64: 1, 4>}, {pipeline_mode = #tpu.pipeline_mode<synchronous>, transform_indices = @transform_15, window_bounds = array<i64: 1, 4>}, {pipeline_mode = #tpu.pipeline_mode<synchronous>, transform_indices = @transform_16, window_bounds = array<i64: 32, 32>}, {pipeline_mode = #tpu.pipeline_mode<synchronous>, transform_indices = @transform_17, window_bounds = array<i64: 1, 32>}, {pipeline_mode = #tpu.pipeline_mode<synchronous>, transform_indices = @transform_18, window_bounds = array<i64: 3, 32, 32>}, {pipeline_mode = #tpu.pipeline_mode<synchronous>, transform_indices = @transform_19, window_bounds = array<i64: 3, 1, 32>}, {pipeline_mode = #tpu.pipeline_mode<synchronous>, transform_indices = @transform_20, window_bounds = array<i64: 3, 32, 32>}, {pipeline_mode = #tpu.pipeline_mode<synchronous>, transform_indices = @transform_21, window_bounds = array<i64: 3, 1, 32>}, {pipeline_mode = #tpu.pipeline_mode<synchronous>, transform_indices = @transform_22, window_bounds = array<i64: 32, 32>}, {pipeline_mode = #tpu.pipeline_mode<synchronous>, transform_indices = @transform_23, window_bounds = array<i64: 1, 32>}, {pipeline_mode = #tpu.pipeline_mode<synchronous>, transform_indices = @transform_24, window_bounds = array<i64: 32, 128>}, {pipeline_mode = #tpu.pipeline_mode<synchronous>, transform_indices = @transform_25, window_bounds = array<i64: 1, 128>}, {pipeline_mode = #tpu.pipeline_mode<synchronous>, transform_indices = @transform_26, window_bounds = array<i64: 4, 128>}, {pipeline_mode = #tpu.pipeline_mode<synchronous>, transform_indices = @transform_27, window_bounds = array<i64: 128, 32>}, {pipeline_mode = #tpu.pipeline_mode<synchronous>, transform_indices = @transform_28, window_bounds = array<i64: 32, 32>}, {pipeline_mode = #tpu.pipeline_mode<synchronous>, transform_indices = @transform_29, window_bounds = array<i64: 1, 32>}, {pipeline_mode = #tpu.pipeline_mode<synchronous>, transform_indices = @transform_30, window_bounds = array<i64: 32, 32>}, {pipeline_mode = #tpu.pipeline_mode<synchronous>, transform_indices = @transform_31, window_bounds = array<i64: 1, 32>}, {pipeline_mode = #tpu.pipeline_mode<synchronous>, transform_indices = @transform_32, window_bounds = array<i64: 1, 32>}, {pipeline_mode = #tpu.pipeline_mode<synchronous>, transform_indices = @transform_33, window_bounds = array<i64: 1, 32>}, {pipeline_mode = #tpu.pipeline_mode<synchronous>, transform_indices = @transform_34, window_bounds = array<i64: 32, 32>}, {pipeline_mode = #tpu.pipeline_mode<synchronous>, transform_indices = @transform_35, window_bounds = array<i64: 32, 32>}, {pipeline_mode = #tpu.pipeline_mode<synchronous>, transform_indices = @transform_36, window_bounds = array<i64: 1, 32>}, {pipeline_mode = #tpu.pipeline_mode<synchronous>, transform_indices = @transform_37, window_bounds = array<i64: 32, 32>}, {pipeline_mode = #tpu.pipeline_mode<synchronous>, transform_indices = @transform_38, window_bounds = array<i64: 1, 32>}, {pipeline_mode = #tpu.pipeline_mode<synchronous>, transform_indices = @transform_39, window_bounds = array<i64: 4, 32>}, {pipeline_mode = #tpu.pipeline_mode<synchronous>, transform_indices = @transform_40, window_bounds = array<i64: 32, 8>}, {transform_indices = @transform_41, window_bounds = array<i64: 1, 4, 128>}]} {
    %c0 = arith.constant 0 : index
    %c0_0 = arith.constant 0 : index
    %c0_1 = arith.constant 0 : index
    %0 = vector.load %arg1[%c0, %c0_0, %c0_1] : memref<1x32x4xf32, #tpu.memory_space<vmem>>, vector<1x32x4xf32>
    %1 = vector.shape_cast %0 : vector<1x32x4xf32> to vector<32x4xf32>
    %c0_2 = arith.constant 0 : index
    %c0_3 = arith.constant 0 : index
    %c0_4 = arith.constant 0 : index
    %2 = vector.load %arg2[%c0_2, %c0_3, %c0_4] : memref<1x4x32xf32, #tpu.memory_space<vmem>>, vector<1x4x32xf32>
    %3 = vector.shape_cast %2 : vector<1x4x32xf32> to vector<4x32xf32>
    %c0_5 = arith.constant 0 : index
    %c0_6 = arith.constant 0 : index
    %4 = vector.load %arg3[%c0_5, %c0_6] : memref<32x32xf32, #tpu.memory_space<vmem>>, vector<32x32xf32>
    %cst = arith.constant 0.000000e+00 : f32
    %5 = vector.broadcast %cst : f32 to vector<32x4xf32>
    %c0_7 = arith.constant 0 : index
    %c0_8 = arith.constant 0 : index
    %c0_9 = arith.constant 0 : index
    %6 = vector.load %arg7[%c0_7, %c0_8, %c0_9] : memref<4x4x8xf32, #tpu.memory_space<vmem>>, vector<1x4x8xf32>
    %7 = vector.shape_cast %6 : vector<1x4x8xf32> to vector<4x8xf32>
    %cst_10 = arith.constant dense<0.000000e+00> : vector<32x8xf32>
    %8 = tpu.matmul %1, %7, %cst_10 {dimension_numbers = #tpu.dot_dimension_numbers<[1], [0], [0], [1], [0, 0, 1, 1], [], []>} : vector<32x4xf32>, vector<4x8xf32>, vector<32x8xf32> -> vector<32x8xf32>
    %c0_11 = arith.constant 0 : index
    %c0_12 = arith.constant 0 : index
    %c0_13 = arith.constant 0 : index
    %9 = vector.load %arg8[%c0_11, %c0_12, %c0_13] : memref<4x1x8xf32, #tpu.memory_space<vmem>>, vector<1x1x8xf32>
    %10 = vector.shape_cast %9 : vector<1x1x8xf32> to vector<1x8xf32>
    %11 = vector.broadcast %10 : vector<1x8xf32> to vector<32x8xf32>
    %12 = arith.addf %8, %11 : vector<32x8xf32>
    %c0_14 = arith.constant 0 : index
    %c0_15 = arith.constant 0 : index
    %c0_16 = arith.constant 0 : index
    %13 = vector.load %arg9[%c0_14, %c0_15, %c0_16] : memref<4x4x8xf32, #tpu.memory_space<vmem>>, vector<1x4x8xf32>
    %14 = vector.shape_cast %13 : vector<1x4x8xf32> to vector<4x8xf32>
    %cst_17 = arith.constant dense<0.000000e+00> : vector<32x8xf32>
    %15 = tpu.matmul %1, %14, %cst_17 {dimension_numbers = #tpu.dot_dimension_numbers<[1], [0], [0], [1], [0, 0, 1, 1], [], []>} : vector<32x4xf32>, vector<4x8xf32>, vector<32x8xf32> -> vector<32x8xf32>
    %c0_18 = arith.constant 0 : index
    %c0_19 = arith.constant 0 : index
    %c0_20 = arith.constant 0 : index
    %16 = vector.load %arg10[%c0_18, %c0_19, %c0_20] : memref<4x1x8xf32, #tpu.memory_space<vmem>>, vector<1x1x8xf32>
    %17 = vector.shape_cast %16 : vector<1x1x8xf32> to vector<1x8xf32>
    %18 = vector.broadcast %17 : vector<1x8xf32> to vector<32x8xf32>
    %19 = arith.addf %15, %18 : vector<32x8xf32>
    %c0_21 = arith.constant 0 : index
    %c0_22 = arith.constant 0 : index
    %c0_23 = arith.constant 0 : index
    %20 = vector.load %arg11[%c0_21, %c0_22, %c0_23] : memref<4x4x8xf32, #tpu.memory_space<vmem>>, vector<1x4x8xf32>
    %21 = vector.shape_cast %20 : vector<1x4x8xf32> to vector<4x8xf32>
    %cst_24 = arith.constant dense<0.000000e+00> : vector<32x8xf32>
    %22 = tpu.matmul %1, %21, %cst_24 {dimension_numbers = #tpu.dot_dimension_numbers<[1], [0], [0], [1], [0, 0, 1, 1], [], []>} : vector<32x4xf32>, vector<4x8xf32>, vector<32x8xf32> -> vector<32x8xf32>
    %c0_25 = arith.constant 0 : index
    %c0_26 = arith.constant 0 : index
    %c0_27 = arith.constant 0 : index
    %23 = vector.load %arg12[%c0_25, %c0_26, %c0_27] : memref<4x1x8xf32, #tpu.memory_space<vmem>>, vector<1x1x8xf32>
    %24 = vector.shape_cast %23 : vector<1x1x8xf32> to vector<1x8xf32>
    %25 = vector.broadcast %24 : vector<1x8xf32> to vector<32x8xf32>
    %26 = arith.addf %22, %25 : vector<32x8xf32>
    %cst_28 = arith.constant dense<0.000000e+00> : vector<32x32xf32>
    %27 = tpu.matmul %12, %19, %cst_28 {dimension_numbers = #tpu.dot_dimension_numbers<[1], [1], [0], [0], [0, 0, 1, 0], [], []>} : vector<32x8xf32>, vector<32x8xf32>, vector<32x32xf32> -> vector<32x32xf32>
    %cst_29 = arith.constant 0.353553385 : f32
    %28 = vector.broadcast %cst_29 : f32 to vector<32x32xf32>
    %29 = arith.mulf %27, %28 : vector<32x32xf32>
    %30 = arith.addf %29, %4 : vector<32x32xf32>
    %cst_30 = arith.constant dense<0xFF800000> : vector<32xf32>
    %31 = vector.multi_reduction <maximumf>, %30, %cst_30 [1] : vector<32x32xf32> to vector<32xf32>
    %32 = vector.shape_cast %31 : vector<32xf32> to vector<32x1xf32>
    %33 = vector.broadcast %32 : vector<32x1xf32> to vector<32x32xf32>
    %34 = arith.subf %30, %33 : vector<32x32xf32>
    %35 = math.exp %34 : vector<32x32xf32>
    %cst_31 = arith.constant dense<0.000000e+00> : vector<32xf32>
    %36 = vector.multi_reduction <add>, %35, %cst_31 [1] : vector<32x32xf32> to vector<32xf32>
    %37 = vector.shape_cast %36 : vector<32xf32> to vector<32x1xf32>
    %38 = tpu.reciprocal %37 {approx = true} : vector<32x1xf32> -> vector<32x1xf32>
    %39 = vector.broadcast %38 : vector<32x1xf32> to vector<32x32xf32>
    %40 = arith.mulf %35, %39 : vector<32x32xf32>
    %cst_32 = arith.constant dense<0.000000e+00> : vector<32x8xf32>
    %41 = tpu.matmul %40, %26, %cst_32 {dimension_numbers = #tpu.dot_dimension_numbers<[1], [0], [0], [1], [0, 0, 1, 1], [], []>} : vector<32x32xf32>, vector<32x8xf32>, vector<32x8xf32> -> vector<32x8xf32>
    %c0_33 = arith.constant 0 : index
    %c0_34 = arith.constant 0 : index
    %c0_35 = arith.constant 0 : index
    %42 = vector.load %arg13[%c0_33, %c0_34, %c0_35] : memref<4x8x4xf32, #tpu.memory_space<vmem>>, vector<1x8x4xf32>
    %43 = vector.shape_cast %42 : vector<1x8x4xf32> to vector<8x4xf32>
    %cst_36 = arith.constant dense<0.000000e+00> : vector<32x4xf32>
    %44 = tpu.matmul %41, %43, %cst_36 {dimension_numbers = #tpu.dot_dimension_numbers<[1], [0], [0], [1], [0, 0, 1, 1], [], []>} : vector<32x8xf32>, vector<8x4xf32>, vector<32x4xf32> -> vector<32x4xf32>
    %45 = arith.addf %5, %44 : vector<32x4xf32>
    %c1 = arith.constant 1 : index
    %c0_37 = arith.constant 0 : index
    %c0_38 = arith.constant 0 : index
    %46 = vector.load %arg7[%c1, %c0_37, %c0_38] : memref<4x4x8xf32, #tpu.memory_space<vmem>>, vector<1x4x8xf32>
    %47 = vector.shape_cast %46 : vector<1x4x8xf32> to vector<4x8xf32>
    %cst_39 = arith.constant dense<0.000000e+00> : vector<32x8xf32>
    %48 = tpu.matmul %1, %47, %cst_39 {dimension_numbers = #tpu.dot_dimension_numbers<[1], [0], [0], [1], [0, 0, 1, 1], [], []>} : vector<32x4xf32>, vector<4x8xf32>, vector<32x8xf32> -> vector<32x8xf32>
    %c1_40 = arith.constant 1 : index
    %c0_41 = arith.constant 0 : index
    %c0_42 = arith.constant 0 : index
    %49 = vector.load %arg8[%c1_40, %c0_41, %c0_42] : memref<4x1x8xf32, #tpu.memory_space<vmem>>, vector<1x1x8xf32>
    %50 = vector.shape_cast %49 : vector<1x1x8xf32> to vector<1x8xf32>
    %51 = vector.broadcast %50 : vector<1x8xf32> to vector<32x8xf32>
    %52 = arith.addf %48, %51 : vector<32x8xf32>
    %c1_43 = arith.constant 1 : index
    %c0_44 = arith.constant 0 : index
    %c0_45 = arith.constant 0 : index
    %53 = vector.load %arg9[%c1_43, %c0_44, %c0_45] : memref<4x4x8xf32, #tpu.memory_space<vmem>>, vector<1x4x8xf32>
    %54 = vector.shape_cast %53 : vector<1x4x8xf32> to vector<4x8xf32>
    %cst_46 = arith.constant dense<0.000000e+00> : vector<32x8xf32>
    %55 = tpu.matmul %1, %54, %cst_46 {dimension_numbers = #tpu.dot_dimension_numbers<[1], [0], [0], [1], [0, 0, 1, 1], [], []>} : vector<32x4xf32>, vector<4x8xf32>, vector<32x8xf32> -> vector<32x8xf32>
    %c1_47 = arith.constant 1 : index
    %c0_48 = arith.constant 0 : index
    %c0_49 = arith.constant 0 : index
    %56 = vector.load %arg10[%c1_47, %c0_48, %c0_49] : memref<4x1x8xf32, #tpu.memory_space<vmem>>, vector<1x1x8xf32>
    %57 = vector.shape_cast %56 : vector<1x1x8xf32> to vector<1x8xf32>
    %58 = vector.broadcast %57 : vector<1x8xf32> to vector<32x8xf32>
    %59 = arith.addf %55, %58 : vector<32x8xf32>
    %c1_50 = arith.constant 1 : index
    %c0_51 = arith.constant 0 : index
    %c0_52 = arith.constant 0 : index
    %60 = vector.load %arg11[%c1_50, %c0_51, %c0_52] : memref<4x4x8xf32, #tpu.memory_space<vmem>>, vector<1x4x8xf32>
    %61 = vector.shape_cast %60 : vector<1x4x8xf32> to vector<4x8xf32>
    %cst_53 = arith.constant dense<0.000000e+00> : vector<32x8xf32>
    %62 = tpu.matmul %1, %61, %cst_53 {dimension_numbers = #tpu.dot_dimension_numbers<[1], [0], [0], [1], [0, 0, 1, 1], [], []>} : vector<32x4xf32>, vector<4x8xf32>, vector<32x8xf32> -> vector<32x8xf32>
    %c1_54 = arith.constant 1 : index
    %c0_55 = arith.constant 0 : index
    %c0_56 = arith.constant 0 : index
    %63 = vector.load %arg12[%c1_54, %c0_55, %c0_56] : memref<4x1x8xf32, #tpu.memory_space<vmem>>, vector<1x1x8xf32>
    %64 = vector.shape_cast %63 : vector<1x1x8xf32> to vector<1x8xf32>
    %65 = vector.broadcast %64 : vector<1x8xf32> to vector<32x8xf32>
    %66 = arith.addf %62, %65 : vector<32x8xf32>
    %cst_57 = arith.constant dense<0.000000e+00> : vector<32x32xf32>
    %67 = tpu.matmul %52, %59, %cst_57 {dimension_numbers = #tpu.dot_dimension_numbers<[1], [1], [0], [0], [0, 0, 1, 0], [], []>} : vector<32x8xf32>, vector<32x8xf32>, vector<32x32xf32> -> vector<32x32xf32>
    %cst_58 = arith.constant 0.353553385 : f32
    %68 = vector.broadcast %cst_58 : f32 to vector<32x32xf32>
    %69 = arith.mulf %67, %68 : vector<32x32xf32>
    %70 = arith.addf %69, %4 : vector<32x32xf32>
    %cst_59 = arith.constant dense<0xFF800000> : vector<32xf32>
    %71 = vector.multi_reduction <maximumf>, %70, %cst_59 [1] : vector<32x32xf32> to vector<32xf32>
    %72 = vector.shape_cast %71 : vector<32xf32> to vector<32x1xf32>
    %73 = vector.broadcast %72 : vector<32x1xf32> to vector<32x32xf32>
    %74 = arith.subf %70, %73 : vector<32x32xf32>
    %75 = math.exp %74 : vector<32x32xf32>
    %cst_60 = arith.constant dense<0.000000e+00> : vector<32xf32>
    %76 = vector.multi_reduction <add>, %75, %cst_60 [1] : vector<32x32xf32> to vector<32xf32>
    %77 = vector.shape_cast %76 : vector<32xf32> to vector<32x1xf32>
    %78 = tpu.reciprocal %77 {approx = true} : vector<32x1xf32> -> vector<32x1xf32>
    %79 = vector.broadcast %78 : vector<32x1xf32> to vector<32x32xf32>
    %80 = arith.mulf %75, %79 : vector<32x32xf32>
    %cst_61 = arith.constant dense<0.000000e+00> : vector<32x8xf32>
    %81 = tpu.matmul %80, %66, %cst_61 {dimension_numbers = #tpu.dot_dimension_numbers<[1], [0], [0], [1], [0, 0, 1, 1], [], []>} : vector<32x32xf32>, vector<32x8xf32>, vector<32x8xf32> -> vector<32x8xf32>
    %c1_62 = arith.constant 1 : index
    %c0_63 = arith.constant 0 : index
    %c0_64 = arith.constant 0 : index
    %82 = vector.load %arg13[%c1_62, %c0_63, %c0_64] : memref<4x8x4xf32, #tpu.memory_space<vmem>>, vector<1x8x4xf32>
    %83 = vector.shape_cast %82 : vector<1x8x4xf32> to vector<8x4xf32>
    %cst_65 = arith.constant dense<0.000000e+00> : vector<32x4xf32>
    %84 = tpu.matmul %81, %83, %cst_65 {dimension_numbers = #tpu.dot_dimension_numbers<[1], [0], [0], [1], [0, 0, 1, 1], [], []>} : vector<32x8xf32>, vector<8x4xf32>, vector<32x4xf32> -> vector<32x4xf32>
    %85 = arith.addf %45, %84 : vector<32x4xf32>
    %c2 = arith.constant 2 : index
    %c0_66 = arith.constant 0 : index
    %c0_67 = arith.constant 0 : index
    %86 = vector.load %arg7[%c2, %c0_66, %c0_67] : memref<4x4x8xf32, #tpu.memory_space<vmem>>, vector<1x4x8xf32>
    %87 = vector.shape_cast %86 : vector<1x4x8xf32> to vector<4x8xf32>
    %cst_68 = arith.constant dense<0.000000e+00> : vector<32x8xf32>
    %88 = tpu.matmul %1, %87, %cst_68 {dimension_numbers = #tpu.dot_dimension_numbers<[1], [0], [0], [1], [0, 0, 1, 1], [], []>} : vector<32x4xf32>, vector<4x8xf32>, vector<32x8xf32> -> vector<32x8xf32>
    %c2_69 = arith.constant 2 : index
    %c0_70 = arith.constant 0 : index
    %c0_71 = arith.constant 0 : index
    %89 = vector.load %arg8[%c2_69, %c0_70, %c0_71] : memref<4x1x8xf32, #tpu.memory_space<vmem>>, vector<1x1x8xf32>
    %90 = vector.shape_cast %89 : vector<1x1x8xf32> to vector<1x8xf32>
    %91 = vector.broadcast %90 : vector<1x8xf32> to vector<32x8xf32>
    %92 = arith.addf %88, %91 : vector<32x8xf32>
    %c2_72 = arith.constant 2 : index
    %c0_73 = arith.constant 0 : index
    %c0_74 = arith.constant 0 : index
    %93 = vector.load %arg9[%c2_72, %c0_73, %c0_74] : memref<4x4x8xf32, #tpu.memory_space<vmem>>, vector<1x4x8xf32>
    %94 = vector.shape_cast %93 : vector<1x4x8xf32> to vector<4x8xf32>
    %cst_75 = arith.constant dense<0.000000e+00> : vector<32x8xf32>
    %95 = tpu.matmul %1, %94, %cst_75 {dimension_numbers = #tpu.dot_dimension_numbers<[1], [0], [0], [1], [0, 0, 1, 1], [], []>} : vector<32x4xf32>, vector<4x8xf32>, vector<32x8xf32> -> vector<32x8xf32>
    %c2_76 = arith.constant 2 : index
    %c0_77 = arith.constant 0 : index
    %c0_78 = arith.constant 0 : index
    %96 = vector.load %arg10[%c2_76, %c0_77, %c0_78] : memref<4x1x8xf32, #tpu.memory_space<vmem>>, vector<1x1x8xf32>
    %97 = vector.shape_cast %96 : vector<1x1x8xf32> to vector<1x8xf32>
    %98 = vector.broadcast %97 : vector<1x8xf32> to vector<32x8xf32>
    %99 = arith.addf %95, %98 : vector<32x8xf32>
    %c2_79 = arith.constant 2 : index
    %c0_80 = arith.constant 0 : index
    %c0_81 = arith.constant 0 : index
    %100 = vector.load %arg11[%c2_79, %c0_80, %c0_81] : memref<4x4x8xf32, #tpu.memory_space<vmem>>, vector<1x4x8xf32>
    %101 = vector.shape_cast %100 : vector<1x4x8xf32> to vector<4x8xf32>
    %cst_82 = arith.constant dense<0.000000e+00> : vector<32x8xf32>
    %102 = tpu.matmul %1, %101, %cst_82 {dimension_numbers = #tpu.dot_dimension_numbers<[1], [0], [0], [1], [0, 0, 1, 1], [], []>} : vector<32x4xf32>, vector<4x8xf32>, vector<32x8xf32> -> vector<32x8xf32>
    %c2_83 = arith.constant 2 : index
    %c0_84 = arith.constant 0 : index
    %c0_85 = arith.constant 0 : index
    %103 = vector.load %arg12[%c2_83, %c0_84, %c0_85] : memref<4x1x8xf32, #tpu.memory_space<vmem>>, vector<1x1x8xf32>
    %104 = vector.shape_cast %103 : vector<1x1x8xf32> to vector<1x8xf32>
    %105 = vector.broadcast %104 : vector<1x8xf32> to vector<32x8xf32>
    %106 = arith.addf %102, %105 : vector<32x8xf32>
    %cst_86 = arith.constant dense<0.000000e+00> : vector<32x32xf32>
    %107 = tpu.matmul %92, %99, %cst_86 {dimension_numbers = #tpu.dot_dimension_numbers<[1], [1], [0], [0], [0, 0, 1, 0], [], []>} : vector<32x8xf32>, vector<32x8xf32>, vector<32x32xf32> -> vector<32x32xf32>
    %cst_87 = arith.constant 0.353553385 : f32
    %108 = vector.broadcast %cst_87 : f32 to vector<32x32xf32>
    %109 = arith.mulf %107, %108 : vector<32x32xf32>
    %110 = arith.addf %109, %4 : vector<32x32xf32>
    %cst_88 = arith.constant dense<0xFF800000> : vector<32xf32>
    %111 = vector.multi_reduction <maximumf>, %110, %cst_88 [1] : vector<32x32xf32> to vector<32xf32>
    %112 = vector.shape_cast %111 : vector<32xf32> to vector<32x1xf32>
    %113 = vector.broadcast %112 : vector<32x1xf32> to vector<32x32xf32>
    %114 = arith.subf %110, %113 : vector<32x32xf32>
    %115 = math.exp %114 : vector<32x32xf32>
    %cst_89 = arith.constant dense<0.000000e+00> : vector<32xf32>
    %116 = vector.multi_reduction <add>, %115, %cst_89 [1] : vector<32x32xf32> to vector<32xf32>
    %117 = vector.shape_cast %116 : vector<32xf32> to vector<32x1xf32>
    %118 = tpu.reciprocal %117 {approx = true} : vector<32x1xf32> -> vector<32x1xf32>
    %119 = vector.broadcast %118 : vector<32x1xf32> to vector<32x32xf32>
    %120 = arith.mulf %115, %119 : vector<32x32xf32>
    %cst_90 = arith.constant dense<0.000000e+00> : vector<32x8xf32>
    %121 = tpu.matmul %120, %106, %cst_90 {dimension_numbers = #tpu.dot_dimension_numbers<[1], [0], [0], [1], [0, 0, 1, 1], [], []>} : vector<32x32xf32>, vector<32x8xf32>, vector<32x8xf32> -> vector<32x8xf32>
    %c2_91 = arith.constant 2 : index
    %c0_92 = arith.constant 0 : index
    %c0_93 = arith.constant 0 : index
    %122 = vector.load %arg13[%c2_91, %c0_92, %c0_93] : memref<4x8x4xf32, #tpu.memory_space<vmem>>, vector<1x8x4xf32>
    %123 = vector.shape_cast %122 : vector<1x8x4xf32> to vector<8x4xf32>
    %cst_94 = arith.constant dense<0.000000e+00> : vector<32x4xf32>
    %124 = tpu.matmul %121, %123, %cst_94 {dimension_numbers = #tpu.dot_dimension_numbers<[1], [0], [0], [1], [0, 0, 1, 1], [], []>} : vector<32x8xf32>, vector<8x4xf32>, vector<32x4xf32> -> vector<32x4xf32>
    %125 = arith.addf %85, %124 : vector<32x4xf32>
    %c3 = arith.constant 3 : index
    %c0_95 = arith.constant 0 : index
    %c0_96 = arith.constant 0 : index
    %126 = vector.load %arg7[%c3, %c0_95, %c0_96] : memref<4x4x8xf32, #tpu.memory_space<vmem>>, vector<1x4x8xf32>
    %127 = vector.shape_cast %126 : vector<1x4x8xf32> to vector<4x8xf32>
    %cst_97 = arith.constant dense<0.000000e+00> : vector<32x8xf32>
    %128 = tpu.matmul %1, %127, %cst_97 {dimension_numbers = #tpu.dot_dimension_numbers<[1], [0], [0], [1], [0, 0, 1, 1], [], []>} : vector<32x4xf32>, vector<4x8xf32>, vector<32x8xf32> -> vector<32x8xf32>
    %c3_98 = arith.constant 3 : index
    %c0_99 = arith.constant 0 : index
    %c0_100 = arith.constant 0 : index
    %129 = vector.load %arg8[%c3_98, %c0_99, %c0_100] : memref<4x1x8xf32, #tpu.memory_space<vmem>>, vector<1x1x8xf32>
    %130 = vector.shape_cast %129 : vector<1x1x8xf32> to vector<1x8xf32>
    %131 = vector.broadcast %130 : vector<1x8xf32> to vector<32x8xf32>
    %132 = arith.addf %128, %131 : vector<32x8xf32>
    %c3_101 = arith.constant 3 : index
    %c0_102 = arith.constant 0 : index
    %c0_103 = arith.constant 0 : index
    %133 = vector.load %arg9[%c3_101, %c0_102, %c0_103] : memref<4x4x8xf32, #tpu.memory_space<vmem>>, vector<1x4x8xf32>
    %134 = vector.shape_cast %133 : vector<1x4x8xf32> to vector<4x8xf32>
    %cst_104 = arith.constant dense<0.000000e+00> : vector<32x8xf32>
    %135 = tpu.matmul %1, %134, %cst_104 {dimension_numbers = #tpu.dot_dimension_numbers<[1], [0], [0], [1], [0, 0, 1, 1], [], []>} : vector<32x4xf32>, vector<4x8xf32>, vector<32x8xf32> -> vector<32x8xf32>
    %c3_105 = arith.constant 3 : index
    %c0_106 = arith.constant 0 : index
    %c0_107 = arith.constant 0 : index
    %136 = vector.load %arg10[%c3_105, %c0_106, %c0_107] : memref<4x1x8xf32, #tpu.memory_space<vmem>>, vector<1x1x8xf32>
    %137 = vector.shape_cast %136 : vector<1x1x8xf32> to vector<1x8xf32>
    %138 = vector.broadcast %137 : vector<1x8xf32> to vector<32x8xf32>
    %139 = arith.addf %135, %138 : vector<32x8xf32>
    %c3_108 = arith.constant 3 : index
    %c0_109 = arith.constant 0 : index
    %c0_110 = arith.constant 0 : index
    %140 = vector.load %arg11[%c3_108, %c0_109, %c0_110] : memref<4x4x8xf32, #tpu.memory_space<vmem>>, vector<1x4x8xf32>
    %141 = vector.shape_cast %140 : vector<1x4x8xf32> to vector<4x8xf32>
    %cst_111 = arith.constant dense<0.000000e+00> : vector<32x8xf32>
    %142 = tpu.matmul %1, %141, %cst_111 {dimension_numbers = #tpu.dot_dimension_numbers<[1], [0], [0], [1], [0, 0, 1, 1], [], []>} : vector<32x4xf32>, vector<4x8xf32>, vector<32x8xf32> -> vector<32x8xf32>
    %c3_112 = arith.constant 3 : index
    %c0_113 = arith.constant 0 : index
    %c0_114 = arith.constant 0 : index
    %143 = vector.load %arg12[%c3_112, %c0_113, %c0_114] : memref<4x1x8xf32, #tpu.memory_space<vmem>>, vector<1x1x8xf32>
    %144 = vector.shape_cast %143 : vector<1x1x8xf32> to vector<1x8xf32>
    %145 = vector.broadcast %144 : vector<1x8xf32> to vector<32x8xf32>
    %146 = arith.addf %142, %145 : vector<32x8xf32>
    %cst_115 = arith.constant dense<0.000000e+00> : vector<32x32xf32>
    %147 = tpu.matmul %132, %139, %cst_115 {dimension_numbers = #tpu.dot_dimension_numbers<[1], [1], [0], [0], [0, 0, 1, 0], [], []>} : vector<32x8xf32>, vector<32x8xf32>, vector<32x32xf32> -> vector<32x32xf32>
    %cst_116 = arith.constant 0.353553385 : f32
    %148 = vector.broadcast %cst_116 : f32 to vector<32x32xf32>
    %149 = arith.mulf %147, %148 : vector<32x32xf32>
    %150 = arith.addf %149, %4 : vector<32x32xf32>
    %cst_117 = arith.constant dense<0xFF800000> : vector<32xf32>
    %151 = vector.multi_reduction <maximumf>, %150, %cst_117 [1] : vector<32x32xf32> to vector<32xf32>
    %152 = vector.shape_cast %151 : vector<32xf32> to vector<32x1xf32>
    %153 = vector.broadcast %152 : vector<32x1xf32> to vector<32x32xf32>
    %154 = arith.subf %150, %153 : vector<32x32xf32>
    %155 = math.exp %154 : vector<32x32xf32>
    %cst_118 = arith.constant dense<0.000000e+00> : vector<32xf32>
    %156 = vector.multi_reduction <add>, %155, %cst_118 [1] : vector<32x32xf32> to vector<32xf32>
    %157 = vector.shape_cast %156 : vector<32xf32> to vector<32x1xf32>
    %158 = tpu.reciprocal %157 {approx = true} : vector<32x1xf32> -> vector<32x1xf32>
    %159 = vector.broadcast %158 : vector<32x1xf32> to vector<32x32xf32>
    %160 = arith.mulf %155, %159 : vector<32x32xf32>
    %cst_119 = arith.constant dense<0.000000e+00> : vector<32x8xf32>
    %161 = tpu.matmul %160, %146, %cst_119 {dimension_numbers = #tpu.dot_dimension_numbers<[1], [0], [0], [1], [0, 0, 1, 1], [], []>} : vector<32x32xf32>, vector<32x8xf32>, vector<32x8xf32> -> vector<32x8xf32>
    %c3_120 = arith.constant 3 : index
    %c0_121 = arith.constant 0 : index
    %c0_122 = arith.constant 0 : index
    %162 = vector.load %arg13[%c3_120, %c0_121, %c0_122] : memref<4x8x4xf32, #tpu.memory_space<vmem>>, vector<1x8x4xf32>
    %163 = vector.shape_cast %162 : vector<1x8x4xf32> to vector<8x4xf32>
    %cst_123 = arith.constant dense<0.000000e+00> : vector<32x4xf32>
    %164 = tpu.matmul %161, %163, %cst_123 {dimension_numbers = #tpu.dot_dimension_numbers<[1], [0], [0], [1], [0, 0, 1, 1], [], []>} : vector<32x8xf32>, vector<8x4xf32>, vector<32x4xf32> -> vector<32x4xf32>
    %165 = arith.addf %125, %164 : vector<32x4xf32>
    %166 = arith.addf %1, %165 : vector<32x4xf32>
    %c0_124 = arith.constant 0 : index
    %c0_125 = arith.constant 0 : index
    %167 = vector.load %arg14[%c0_124, %c0_125] : memref<1x4xf32, #tpu.memory_space<vmem>>, vector<1x4xf32>
    %168 = vector.broadcast %167 : vector<1x4xf32> to vector<32x4xf32>
    %169 = arith.addf %166, %168 : vector<32x4xf32>
    %cst_126 = arith.constant dense<0.000000e+00> : vector<32xf32>
    %170 = vector.multi_reduction <add>, %169, %cst_126 [1] : vector<32x4xf32> to vector<32xf32>
    %171 = vector.shape_cast %170 : vector<32xf32> to vector<32x1xf32>
    %cst_127 = arith.constant 4.000000e+00 : f32
    %172 = vector.broadcast %cst_127 : f32 to vector<32x1xf32>
    %173 = arith.divf %171, %172 : vector<32x1xf32>
    %174 = vector.broadcast %173 : vector<32x1xf32> to vector<32x4xf32>
    %175 = arith.subf %169, %174 : vector<32x4xf32>
    %176 = arith.mulf %175, %175 : vector<32x4xf32>
    %cst_128 = arith.constant dense<0.000000e+00> : vector<32xf32>
    %177 = vector.multi_reduction <add>, %176, %cst_128 [1] : vector<32x4xf32> to vector<32xf32>
    %178 = vector.shape_cast %177 : vector<32xf32> to vector<32x1xf32>
    %cst_129 = arith.constant 4.000000e+00 : f32
    %179 = vector.broadcast %cst_129 : f32 to vector<32x1xf32>
    %180 = arith.divf %178, %179 : vector<32x1xf32>
    %cst_130 = arith.constant 9.99999974E-6 : f32
    %181 = vector.broadcast %cst_130 : f32 to vector<32x1xf32>
    %182 = arith.addf %180, %181 : vector<32x1xf32>
    %183 = math.rsqrt %182 : vector<32x1xf32>
    %184 = vector.broadcast %183 : vector<32x1xf32> to vector<32x4xf32>
    %185 = arith.mulf %175, %184 : vector<32x4xf32>
    %c0_131 = arith.constant 0 : index
    %c0_132 = arith.constant 0 : index
    %186 = vector.load %arg15[%c0_131, %c0_132] : memref<1x4xf32, #tpu.memory_space<vmem>>, vector<1x4xf32>
    %187 = vector.broadcast %186 : vector<1x4xf32> to vector<32x4xf32>
    %188 = arith.mulf %185, %187 : vector<32x4xf32>
    %c0_133 = arith.constant 0 : index
    %c0_134 = arith.constant 0 : index
    %189 = vector.load %arg16[%c0_133, %c0_134] : memref<1x4xf32, #tpu.memory_space<vmem>>, vector<1x4xf32>
    %190 = vector.broadcast %189 : vector<1x4xf32> to vector<32x4xf32>
    %191 = arith.addf %188, %190 : vector<32x4xf32>
    %c0_135 = arith.constant 0 : index
    %c0_136 = arith.constant 0 : index
    %192 = vector.load %arg4[%c0_135, %c0_136] : memref<4x32xf32, #tpu.memory_space<vmem>>, vector<4x32xf32>
    %cst_137 = arith.constant dense<0.000000e+00> : vector<32x32xf32>
    %193 = tpu.matmul %191, %192, %cst_137 {dimension_numbers = #tpu.dot_dimension_numbers<[1], [0], [0], [1], [0, 0, 1, 1], [], []>} : vector<32x4xf32>, vector<4x32xf32>, vector<32x32xf32> -> vector<32x32xf32>
    %c0_138 = arith.constant 0 : index
    %c0_139 = arith.constant 0 : index
    %194 = vector.load %arg5[%c0_138, %c0_139] : memref<32x32xf32, #tpu.memory_space<vmem>>, vector<32x32xf32>
    %195 = arith.mulf %193, %194 : vector<32x32xf32>
    %c0_140 = arith.constant 0 : index
    %c0_141 = arith.constant 0 : index
    %196 = vector.load %arg6[%c0_140, %c0_141] : memref<4x32xf32, #tpu.memory_space<vmem>>, vector<4x32xf32>
    %c0_142 = arith.constant 0 : index
    %c0_143 = arith.constant 0 : index
    %197 = vector.load %arg17[%c0_142, %c0_143] : memref<32x32xf32, #tpu.memory_space<vmem>>, vector<32x32xf32>
    %cst_144 = arith.constant dense<0.000000e+00> : vector<32x32xf32>
    %198 = tpu.matmul %195, %197, %cst_144 {dimension_numbers = #tpu.dot_dimension_numbers<[1], [0], [0], [1], [0, 0, 1, 1], [], []>} : vector<32x32xf32>, vector<32x32xf32>, vector<32x32xf32> -> vector<32x32xf32>
    %cst_145 = arith.constant dense<0.000000e+00> : vector<4x32xf32>
    %199 = tpu.matmul %196, %198, %cst_145 {dimension_numbers = #tpu.dot_dimension_numbers<[1], [0], [0], [1], [0, 0, 1, 1], [], []>} : vector<4x32xf32>, vector<32x32xf32>, vector<4x32xf32> -> vector<4x32xf32>
    %c0_146 = arith.constant 0 : index
    %c0_147 = arith.constant 0 : index
    %200 = vector.load %arg18[%c0_146, %c0_147] : memref<1x32xf32, #tpu.memory_space<vmem>>, vector<1x32xf32>
    %201 = vector.broadcast %200 : vector<1x32xf32> to vector<4x32xf32>
    %202 = arith.addf %199, %201 : vector<4x32xf32>
    %c0_148 = arith.constant 0 : index
    %c0_149 = arith.constant 0 : index
    %c0_150 = arith.constant 0 : index
    %203 = vector.load %arg19[%c0_148, %c0_149, %c0_150] : memref<3x32x32xf32, #tpu.memory_space<vmem>>, vector<1x32x32xf32>
    %204 = vector.shape_cast %203 : vector<1x32x32xf32> to vector<32x32xf32>
    %cst_151 = arith.constant dense<0.000000e+00> : vector<4x32xf32>
    %205 = tpu.matmul %202, %204, %cst_151 {dimension_numbers = #tpu.dot_dimension_numbers<[1], [0], [0], [1], [0, 0, 1, 1], [], []>} : vector<4x32xf32>, vector<32x32xf32>, vector<4x32xf32> -> vector<4x32xf32>
    %c0_152 = arith.constant 0 : index
    %c0_153 = arith.constant 0 : index
    %c0_154 = arith.constant 0 : index
    %206 = vector.load %arg20[%c0_152, %c0_153, %c0_154] : memref<3x1x32xf32, #tpu.memory_space<vmem>>, vector<1x1x32xf32>
    %207 = vector.shape_cast %206 : vector<1x1x32xf32> to vector<1x32xf32>
    %208 = vector.broadcast %207 : vector<1x32xf32> to vector<4x32xf32>
    %209 = arith.addf %205, %208 : vector<4x32xf32>
    %c1_155 = arith.constant 1 : index
    %c0_156 = arith.constant 0 : index
    %c0_157 = arith.constant 0 : index
    %210 = vector.load %arg19[%c1_155, %c0_156, %c0_157] : memref<3x32x32xf32, #tpu.memory_space<vmem>>, vector<1x32x32xf32>
    %211 = vector.shape_cast %210 : vector<1x32x32xf32> to vector<32x32xf32>
    %cst_158 = arith.constant dense<0.000000e+00> : vector<4x32xf32>
    %212 = tpu.matmul %202, %211, %cst_158 {dimension_numbers = #tpu.dot_dimension_numbers<[1], [0], [0], [1], [0, 0, 1, 1], [], []>} : vector<4x32xf32>, vector<32x32xf32>, vector<4x32xf32> -> vector<4x32xf32>
    %c1_159 = arith.constant 1 : index
    %c0_160 = arith.constant 0 : index
    %c0_161 = arith.constant 0 : index
    %213 = vector.load %arg20[%c1_159, %c0_160, %c0_161] : memref<3x1x32xf32, #tpu.memory_space<vmem>>, vector<1x1x32xf32>
    %214 = vector.shape_cast %213 : vector<1x1x32xf32> to vector<1x32xf32>
    %215 = vector.broadcast %214 : vector<1x32xf32> to vector<4x32xf32>
    %216 = arith.addf %212, %215 : vector<4x32xf32>
    %c2_162 = arith.constant 2 : index
    %c0_163 = arith.constant 0 : index
    %c0_164 = arith.constant 0 : index
    %217 = vector.load %arg19[%c2_162, %c0_163, %c0_164] : memref<3x32x32xf32, #tpu.memory_space<vmem>>, vector<1x32x32xf32>
    %218 = vector.shape_cast %217 : vector<1x32x32xf32> to vector<32x32xf32>
    %cst_165 = arith.constant dense<0.000000e+00> : vector<4x32xf32>
    %219 = tpu.matmul %202, %218, %cst_165 {dimension_numbers = #tpu.dot_dimension_numbers<[1], [0], [0], [1], [0, 0, 1, 1], [], []>} : vector<4x32xf32>, vector<32x32xf32>, vector<4x32xf32> -> vector<4x32xf32>
    %c2_166 = arith.constant 2 : index
    %c0_167 = arith.constant 0 : index
    %c0_168 = arith.constant 0 : index
    %220 = vector.load %arg20[%c2_166, %c0_167, %c0_168] : memref<3x1x32xf32, #tpu.memory_space<vmem>>, vector<1x1x32xf32>
    %221 = vector.shape_cast %220 : vector<1x1x32xf32> to vector<1x32xf32>
    %222 = vector.broadcast %221 : vector<1x32xf32> to vector<4x32xf32>
    %223 = arith.addf %219, %222 : vector<4x32xf32>
    %c0_169 = arith.constant 0 : index
    %c0_170 = arith.constant 0 : index
    %c0_171 = arith.constant 0 : index
    %224 = vector.load %arg21[%c0_169, %c0_170, %c0_171] : memref<3x32x32xf32, #tpu.memory_space<vmem>>, vector<1x32x32xf32>
    %225 = vector.shape_cast %224 : vector<1x32x32xf32> to vector<32x32xf32>
    %cst_172 = arith.constant dense<0.000000e+00> : vector<4x32xf32>
    %226 = tpu.matmul %3, %225, %cst_172 {dimension_numbers = #tpu.dot_dimension_numbers<[1], [0], [0], [1], [0, 0, 1, 1], [], []>} : vector<4x32xf32>, vector<32x32xf32>, vector<4x32xf32> -> vector<4x32xf32>
    %c0_173 = arith.constant 0 : index
    %c0_174 = arith.constant 0 : index
    %c0_175 = arith.constant 0 : index
    %227 = vector.load %arg22[%c0_173, %c0_174, %c0_175] : memref<3x1x32xf32, #tpu.memory_space<vmem>>, vector<1x1x32xf32>
    %228 = vector.shape_cast %227 : vector<1x1x32xf32> to vector<1x32xf32>
    %229 = vector.broadcast %228 : vector<1x32xf32> to vector<4x32xf32>
    %230 = arith.addf %226, %229 : vector<4x32xf32>
    %c1_176 = arith.constant 1 : index
    %c0_177 = arith.constant 0 : index
    %c0_178 = arith.constant 0 : index
    %231 = vector.load %arg21[%c1_176, %c0_177, %c0_178] : memref<3x32x32xf32, #tpu.memory_space<vmem>>, vector<1x32x32xf32>
    %232 = vector.shape_cast %231 : vector<1x32x32xf32> to vector<32x32xf32>
    %cst_179 = arith.constant dense<0.000000e+00> : vector<4x32xf32>
    %233 = tpu.matmul %3, %232, %cst_179 {dimension_numbers = #tpu.dot_dimension_numbers<[1], [0], [0], [1], [0, 0, 1, 1], [], []>} : vector<4x32xf32>, vector<32x32xf32>, vector<4x32xf32> -> vector<4x32xf32>
    %c1_180 = arith.constant 1 : index
    %c0_181 = arith.constant 0 : index
    %c0_182 = arith.constant 0 : index
    %234 = vector.load %arg22[%c1_180, %c0_181, %c0_182] : memref<3x1x32xf32, #tpu.memory_space<vmem>>, vector<1x1x32xf32>
    %235 = vector.shape_cast %234 : vector<1x1x32xf32> to vector<1x32xf32>
    %236 = vector.broadcast %235 : vector<1x32xf32> to vector<4x32xf32>
    %237 = arith.addf %233, %236 : vector<4x32xf32>
    %c2_183 = arith.constant 2 : index
    %c0_184 = arith.constant 0 : index
    %c0_185 = arith.constant 0 : index
    %238 = vector.load %arg21[%c2_183, %c0_184, %c0_185] : memref<3x32x32xf32, #tpu.memory_space<vmem>>, vector<1x32x32xf32>
    %239 = vector.shape_cast %238 : vector<1x32x32xf32> to vector<32x32xf32>
    %cst_186 = arith.constant dense<0.000000e+00> : vector<4x32xf32>
    %240 = tpu.matmul %3, %239, %cst_186 {dimension_numbers = #tpu.dot_dimension_numbers<[1], [0], [0], [1], [0, 0, 1, 1], [], []>} : vector<4x32xf32>, vector<32x32xf32>, vector<4x32xf32> -> vector<4x32xf32>
    %c2_187 = arith.constant 2 : index
    %c0_188 = arith.constant 0 : index
    %c0_189 = arith.constant 0 : index
    %241 = vector.load %arg22[%c2_187, %c0_188, %c0_189] : memref<3x1x32xf32, #tpu.memory_space<vmem>>, vector<1x1x32xf32>
    %242 = vector.shape_cast %241 : vector<1x1x32xf32> to vector<1x32xf32>
    %243 = vector.broadcast %242 : vector<1x32xf32> to vector<4x32xf32>
    %244 = arith.addf %240, %243 : vector<4x32xf32>
    %245 = arith.addf %209, %230 : vector<4x32xf32>
    %cst_190 = arith.constant 0.000000e+00 : f32
    %246 = vector.broadcast %cst_190 : f32 to vector<4x32xf32>
    %247 = arith.subf %246, %245 : vector<4x32xf32>
    %248 = math.exp %247 : vector<4x32xf32>
    %cst_191 = arith.constant 1.000000e+00 : f32
    %249 = vector.broadcast %cst_191 : f32 to vector<4x32xf32>
    %250 = arith.addf %249, %248 : vector<4x32xf32>
    %cst_192 = arith.constant 1.000000e+00 : f32
    %251 = vector.broadcast %cst_192 : f32 to vector<4x32xf32>
    %252 = arith.divf %251, %250 : vector<4x32xf32>
    %253 = arith.addf %216, %237 : vector<4x32xf32>
    %cst_193 = arith.constant 0.000000e+00 : f32
    %254 = vector.broadcast %cst_193 : f32 to vector<4x32xf32>
    %255 = arith.subf %254, %253 : vector<4x32xf32>
    %256 = math.exp %255 : vector<4x32xf32>
    %cst_194 = arith.constant 1.000000e+00 : f32
    %257 = vector.broadcast %cst_194 : f32 to vector<4x32xf32>
    %258 = arith.addf %257, %256 : vector<4x32xf32>
    %cst_195 = arith.constant 1.000000e+00 : f32
    %259 = vector.broadcast %cst_195 : f32 to vector<4x32xf32>
    %260 = arith.divf %259, %258 : vector<4x32xf32>
    %261 = arith.mulf %252, %244 : vector<4x32xf32>
    %262 = arith.addf %223, %261 : vector<4x32xf32>
    %263 = math.tanh %262 : vector<4x32xf32>
    %cst_196 = arith.constant 1.000000e+00 : f32
    %264 = vector.broadcast %cst_196 : f32 to vector<4x32xf32>
    %265 = arith.subf %264, %260 : vector<4x32xf32>
    %266 = arith.mulf %265, %263 : vector<4x32xf32>
    %267 = arith.mulf %260, %3 : vector<4x32xf32>
    %268 = arith.addf %266, %267 : vector<4x32xf32>
    %c0_197 = arith.constant 0 : index
    %c0_198 = arith.constant 0 : index
    %269 = vector.load %arg23[%c0_197, %c0_198] : memref<32x32xf32, #tpu.memory_space<vmem>>, vector<32x32xf32>
    %cst_199 = arith.constant dense<0.000000e+00> : vector<4x32xf32>
    %270 = tpu.matmul %268, %269, %cst_199 {dimension_numbers = #tpu.dot_dimension_numbers<[1], [0], [0], [1], [0, 0, 1, 1], [], []>} : vector<4x32xf32>, vector<32x32xf32>, vector<4x32xf32> -> vector<4x32xf32>
    %c0_200 = arith.constant 0 : index
    %c0_201 = arith.constant 0 : index
    %271 = vector.load %arg24[%c0_200, %c0_201] : memref<1x32xf32, #tpu.memory_space<vmem>>, vector<1x32xf32>
    %272 = vector.broadcast %271 : vector<1x32xf32> to vector<4x32xf32>
    %273 = arith.addf %270, %272 : vector<4x32xf32>
    %cst_202 = arith.constant 0.000000e+00 : f32
    %274 = vector.broadcast %cst_202 : f32 to vector<4x32xf32>
    %275 = arith.maximumf %273, %274 : vector<4x32xf32>
    %c0_203 = arith.constant 0 : index
    %c0_204 = arith.constant 0 : index
    %276 = vector.load %arg25[%c0_203, %c0_204] : memref<32x128xf32, #tpu.memory_space<vmem>>, vector<32x128xf32>
    %cst_205 = arith.constant dense<0.000000e+00> : vector<4x128xf32>
    %277 = tpu.matmul %275, %276, %cst_205 {dimension_numbers = #tpu.dot_dimension_numbers<[1], [0], [0], [1], [0, 0, 1, 1], [], []>} : vector<4x32xf32>, vector<32x128xf32>, vector<4x128xf32> -> vector<4x128xf32>
    %c0_206 = arith.constant 0 : index
    %c0_207 = arith.constant 0 : index
    %278 = vector.load %arg26[%c0_206, %c0_207] : memref<1x128xf32, #tpu.memory_space<vmem>>, vector<1x128xf32>
    %279 = vector.broadcast %278 : vector<1x128xf32> to vector<4x128xf32>
    %280 = arith.addf %277, %279 : vector<4x128xf32>
    %c0_208 = arith.constant 0 : index
    %c0_209 = arith.constant 0 : index
    %281 = vector.load %arg27[%c0_208, %c0_209] : memref<4x128xf32, #tpu.memory_space<vmem>>, vector<4x128xf32>
    %282 = arith.mulf %280, %281 : vector<4x128xf32>
    %c0_210 = arith.constant 0 : index
    %c0_211 = arith.constant 0 : index
    %283 = vector.load %arg28[%c0_210, %c0_211] : memref<128x32xf32, #tpu.memory_space<vmem>>, vector<128x32xf32>
    %cst_212 = arith.constant dense<0.000000e+00> : vector<4x32xf32>
    %284 = tpu.matmul %282, %283, %cst_212 {dimension_numbers = #tpu.dot_dimension_numbers<[1], [0], [0], [1], [0, 0, 1, 1], [], []>} : vector<4x128xf32>, vector<128x32xf32>, vector<4x32xf32> -> vector<4x32xf32>
    %cst_213 = arith.constant 2.500000e-01 : f32
    %285 = vector.broadcast %cst_213 : f32 to vector<4x4xf32>
    %cst_214 = arith.constant dense<0.000000e+00> : vector<4x32xf32>
    %286 = tpu.matmul %285, %284, %cst_214 {dimension_numbers = #tpu.dot_dimension_numbers<[1], [0], [0], [1], [0, 0, 1, 1], [], []>} : vector<4x4xf32>, vector<4x32xf32>, vector<4x32xf32> -> vector<4x32xf32>
    %c0_215 = arith.constant 0 : index
    %c0_216 = arith.constant 0 : index
    %287 = vector.load %arg29[%c0_215, %c0_216] : memref<32x32xf32, #tpu.memory_space<vmem>>, vector<32x32xf32>
    %cst_217 = arith.constant dense<0.000000e+00> : vector<4x32xf32>
    %288 = tpu.matmul %286, %287, %cst_217 {dimension_numbers = #tpu.dot_dimension_numbers<[1], [0], [0], [1], [0, 0, 1, 1], [], []>} : vector<4x32xf32>, vector<32x32xf32>, vector<4x32xf32> -> vector<4x32xf32>
    %c0_218 = arith.constant 0 : index
    %c0_219 = arith.constant 0 : index
    %289 = vector.load %arg30[%c0_218, %c0_219] : memref<1x32xf32, #tpu.memory_space<vmem>>, vector<1x32xf32>
    %290 = vector.broadcast %289 : vector<1x32xf32> to vector<4x32xf32>
    %291 = arith.addf %288, %290 : vector<4x32xf32>
    %c0_220 = arith.constant 0 : index
    %c0_221 = arith.constant 0 : index
    %292 = vector.load %arg31[%c0_220, %c0_221] : memref<32x32xf32, #tpu.memory_space<vmem>>, vector<32x32xf32>
    %cst_222 = arith.constant dense<0.000000e+00> : vector<4x32xf32>
    %293 = tpu.matmul %291, %292, %cst_222 {dimension_numbers = #tpu.dot_dimension_numbers<[1], [0], [0], [1], [0, 0, 1, 1], [], []>} : vector<4x32xf32>, vector<32x32xf32>, vector<4x32xf32> -> vector<4x32xf32>
    %c0_223 = arith.constant 0 : index
    %c0_224 = arith.constant 0 : index
    %294 = vector.load %arg32[%c0_223, %c0_224] : memref<1x32xf32, #tpu.memory_space<vmem>>, vector<1x32xf32>
    %295 = vector.broadcast %294 : vector<1x32xf32> to vector<4x32xf32>
    %296 = arith.addf %293, %295 : vector<4x32xf32>
    %297 = arith.addf %268, %296 : vector<4x32xf32>
    %cst_225 = arith.constant dense<0.000000e+00> : vector<4xf32>
    %298 = vector.multi_reduction <add>, %297, %cst_225 [1] : vector<4x32xf32> to vector<4xf32>
    %299 = vector.shape_cast %298 : vector<4xf32> to vector<4x1xf32>
    %cst_226 = arith.constant 3.200000e+01 : f32
    %300 = vector.broadcast %cst_226 : f32 to vector<4x1xf32>
    %301 = arith.divf %299, %300 : vector<4x1xf32>
    %302 = vector.broadcast %301 : vector<4x1xf32> to vector<4x32xf32>
    %303 = arith.subf %297, %302 : vector<4x32xf32>
    %304 = arith.mulf %303, %303 : vector<4x32xf32>
    %cst_227 = arith.constant dense<0.000000e+00> : vector<4xf32>
    %305 = vector.multi_reduction <add>, %304, %cst_227 [1] : vector<4x32xf32> to vector<4xf32>
    %306 = vector.shape_cast %305 : vector<4xf32> to vector<4x1xf32>
    %cst_228 = arith.constant 3.200000e+01 : f32
    %307 = vector.broadcast %cst_228 : f32 to vector<4x1xf32>
    %308 = arith.divf %306, %307 : vector<4x1xf32>
    %cst_229 = arith.constant 9.99999974E-6 : f32
    %309 = vector.broadcast %cst_229 : f32 to vector<4x1xf32>
    %310 = arith.addf %308, %309 : vector<4x1xf32>
    %311 = math.rsqrt %310 : vector<4x1xf32>
    %312 = vector.broadcast %311 : vector<4x1xf32> to vector<4x32xf32>
    %313 = arith.mulf %303, %312 : vector<4x32xf32>
    %c0_230 = arith.constant 0 : index
    %c0_231 = arith.constant 0 : index
    %314 = vector.load %arg33[%c0_230, %c0_231] : memref<1x32xf32, #tpu.memory_space<vmem>>, vector<1x32xf32>
    %315 = vector.broadcast %314 : vector<1x32xf32> to vector<4x32xf32>
    %316 = arith.mulf %313, %315 : vector<4x32xf32>
    %c0_232 = arith.constant 0 : index
    %c0_233 = arith.constant 0 : index
    %317 = vector.load %arg34[%c0_232, %c0_233] : memref<1x32xf32, #tpu.memory_space<vmem>>, vector<1x32xf32>
    %318 = vector.broadcast %317 : vector<1x32xf32> to vector<4x32xf32>
    %319 = arith.addf %316, %318 : vector<4x32xf32>
    %c0_234 = arith.constant 0 : index
    %c0_235 = arith.constant 0 : index
    %320 = vector.load %arg35[%c0_234, %c0_235] : memref<32x32xf32, #tpu.memory_space<vmem>>, vector<32x32xf32>
    %cst_236 = arith.constant dense<0.000000e+00> : vector<4x32xf32>
    %321 = tpu.matmul %268, %320, %cst_236 {dimension_numbers = #tpu.dot_dimension_numbers<[1], [0], [0], [1], [0, 0, 1, 1], [], []>} : vector<4x32xf32>, vector<32x32xf32>, vector<4x32xf32> -> vector<4x32xf32>
    %c0_237 = arith.constant 0 : index
    %c0_238 = arith.constant 0 : index
    %322 = vector.load %arg36[%c0_237, %c0_238] : memref<32x32xf32, #tpu.memory_space<vmem>>, vector<32x32xf32>
    %cst_239 = arith.constant dense<0.000000e+00> : vector<4x32xf32>
    %323 = tpu.matmul %319, %322, %cst_239 {dimension_numbers = #tpu.dot_dimension_numbers<[1], [0], [0], [1], [0, 0, 1, 1], [], []>} : vector<4x32xf32>, vector<32x32xf32>, vector<4x32xf32> -> vector<4x32xf32>
    %324 = arith.addf %321, %323 : vector<4x32xf32>
    %c0_240 = arith.constant 0 : index
    %c0_241 = arith.constant 0 : index
    %325 = vector.load %arg37[%c0_240, %c0_241] : memref<1x32xf32, #tpu.memory_space<vmem>>, vector<1x32xf32>
    %326 = vector.broadcast %325 : vector<1x32xf32> to vector<4x32xf32>
    %327 = arith.addf %324, %326 : vector<4x32xf32>
    %cst_242 = arith.constant 0.000000e+00 : f32
    %328 = vector.broadcast %cst_242 : f32 to vector<4x32xf32>
    %329 = arith.maximumf %327, %328 : vector<4x32xf32>
    %c0_243 = arith.constant 0 : index
    %c0_244 = arith.constant 0 : index
    %330 = vector.load %arg38[%c0_243, %c0_244] : memref<32x32xf32, #tpu.memory_space<vmem>>, vector<32x32xf32>
    %cst_245 = arith.constant dense<0.000000e+00> : vector<4x32xf32>
    %331 = tpu.matmul %329, %330, %cst_245 {dimension_numbers = #tpu.dot_dimension_numbers<[1], [0], [0], [1], [0, 0, 1, 1], [], []>} : vector<4x32xf32>, vector<32x32xf32>, vector<4x32xf32> -> vector<4x32xf32>
    %c0_246 = arith.constant 0 : index
    %c0_247 = arith.constant 0 : index
    %332 = vector.load %arg39[%c0_246, %c0_247] : memref<1x32xf32, #tpu.memory_space<vmem>>, vector<1x32xf32>
    %333 = vector.broadcast %332 : vector<1x32xf32> to vector<4x32xf32>
    %334 = arith.addf %331, %333 : vector<4x32xf32>
    %c0_248 = arith.constant 0 : index
    %c0_249 = arith.constant 0 : index
    %335 = vector.load %arg40[%c0_248, %c0_249] : memref<4x32xf32, #tpu.memory_space<vmem>>, vector<4x32xf32>
    %336 = arith.mulf %334, %335 : vector<4x32xf32>
    %c0_250 = arith.constant 0 : index
    %c0_251 = arith.constant 0 : index
    %337 = vector.load %arg41[%c0_250, %c0_251] : memref<32x8xf32, #tpu.memory_space<vmem>>, vector<32x8xf32>
    %cst_252 = arith.constant dense<0.000000e+00> : vector<4x8xf32>
    %338 = tpu.matmul %336, %337, %cst_252 {dimension_numbers = #tpu.dot_dimension_numbers<[1], [0], [0], [1], [0, 0, 1, 1], [], []>} : vector<4x32xf32>, vector<32x8xf32>, vector<4x8xf32> -> vector<4x8xf32>
    %cst_253 = arith.constant 0.000000e+00 : f32
    %339 = vector.broadcast %cst_253 : f32 to vector<4x56xf32>
    %340 = tpu.concatenate %268, %286, %338, %339 in 1 : vector<4x32xf32>, vector<4x32xf32>, vector<4x8xf32>, vector<4x56xf32> -> vector<4x128xf32>
    %c0_254 = arith.constant 0 : index
    %c0_255 = arith.constant 0 : index
    %c0_256 = arith.constant 0 : index
    %341 = vector.load %arg42[%c0_254, %c0_255, %c0_256] : memref<1x4x128xf32, #tpu.memory_space<vmem>>, vector<1x4x128xf32>
    %342 = vector.shape_cast %341 : vector<1x4x128xf32> to vector<4x128xf32>
    %343 = vector.shape_cast %340 : vector<4x128xf32> to vector<1x4x128xf32>
    tpu.vector_store %arg42[%c0_254, %c0_255, %c0_256], %343 {strides = array<i32>} : memref<1x4x128xf32, #tpu.memory_space<vmem>>, vector<1x4x128xf32>,
    return
  }
  func.func @transform_0(%arg0: i32) -> (i32, i32, i32) {
    %c0_i32 = arith.constant 0 : i32
    %c0_i32_0 = arith.constant 0 : i32
    %c0_i32_1 = arith.constant 0 : i32
    return %arg0, %c0_i32, %c0_i32_0 : i32, i32, i32
  }
  func.func @transform_1(%arg0: i32) -> (i32, i32, i32) {
    %c0_i32 = arith.constant 0 : i32
    %c0_i32_0 = arith.constant 0 : i32
    %c0_i32_1 = arith.constant 0 : i32
    return %arg0, %c0_i32, %c0_i32_0 : i32, i32, i32
  }
  func.func @transform_2(%arg0: i32) -> (i32, i32) {
    %c0_i32 = arith.constant 0 : i32
    %c0_i32_0 = arith.constant 0 : i32
    %c0_i32_1 = arith.constant 0 : i32
    return %c0_i32, %c0_i32_0 : i32, i32
  }
  func.func @transform_3(%arg0: i32) -> (i32, i32) {
    %c0_i32 = arith.constant 0 : i32
    %c0_i32_0 = arith.constant 0 : i32
    %c0_i32_1 = arith.constant 0 : i32
    return %c0_i32, %c0_i32_0 : i32, i32
  }
  func.func @transform_4(%arg0: i32) -> (i32, i32) {
    %c0_i32 = arith.constant 0 : i32
    %c0_i32_0 = arith.constant 0 : i32
    %c0_i32_1 = arith.constant 0 : i32
    return %c0_i32, %c0_i32_0 : i32, i32
  }
  func.func @transform_5(%arg0: i32) -> (i32, i32) {
    %c0_i32 = arith.constant 0 : i32
    %c0_i32_0 = arith.constant 0 : i32
    %c0_i32_1 = arith.constant 0 : i32
    return %c0_i32, %c0_i32_0 : i32, i32
  }
  func.func @transform_6(%arg0: i32) -> (i32, i32, i32) {
    %c0_i32 = arith.constant 0 : i32
    %c0_i32_0 = arith.constant 0 : i32
    %c0_i32_1 = arith.constant 0 : i32
    %c0_i32_2 = arith.constant 0 : i32
    return %c0_i32, %c0_i32_0, %c0_i32_1 : i32, i32, i32
  }
  func.func @transform_7(%arg0: i32) -> (i32, i32, i32) {
    %c0_i32 = arith.constant 0 : i32
    %c0_i32_0 = arith.constant 0 : i32
    %c0_i32_1 = arith.constant 0 : i32
    %c0_i32_2 = arith.constant 0 : i32
    return %c0_i32, %c0_i32_0, %c0_i32_1 : i32, i32, i32
  }
  func.func @transform_8(%arg0: i32) -> (i32, i32, i32) {
    %c0_i32 = arith.constant 0 : i32
    %c0_i32_0 = arith.constant 0 : i32
    %c0_i32_1 = arith.constant 0 : i32
    %c0_i32_2 = arith.constant 0 : i32
    return %c0_i32, %c0_i32_0, %c0_i32_1 : i32, i32, i32
  }
  func.func @transform_9(%arg0: i32) -> (i32, i32, i32) {
    %c0_i32 = arith.constant 0 : i32
    %c0_i32_0 = arith.constant 0 : i32
    %c0_i32_1 = arith.constant 0 : i32
    %c0_i32_2 = arith.constant 0 : i32
    return %c0_i32, %c0_i32_0, %c0_i32_1 : i32, i32, i32
  }
  func.func @transform_10(%arg0: i32) -> (i32, i32, i32) {
    %c0_i32 = arith.constant 0 : i32
    %c0_i32_0 = arith.constant 0 : i32
    %c0_i32_1 = arith.constant 0 : i32
    %c0_i32_2 = arith.constant 0 : i32
    return %c0_i32, %c0_i32_0, %c0_i32_1 : i32, i32, i32
  }
  func.func @transform_11(%arg0: i32) -> (i32, i32, i32) {
    %c0_i32 = arith.constant 0 : i32
    %c0_i32_0 = arith.constant 0 : i32
    %c0_i32_1 = arith.constant 0 : i32
    %c0_i32_2 = arith.constant 0 : i32
    return %c0_i32, %c0_i32_0, %c0_i32_1 : i32, i32, i32
  }
  func.func @transform_12(%arg0: i32) -> (i32, i32, i32) {
    %c0_i32 = arith.constant 0 : i32
    %c0_i32_0 = arith.constant 0 : i32
    %c0_i32_1 = arith.constant 0 : i32
    %c0_i32_2 = arith.constant 0 : i32
    return %c0_i32, %c0_i32_0, %c0_i32_1 : i32, i32, i32
  }
  func.func @transform_13(%arg0: i32) -> (i32, i32) {
    %c0_i32 = arith.constant 0 : i32
    %c0_i32_0 = arith.constant 0 : i32
    %c0_i32_1 = arith.constant 0 : i32
    return %c0_i32, %c0_i32_0 : i32, i32
  }
  func.func @transform_14(%arg0: i32) -> (i32, i32) {
    %c0_i32 = arith.constant 0 : i32
    %c0_i32_0 = arith.constant 0 : i32
    %c0_i32_1 = arith.constant 0 : i32
    return %c0_i32, %c0_i32_0 : i32, i32
  }
  func.func @transform_15(%arg0: i32) -> (i32, i32) {
    %c0_i32 = arith.constant 0 : i32
    %c0_i32_0 = arith.constant 0 : i32
    %c0_i32_1 = arith.constant 0 : i32
    return %c0_i32, %c0_i32_0 : i32, i32
  }
  func.func @transform_16(%arg0: i32) -> (i32, i32) {
    %c0_i32 = arith.constant 0 : i32
    %c0_i32_0 = arith.constant 0 : i32
    %c0_i32_1 = arith.constant 0 : i32
    return %c0_i32, %c0_i32_0 : i32, i32
  }
  func.func @transform_17(%arg0: i32) -> (i32, i32) {
    %c0_i32 = arith.constant 0 : i32
    %c0_i32_0 = arith.constant 0 : i32
    %c0_i32_1 = arith.constant 0 : i32
    return %c0_i32, %c0_i32_0 : i32, i32
  }
  func.func @transform_18(%arg0: i32) -> (i32, i32, i32) {
    %c0_i32 = arith.constant 0 : i32
    %c0_i32_0 = arith.constant 0 : i32
    %c0_i32_1 = arith.constant 0 : i32
    %c0_i32_2 = arith.constant 0 : i32
    return %c0_i32, %c0_i32_0, %c0_i32_1 : i32, i32, i32
  }
  func.func @transform_19(%arg0: i32) -> (i32, i32, i32) {
    %c0_i32 = arith.constant 0 : i32
    %c0_i32_0 = arith.constant 0 : i32
    %c0_i32_1 = arith.constant 0 : i32
    %c0_i32_2 = arith.constant 0 : i32
    return %c0_i32, %c0_i32_0, %c0_i32_1 : i32, i32, i32
  }
  func.func @transform_20(%arg0: i32) -> (i32, i32, i32) {
    %c0_i32 = arith.constant 0 : i32
    %c0_i32_0 = arith.constant 0 : i32
    %c0_i32_1 = arith.constant 0 : i32
    %c0_i32_2 = arith.constant 0 : i32
    return %c0_i32, %c0_i32_0, %c0_i32_1 : i32, i32, i32
  }
  func.func @transform_21(%arg0: i32) -> (i32, i32, i32) {
    %c0_i32 = arith.constant 0 : i32
    %c0_i32_0 = arith.constant 0 : i32
    %c0_i32_1 = arith.constant 0 : i32
    %c0_i32_2 = arith.constant 0 : i32
    return %c0_i32, %c0_i32_0, %c0_i32_1 : i32, i32, i32
  }
  func.func @transform_22(%arg0: i32) -> (i32, i32) {
    %c0_i32 = arith.constant 0 : i32
    %c0_i32_0 = arith.constant 0 : i32
    %c0_i32_1 = arith.constant 0 : i32
    return %c0_i32, %c0_i32_0 : i32, i32
  }
  func.func @transform_23(%arg0: i32) -> (i32, i32) {
    %c0_i32 = arith.constant 0 : i32
    %c0_i32_0 = arith.constant 0 : i32
    %c0_i32_1 = arith.constant 0 : i32
    return %c0_i32, %c0_i32_0 : i32, i32
  }
  func.func @transform_24(%arg0: i32) -> (i32, i32) {
    %c0_i32 = arith.constant 0 : i32
    %c0_i32_0 = arith.constant 0 : i32
    %c0_i32_1 = arith.constant 0 : i32
    return %c0_i32, %c0_i32_0 : i32, i32
  }
  func.func @transform_25(%arg0: i32) -> (i32, i32) {
    %c0_i32 = arith.constant 0 : i32
    %c0_i32_0 = arith.constant 0 : i32
    %c0_i32_1 = arith.constant 0 : i32
    return %c0_i32, %c0_i32_0 : i32, i32
  }
  func.func @transform_26(%arg0: i32) -> (i32, i32) {
    %c0_i32 = arith.constant 0 : i32
    %c0_i32_0 = arith.constant 0 : i32
    %c0_i32_1 = arith.constant 0 : i32
    return %c0_i32, %c0_i32_0 : i32, i32
  }
  func.func @transform_27(%arg0: i32) -> (i32, i32) {
    %c0_i32 = arith.constant 0 : i32
    %c0_i32_0 = arith.constant 0 : i32
    %c0_i32_1 = arith.constant 0 : i32
    return %c0_i32, %c0_i32_0 : i32, i32
  }
  func.func @transform_28(%arg0: i32) -> (i32, i32) {
    %c0_i32 = arith.constant 0 : i32
    %c0_i32_0 = arith.constant 0 : i32
    %c0_i32_1 = arith.constant 0 : i32
    return %c0_i32, %c0_i32_0 : i32, i32
  }
  func.func @transform_29(%arg0: i32) -> (i32, i32) {
    %c0_i32 = arith.constant 0 : i32
    %c0_i32_0 = arith.constant 0 : i32
    %c0_i32_1 = arith.constant 0 : i32
    return %c0_i32, %c0_i32_0 : i32, i32
  }
  func.func @transform_30(%arg0: i32) -> (i32, i32) {
    %c0_i32 = arith.constant 0 : i32
    %c0_i32_0 = arith.constant 0 : i32
    %c0_i32_1 = arith.constant 0 : i32
    return %c0_i32, %c0_i32_0 : i32, i32
  }
  func.func @transform_31(%arg0: i32) -> (i32, i32) {
    %c0_i32 = arith.constant 0 : i32
    %c0_i32_0 = arith.constant 0 : i32
    %c0_i32_1 = arith.constant 0 : i32
    return %c0_i32, %c0_i32_0 : i32, i32
  }
  func.func @transform_32(%arg0: i32) -> (i32, i32) {
    %c0_i32 = arith.constant 0 : i32
    %c0_i32_0 = arith.constant 0 : i32
    %c0_i32_1 = arith.constant 0 : i32
    return %c0_i32, %c0_i32_0 : i32, i32
  }
  func.func @transform_33(%arg0: i32) -> (i32, i32) {
    %c0_i32 = arith.constant 0 : i32
    %c0_i32_0 = arith.constant 0 : i32
    %c0_i32_1 = arith.constant 0 : i32
    return %c0_i32, %c0_i32_0 : i32, i32
  }
  func.func @transform_34(%arg0: i32) -> (i32, i32) {
    %c0_i32 = arith.constant 0 : i32
    %c0_i32_0 = arith.constant 0 : i32
    %c0_i32_1 = arith.constant 0 : i32
    return %c0_i32, %c0_i32_0 : i32, i32
  }
  func.func @transform_35(%arg0: i32) -> (i32, i32) {
    %c0_i32 = arith.constant 0 : i32
    %c0_i32_0 = arith.constant 0 : i32
    %c0_i32_1 = arith.constant 0 : i32
    return %c0_i32, %c0_i32_0 : i32, i32
  }
  func.func @transform_36(%arg0: i32) -> (i32, i32) {
    %c0_i32 = arith.constant 0 : i32
    %c0_i32_0 = arith.constant 0 : i32
    %c0_i32_1 = arith.constant 0 : i32
    return %c0_i32, %c0_i32_0 : i32, i32
  }
  func.func @transform_37(%arg0: i32) -> (i32, i32) {
    %c0_i32 = arith.constant 0 : i32
    %c0_i32_0 = arith.constant 0 : i32
    %c0_i32_1 = arith.constant 0 : i32
    return %c0_i32, %c0_i32_0 : i32, i32
  }
  func.func @transform_38(%arg0: i32) -> (i32, i32) {
    %c0_i32 = arith.constant 0 : i32
    %c0_i32_0 = arith.constant 0 : i32
    %c0_i32_1 = arith.constant 0 : i32
    return %c0_i32, %c0_i32_0 : i32, i32
  }
  func.func @transform_39(%arg0: i32) -> (i32, i32) {
    %c0_i32 = arith.constant 0 : i32
    %c0_i32_0 = arith.constant 0 : i32
    %c0_i32_1 = arith.constant 0 : i32
    return %c0_i32, %c0_i32_0 : i32, i32
  }
  func.func @transform_40(%arg0: i32) -> (i32, i32) {
    %c0_i32 = arith.constant 0 : i32
    %c0_i32_0 = arith.constant 0 : i32
    %c0_i32_1 = arith.constant 0 : i32
    return %c0_i32, %c0_i32_0 : i32, i32
  }
  func.func @transform_41(%arg0: i32) -> (i32, i32, i32) {
    %c0_i32 = arith.constant 0 : i32
    %c0_i32_0 = arith.constant 0 : i32
    %c0_i32_1 = arith.constant 0 : i32
    return %arg0, %c0_i32, %c0_i32_0 : i32, i32, i32
  }
}

</mosaic_0001>

<bundles_post_ra>
// kernel: tile.19
= control target key start
LH: loop header
LB: loop body
LE: loop exit
PB: predicated region body
PF: predicated region fallthrough
CT: control target
= control target key end

     0   :  { %s67_s8 = smov 28   ;;  %s68_s11 = smov 20   ;;  %vm3_vm0 = vcmask 31744   ;;  %vm9_vm1 = vcmask 261344   ;;  %vm15_vm2 = vcmask 228544   ;;  %vm21_vm3 = vcmask 195744   ;;  %s111_s0 = inlined_call_operand.vmem [shape: f32[4,8,4], index: 0, kind: input, shape index: {}]   ;;  %s112_s1 = inlined_call_operand.vmem [shape: f32[4,32], index: 1, kind: output, shape index: {}]  }
   0x1   :  { %v53_v0 = vld [vmem:[%s111_s0 + $0x7] ss:$8 sm:$0xf]   ;;  %v55_v1 = vld [vmem:[%s111_s0 + $0x5] ss:$8 sm:$0xf]  }
   0x2   :  { %7 = vrot.lane.b32.xlu0 %v53_v0, %s67_s8  ;;  %19 = vrot.lane.b32.xlu1 %v55_v1, %s68_s11  ;;  %v54_v2 = vld [vmem:[%s111_s0 + $0x6] ss:$8 sm:$0xf]   ;;  %v56_v3 = vld [vmem:[%s111_s0 + $0x4] ss:$8 sm:$0xf]  }
   0x3   :  { %s69_s16 = smov 24   ;;  %v2_v4 = vld [vmem:[%s111_s0] ss:$8 sm:$0xf]   ;;  %s70_s19 = smov 16   ;;  %vm27_vm4 = vcmask 162944  }
   0x4   :  { %v57_v5 = vld [vmem:[%s111_s0 + $0x3] ss:$8 sm:$0xf]   ;;  %4 = vst.msk [vmem:[#allocation0] sm:$0xf] %vm3_vm0, %v2_v4   ;;  %s71_s24 = smov 12  }
   0x5   :  { %v58_v6 = vld [vmem:[%s111_s0 + $0x2] ss:$8 sm:$0xf]   ;;  %s72_s25 = smov 8   ;;  %vm33_vm5 = vcmask 130144   ;;  %vm39_vm6 = vcmask 97344  }
   0x6   :  { %13 = vrot.lane.b32.xlu0 %v54_v2, %s69_s16  ;;  %25 = vrot.lane.b32.xlu1 %v56_v3, %s70_s19  ;;  %v59_v7 = vld [vmem:[%s111_s0 + $0x1] ss:$8 sm:$0xf]   ;;  %s73_s0 = smov 4   ;;  %vm45_vm7 = vcmask 64544  }
   0xa   :  { %31 = vrot.lane.b32.xlu0 %v57_v5, %s71_s24  ;;  %37 = vrot.lane.b32.xlu1 %v58_v6, %s72_s25 }
   0xe   :  { %43 = vrot.lane.b32.xlu0 %v59_v7, %s73_s0 }
  0x74   :  { %v8_v8 = vpop.permute.xlu0 %7   ;;  %v20_v9 = vpop.permute.xlu1 %19  }
  0x75   :  { %10 = vst.msk [vmem:[#allocation0] sm:$0xf] %vm9_vm1, %v8_v8  }
  0x78   :  { %v14_v10 = vpop.permute.xlu0 %13   ;;  %v26_v11 = vpop.permute.xlu1 %25  }
  0x79   :  { %16 = vst.msk [vmem:[#allocation0] sm:$0xf] %vm15_vm2, %v14_v10  }
  0x7a   :  { %22 = vst.msk [vmem:[#allocation0] sm:$0xf] %vm21_vm3, %v20_v9  }
  0x7b   :  { %28 = vst.msk [vmem:[#allocation0] sm:$0xf] %vm27_vm4, %v26_v11  }
  0x7c   :  { %v32_v12 = vpop.permute.xlu0 %31   ;;  %v38_v13 = vpop.permute.xlu1 %37  }
  0x7d   :  { %34 = vst.msk [vmem:[#allocation0] sm:$0xf] %vm33_vm5, %v32_v12  }
  0x7e   :  { %40 = vst.msk [vmem:[#allocation0] sm:$0xf] %vm39_vm6, %v38_v13  }
  0x80   :  { %v44_v14 = vpop.permute.xlu0 %43  }
  0x81   :  { %46 = vst.msk [vmem:[#allocation0] sm:$0xf] %vm45_vm7, %v44_v14  }
  0x88   :  { %v50_v15 = vld [vmem:[#allocation0] sm:$0xf] }
  0x89   :  { %52 = vst [vmem:[%s112_s1] sm:$0xf] %v50_v15 }

// kernel: ls2ic_forward.1
= control target key start
LH: loop header
LB: loop body
LE: loop exit
PB: predicated region body
PF: predicated region fallthrough
CT: control target
= control target key end

     0   :  { %s7085_s6 = smov 1   ;;  %s7086_s10 = smov 2   ;;  %s7919_s0 = inlined_call_operand.smem [shape: u32[42], index: -1, kind: input, shape index: {}] }
   0x1   :  { %s7140_s5 = sld [smem:[%s7919_s0]]   ;;  %s7087_s14 = smov 3  }
   0x2   :  { %s7145_s9 = sld [smem:[%s7919_s0 + %s7085_s6]]   ;;  %s7088_s18 = smov 4  }
   0x3   :  { %s7150_s13 = sld [smem:[%s7919_s0 + %s7086_s10]]   ;;  %s7089_s22 = smov 5  }
   0x4   :  { %s7155_s17 = sld [smem:[%s7919_s0 + %s7087_s14]]   ;;  %s7090_s26 = smov 6  }
   0x5   :  { %s7160_s21 = sld [smem:[%s7919_s0 + %s7088_s18]]   ;;  %s7091_s30 = smov 7  }
   0x6   :  { %s7165_s25 = sld [smem:[%s7919_s0 + %s7089_s22]]   ;;  %s7092_s4 = smov 8  }
   0x7   :  { %7938 = sst [smem:[#allocation2_spill]] %s7140_s5  ;;  %s7093_s10 = smov 9  }
   0x8   :  { %7939 = sst [smem:[#allocation3_spill]] %s7145_s9  ;;  %s7094_s15 = smov 10  }
   0x9   :  { %s7170_s29 = sld [smem:[%s7919_s0 + %s7090_s26]]   ;;  %s7095_s20 = smov 11  }
   0xa   :  { %s7175_s3 = sld [smem:[%s7919_s0 + %s7091_s30]]   ;;  %s7096_s26 = smov 12  }
   0xb   :  { %7940 = sst [smem:[#allocation4_spill]] %s7160_s21  ;;  %s7097_s1 = smov 13  }
   0xc   :  { %7941 = sst [smem:[#allocation5_spill]] %s7165_s25  ;;  %s7098_s7 = smov 14  }
   0xd   :  { %s7180_s8 = sld [smem:[%s7919_s0 + %s7092_s4]]   ;;  %s7100_s22 = smov 16  }
   0xe   :  { %s7185_s14 = sld [smem:[%s7919_s0 + %s7093_s10]]   ;;  %s7101_s28 = smov 17  }
   0xf   :  { %s7190_s19 = sld [smem:[%s7919_s0 + %s7094_s15]]   ;;  %s7099_s15 = smov 15  }
  0x10   :  { %7942 = sst [smem:[#allocation6_spill]] %s7175_s3 }
  0x11   :  { %s7195_s24 = sld [smem:[%s7919_s0 + %s7095_s20]]  }
  0x12   :  { %s7200_s30 = sld [smem:[%s7919_s0 + %s7096_s26]]  }
  0x13   :  { %s7205_s6 = sld [smem:[%s7919_s0 + %s7097_s1]]  }
  0x14   :  { %s7210_s12 = sld [smem:[%s7919_s0 + %s7098_s7]]   ;;  %s7102_s7 = smov 18  }
  0x15   :  { %s7215_s20 = sld [smem:[%s7919_s0 + %s7099_s15]]   ;;  %s7103_s15 = smov 19  }
  0x16   :  { %s7220_s27 = sld [smem:[%s7919_s0 + %s7100_s22]]   ;;  %s7104_s22 = smov 20  }
  0x17   :  { %s7225_s4 = sld [smem:[%s7919_s0 + %s7101_s28]]   ;;  %s7105_s28 = smov 21  }
  0x18   :  { %s7230_s9 = sld [smem:[%s7919_s0 + %s7102_s7]]   ;;  %s7106_s7 = smov 22  }
  0x19   :  { %s7235_s25 = sld [smem:[%s7919_s0 + %s7103_s15]]   ;;  %s7107_s15 = smov 23  }
  0x1a   :  { %s7240_s21 = sld [smem:[%s7919_s0 + %s7104_s22]]   ;;  %s7108_s22 = smov 24  }
  0x1d   :  { %7943 = sst [smem:[#allocation7_spill]] %s7225_s4 }
  0x1e   :  { %7944 = sst [smem:[#allocation8_spill]] %s7230_s9 }
  0x1f   :  { %7945 = sst [smem:[#allocation9_spill]] %s7235_s25 }
  0x20   :  { %7946 = sst [smem:[#allocation10_spill]] %s7240_s21 }
  0x21   :  { %s7245_s4 = sld [smem:[%s7919_s0 + %s7105_s28]]   ;;  %s7109_s28 = smov 25  }
  0x22   :  { %s7250_s9 = sld [smem:[%s7919_s0 + %s7106_s7]]   ;;  %s7110_s7 = smov 26  }
  0x23   :  { %s7255_s25 = sld [smem:[%s7919_s0 + %s7107_s15]]   ;;  %s7111_s15 = smov 27  }
  0x24   :  { %s7260_s21 = sld [smem:[%s7919_s0 + %s7108_s22]]   ;;  %s7112_s22 = smov 28  }
  0x27   :  { %7947 = sst [smem:[#allocation11_spill]] %s7245_s4 }
  0x28   :  { %7948 = sst [smem:[#allocation12_spill]] %s7250_s9 }
  0x29   :  { %7949 = sst [smem:[#allocation13_spill]] %s7255_s25 }
  0x2a   :  { %7950 = sst [smem:[#allocation14_spill]] %s7260_s21 }
  0x2b   :  { %s7265_s4 = sld [smem:[%s7919_s0 + %s7109_s28]]   ;;  %s7113_s28 = smov 29  }
  0x2c   :  { %s7270_s9 = sld [smem:[%s7919_s0 + %s7110_s7]]   ;;  %s7114_s7 = smov 30  }
  0x2d   :  { %s7275_s25 = sld [smem:[%s7919_s0 + %s7111_s15]]   ;;  %s7115_s15 = smov 31  }
  0x2e   :  { %s7280_s21 = sld [smem:[%s7919_s0 + %s7112_s22]]   ;;  %s7116_s22 = smov 32  }
  0x31   :  { %7951 = sst [smem:[#allocation15_spill]] %s7265_s4 }
  0x32   :  { %7952 = sst [smem:[#allocation16_spill]] %s7270_s9 }
  0x33   :  { %7953 = sst [smem:[#allocation17_spill]] %s7275_s25 }
  0x34   :  { %7954 = sst [smem:[#allocation18_spill]] %s7280_s21 }
  0x35   :  { %s7285_s4 = sld [smem:[%s7919_s0 + %s7113_s28]]   ;;  %s7117_s28 = smov 33  }
  0x36   :  { %s7290_s9 = sld [smem:[%s7919_s0 + %s7114_s7]]   ;;  %s7118_s7 = smov 34  }
  0x37   :  { %s7295_s25 = sld [smem:[%s7919_s0 + %s7115_s15]]   ;;  %s7119_s15 = smov 35  }
  0x38   :  { %s7300_s21 = sld [smem:[%s7919_s0 + %s7116_s22]]   ;;  %s7120_s22 = smov 36  }
  0x3b   :  { %7955 = sst [smem:[#allocation19_spill]] %s7285_s4 }
  0x3c   :  { %7956 = sst [smem:[#allocation20_spill]] %s7290_s9 }
  0x3d   :  { %7957 = sst [smem:[#allocation21_spill]] %s7295_s25 }
  0x3e   :  { %7958 = sst [smem:[#allocation22_spill]] %s7300_s21 }
  0x3f   :  { %s7305_s4 = sld [smem:[%s7919_s0 + %s7117_s28]]   ;;  %s7121_s28 = smov 37  }
  0x40   :  { %s7310_s9 = sld [smem:[%s7919_s0 + %s7118_s7]]   ;;  %s7122_s7 = smov 38  }
  0x41   :  { %s7315_s25 = sld [smem:[%s7919_s0 + %s7119_s15]]   ;;  %s7123_s15 = smov 39  }
  0x42   :  { %s7320_s21 = sld [smem:[%s7919_s0 + %s7120_s22]]   ;;  %s7124_s22 = smov 40  }
  0x45   :  { %7959 = sst [smem:[#allocation23_spill]] %s7305_s4 }
  0x46   :  { %7960 = sst [smem:[#allocation24_spill]] %s7310_s9 }
  0x47   :  { %7961 = sst [smem:[#allocation25_spill]] %s7315_s25 }
  0x48   :  { %7962 = sst [smem:[#allocation26_spill]] %s7320_s21 }
  0x49   :  { %s7325_s4 = sld [smem:[%s7919_s0 + %s7121_s28]]   ;;  %s7125_s28 = smov 41  }
  0x4a   :  { %s7330_s9 = sld [smem:[%s7919_s0 + %s7122_s7]]   ;;  %s7347_s7 = smov 0  }
  0x4b   :  { %s7335_s25 = sld [smem:[%s7919_s0 + %s7123_s15]]  }
  0x4c   :  { %s7340_s21 = sld [smem:[%s7919_s0 + %s7124_s22]]  }
  0x4f   :  { %7963 = sst [smem:[#allocation27_spill]] %s7325_s4 }
  0x50   :  { %s7345_s4 = sld [smem:[%s7919_s0 + %s7125_s28]]  }
  0x51 LB: > { %s7964_s3 = sld [smem:[#allocation6_spill]]  ;;  %s5761_s10 = sadd.s32 4294967295, %s7083_s7   ;;  %s7083_s7 = sphi %s7347_s7, %s93_s7  }
  0x52   : > { %p5765_p0 = scmp.ge.s32.totalorder %s7083_s7, 1  ;;  %p1138_p1 = scmp.lt.s32.totalorder %s7083_s7, 3 }
  0x54   : > { %p1139_p2 = pnand %p5765_p0, %p1138_p1 }
  0x55   : > { %vm1284_vm0 = vcmask (!%p1139_p2), 1043456   ;;  %s7965_s5 = sld [smem:[#allocation2_spill]] (!%p1139_p2)  ;;  %v1373_v0 = vld [vmem:[%s7180_s8] sm:$0xf] (!%p1139_p2)  ;;  %p1241_p3 = scmp.lt.s32.totalorder (!%p1139_p2), %s5761_s10, 1  ;;  %vm1271_vm1 = vcmask (!%p1139_p2), 31744  }
  0x56   : > { %1142 = sbr.rel (%p1139_p2) target bundleno = 7102 (0x1bbe), region = 184  ;;  %6253 = vmatprep.subr.msk.mxu1 (!%p1139_p2), %vm1284_vm0, %v1373_v0  ;;  %v1263_v1 = vld [vmem:[%s7170_s29] sm:$0xf] (!%p1139_p2)  ;;  %vm1565_vm2 = vcmask (!%p1139_p2), 64512   ;;  %vm1683_vm4 = vcmask (!%p1139_p2), 261120   ;;  %v7432_v33 = vld [vmem:[%s7150_s13 + $0x8] sm:$0xff] (!%p1139_p2) }
  0x57   : > { %6254 = vmatpush3.msk.msra.mxu1 (!%p1139_p2), %vm1284_vm0, %v1373_v0  ;;  %6245 = vmatprep.subr.msk.mxu0 (!%p1139_p2), %vm1284_vm0, %v1263_v1  ;;  %v5776_v6 = vld [vmem:[%s7185_s14] ss:$0 sm:$0xff] (!%p1139_p2)  ;;  %vm7401_vm3 = vmpackc.low (!%p1139_p2), %vm1565_vm2, %vm1565_vm2  ;;  %v7436_v37 = vld [vmem:[%s7150_s13 + $0x10] sm:$0xff] (!%p1139_p2)  ;;  %s7968_s15 = sld [smem:[#allocation4_spill]] (!%p1139_p2)  ;;  %s7969_s16 = sld [smem:[#allocation8_spill]] (!%p1139_p2)  ;;  %vm7127_vm5 = vmmov (!%p1139_p2), 0  }
  0x58   : > { %6246 = vmatpush3.msk.msra.mxu0 (!%p1139_p2), %vm1284_vm0, %v1263_v1  ;;  %v5770_v7 = vld [vmem:[%s7964_s3] ss:$0 sm:$0xff] (!%p1139_p2)  ;;  %v7441_v42 = vld [vmem:[%s7150_s13 + $0x18] sm:$0xff] (!%p1139_p2)  ;;  %s7970_s18 = sld [smem:[#allocation5_spill]] (!%p1139_p2)  ;;  %s7971_s22 = sld [smem:[#allocation10_spill]] (!%p1139_p2)  ;;  %vm5288_vm6 = vcmask (!%p1139_p2), 257024  }
  0x59   : > { %v1469_v27 = vld [vmem:[%s7190_s19] sm:$0xf] (!%p1139_p2)  ;;  %s7972_s23 = sld [smem:[#allocation7_spill]] (!%p1139_p2)  ;;  %s7973_s26 = sld [smem:[#allocation3_spill]] (!%p1139_p2)  ;;  %vm5650_vm7 = vcmask (!%p1139_p2), 523264   ;;  %vm5652_vm8 = vcmask (!%p1139_p2), 588800  }
  0x5a   : > { %6261 = vmatprep.subr.msk.mxu0 (!%p1139_p2), %vm1284_vm0, %v1469_v27  ;;  %v7429_v30 = vld [vmem:[%s7150_s13] sm:$0xff] (!%p1139_p2)  ;;  %s7974_s2 = sld [smem:[#allocation12_spill]] (!%p1139_p2) }
  0x5d   : > { %s7994_s10 = smov (!%p1241_p3, %s5761_s10), 1 }
  0x5e   : > { %s5993_s0 = sshll.u32 %s7994_s10, 5  ;;  %s7933_s28 = sshll.u32 %s7994_s10, 2 }
  0x5f   : > { %s7365_s11 = scalar_lea.vmem %s7965_s5, %s5993_s0  ;;  %s1249_s1 = scalar_lea.vmem %s7973_s26, %s7933_s28 }
  0x60   : > { %v7368_v2 = vld [vmem:[%s7365_s11] sm:$0xff]  ;;  %v7371_v3 = vld [vmem:[%s7365_s11 + $0x8] sm:$0xff]  ;;  %v7374_v4 = vld [vmem:[%s7365_s11 + $0x10] sm:$0xff]  ;;  %s7975_s0 = sld [smem:[#allocation14_spill]]  ;;  %s7979_s26 = sld [smem:[#allocation13_spill]] }
  0x61   : > { %6255 = vmatprep.mubr.msk.f32.mxu1 %vm1271_vm1, %v7368_v2  ;;  %6247 = vmatprep.mubr.msk.f32.mxu0 %vm1271_vm1, %v7368_v2  ;;  %v7387_v5 = vld [vmem:[%s7365_s11 + $0x18] sm:$0xff]  ;;  %s7981_s28 = sld [smem:[#allocation24_spill]]  ;;  %s7990_s5 = sld [smem:[#allocation27_spill]] }
  0x62   : > { %6256 = vmatmul.mubr.msk.f32.vlgmr.msra.gmra.mrb[0].mxu1 %vm1271_vm1, %v7371_v3  ;;  %6248 = vmatmul.mubr.msk.f32.vlgmr.msra.gmra.mrb[0].mxu0 %vm1271_vm1, %v7371_v3 }
  0x63   : > { %6258 = vmatprep.mubr.msk.f32.mxu1 %vm1271_vm1, %v7374_v4  ;;  %6250 = vmatprep.mubr.msk.f32.mxu0 %vm1271_vm1, %v7374_v4 }
  0x64   : > { %6262 = vmatpush3.msk.msra.mxu0 %vm1284_vm0, %v1469_v27 }
  0x66   : > { %6259 = vmatmul.mubr.msk.f32.gmra.mrb[2].mxu1 %vm1271_vm1, %v7387_v5  ;;  %6251 = vmatmul.mubr.msk.f32.gmra.mrb[2].mxu0 %vm1271_vm1, %v7387_v5 }
  0x67   : > { %6263 = vmatprep.mubr.msk.f32.mxu0 %vm1271_vm1, %v7368_v2 }
  0x6a   : > { %6264 = vmatmul.mubr.msk.f32.vlgmr.msra.gmra.mrb[4].mxu0 %vm1271_vm1, %v7371_v3 }
  0x6b   : > { %6266 = vmatprep.mubr.msk.f32.mxu0 %vm1271_vm1, %v7374_v4 }
  0x6e   : > { %6267 = vmatmul.mubr.msk.f32.gmra.mrb[6].mxu0 %vm1271_vm1, %v7387_v5 }
 0x135   : > { %v6257_v8 = vpop.f32.mrb[0].mxu1  ;;  %v6249_v9 = vpop.f32.mrb[0].mxu0 }
 0x136   : > { %v1456_v10 = vadd.f32 %v6257_v8, %v5776_v6  ;;  %v1450_v11 = vpop.f32.mrb[1].mxu1  ;;  %v1354_v12 = vpop.f32.mrb[1].mxu0  ;;  %v1360_v25 = vadd.f32 %v6249_v9, %v5770_v7  ;;  %v5782_v9 = vld [vmem:[%s7195_s24] ss:$0 sm:$0xff] }
 0x137   : > { %v1451_v13 = vadd.f32 %v5776_v6, %v1450_v11  ;;  %v1355_v14 = vadd.f32 %v5770_v7, %v1354_v12 }
 0x139   : > { %v6712_v16 = vpack.c.bf16 %v1456_v10, %v1451_v13  ;;  %v6260_v17 = vpop.f32.mrb[2].mxu1  ;;  %v6252_v18 = vpop.f32.mrb[2].mxu0  ;;  %6277 = vmatprep.mubr.msk.f32.mxu1 %vm1565_vm2, %v1355_v14  ;;  %v5808_v10 = vld [vmem:[%s7180_s8 + $0x4] sm:$0xf] }
 0x13a   : > { %v1466_v19 = vadd.f32 %v6260_v17, %v5776_v6  ;;  %v1460_v20 = vpop.f32.mrb[3].mxu1  ;;  %v1364_v21 = vpop.f32.mrb[3].mxu0  ;;  %v1370_v26 = vadd.f32 %v6252_v18, %v5770_v7 }
 0x13b   : > { %6714 = vmatprep.subr.msk.bf16.mxu1 %vm7401_vm3, %v6712_v16  ;;  %v1461_v22 = vadd.f32 %v5776_v6, %v1460_v20  ;;  %v1365_v24 = vadd.f32 %v5770_v7, %v1364_v21  ;;  %v5800_v21 = vld [vmem:[%s7170_s29 + $0x4] sm:$0xf] }
 0x13c   : > { %6717 = vmatpush3.bf16.xpose.msk.msra.mxu1 %vm7401_vm3, %v6712_v16 }
 0x13d   : > { %v6718_v23 = vpack.c.bf16 %v1466_v19, %v1461_v22  ;;  %v6265_v8 = vpop.f32.mrb[4].mxu0 }
 0x13e   : > { %v1552_v11 = vadd.f32 %v6265_v8, %v5782_v9  ;;  %v1546_v12 = vpop.f32.mrb[5].mxu0 }
 0x13f   : > { %6720 = vmatprep.subr.msk.bf16.mxu1 %vm7401_vm3, %v6718_v23  ;;  %v1547_v13 = vadd.f32 %v5782_v9, %v1546_v12 }
 0x141   : > { %v6724_v14 = vpack.c.bf16 %v1552_v11, %v1547_v13  ;;  %v6268_v16 = vpop.f32.mrb[6].mxu0 }
 0x142   : > { %v1556_v17 = vpop.f32.mrb[7].mxu0  ;;  %v1562_v18 = vadd.f32 %v6268_v16, %v5782_v9 }
 0x143   : > { %6725 = vmatprep.subr.bf16.mxu0 %v6724_v14  ;;  %v1557_v19 = vadd.f32 %v5782_v9, %v1556_v17 }
 0x144   : > { %6723 = vmatpush3.bf16.xpose.msk.msra.mxu1 %vm7401_vm3, %v6718_v23  ;;  %6727 = vmatpush3.bf16.msra.mxu0 %v6724_v14 }
 0x145   : > { %6305 = vmatprep.subr.msk.mxu1 %vm1284_vm0, %v5808_v10  ;;  %v6728_v20 = vpack.c.bf16 %v1562_v18, %v1557_v19  ;;  %v5847_v19 = vld [vmem:[%s7964_s3 + $0x2] ss:$0 sm:$0xff] }
 0x147   : > { %6729 = vmatprep.subr.bf16.mxu0 %v6728_v20 }
 0x148   : > { %6731 = vmatpush3.bf16.msra.mxu0 %v6728_v20 }
 0x149   : > { %6297 = vmatprep.subr.msk.mxu0 %vm1284_vm0, %v5800_v21 }
 0x14b   : > { %6278 = vmatmul.mubr.msk.f32.vlgmr.msra.gmra.mrb[4].mxu1 %vm1565_vm2, %v1360_v25 }
 0x14c   : > { %6280 = vmatprep.mubr.msk.f32.mxu1 %vm1565_vm2, %v1365_v24  ;;  %6306 = vmatpush3.msk.msra.mxu1 %vm1284_vm0, %v5808_v10 }
 0x14f   : > { %6281 = vmatmul.mubr.msk.f32.gmra.mrb[6].mxu1 %vm1565_vm2, %v1370_v26 }
 0x150   : > { %6307 = vmatprep.mubr.msk.f32.mxu1 %vm1271_vm1, %v7368_v2 }
 0x153   : > { %6308 = vmatmul.mubr.msk.f32.vlgmr.msra.gmra.mrb[8].mxu1 %vm1271_vm1, %v7371_v3 }
 0x154   : > { %6310 = vmatprep.mubr.msk.f32.mxu1 %vm1271_vm1, %v7374_v4 }
 0x157   : > { %6311 = vmatmul.mubr.msk.f32.gmra.mrb[10].mxu1 %vm1271_vm1, %v7387_v5 }
 0x21e   : > { %v6279_v28 = vpop.f32.mrb[4].mxu1 }
 0x21f   : > { %v1656_v29 = vpop.f32.mrb[5].mxu1  ;;  %v1676_v31 = vmul.f32 0.35355338, %v6279_v28 }
 0x220   : > { %v1675_v32 = vmul.f32 0.35355338, %v1656_v29 }
 0x221   : > { %v1680_v41 = vadd.f32 %v1676_v31, %v7432_v33 }
 0x222   : > { %v6282_v34 = vpop.f32.mrb[6].mxu1  ;;  %v1679_v35 = vadd.f32 %v1675_v32, %v7429_v30 }
 0x223   : > { %v1666_v36 = vpop.f32.mrb[7].mxu1  ;;  %v1678_v38 = vmul.f32 0.35355338, %v6282_v34  ;;  %v1687_v44 = vsel %vm1683_vm4, %v1680_v41, -inf }
 0x224   : > { %v1677_v39 = vmul.f32 0.35355338, %v1666_v36  ;;  %v1684_v40 = vsel %vm1683_vm4, %v1679_v35, -inf  ;;  %v5810_v36 = vld [vmem:[%s7185_s14 + $0x1] ss:$0 sm:$0xff] }
 0x225   : > { %1685 = vmax.xlane.f32.xlu0 %v1684_v40  ;;  %v1682_v46 = vadd.f32 %v1678_v38, %v7441_v42 }
 0x226   : > { %v1681_v43 = vadd.f32 %v1677_v39, %v7436_v37  ;;  %v6309_v38 = vpop.f32.mrb[8].mxu1 }
 0x227   : > { %v1693_v47 = vsel %vm1683_vm4, %v1682_v46, -inf  ;;  %v2009_v39 = vadd.f32 %v6309_v38, %v5810_v36  ;;  %v2003_v40 = vpop.f32.mrb[9].mxu1 }
 0x228   : > { %v1690_v45 = vsel %vm1683_vm4, %v1681_v43, -inf }
 0x229   : > { %1688 = vmax.xlane.f32.xlu0 %v1687_v44  ;;  %1691 = vmax.xlane.f32.xlu1 %v1690_v45 }
 0x22a   : > { %v6312_v44 = vpop.f32.mrb[10].mxu1 }
 0x22b   : > { %v2019_v45 = vadd.f32 %v6312_v44, %v5810_v36 }
 0x22d   : > { %1694 = vmax.xlane.f32.xlu1 %v1693_v47 }
 0x2b2   : > { %v1686_v48 = vpop.xlane.xlu0 %1685 }
 0x2b3   : > { %v1696_v49 = vsub.f32 %v1679_v35, %v1686_v48 }
 0x2b5   : > { %v1700_v50 = vmul.f32 1.442695, %v1696_v49  ;;  %v5845_v49 = vld [vmem:[%s7170_s29 + $0x8] sm:$0xf] }
 0x2b6   : > { %v1689_v51 = vpop.xlane.xlu0 %1688  ;;  %v1692_v52 = vpop.xlane.xlu1 %1691 }
 0x2b7   : > { %6989 = vpow2.f32 %v1700_v50  ;;  %v1697_v53 = vsub.f32 %v1680_v41, %v1689_v51  ;;  %v1698_v54 = vsub.f32 %v1681_v43, %v1692_v52  ;;  %v2004_v41 = vadd.f32 %v5810_v36, %v2003_v40 }
 0x2b9   : > { %v1702_v55 = vmul.f32 1.442695, %v1697_v53  ;;  %v1704_v56 = vmul.f32 1.442695, %v1698_v54  ;;  %v6732_v43 = vpack.c.bf16 %v2009_v39, %v2004_v41  ;;  %v5802_v54 = vld [vmem:[%s7964_s3 + $0x1] ss:$0 sm:$0xff] }
 0x2ba   : > { %v1695_v57 = vpop.xlane.xlu1 %1694 }
 0x2bb   : > { %6991 = vpow2.f32 %v1702_v55  ;;  %v1699_v58 = vsub.f32 %v1682_v46, %v1695_v57  ;;  %v2013_v46 = vpop.f32.mrb[11].mxu1  ;;  %6734 = vmatprep.subr.msk.bf16.mxu1 %vm7401_vm3, %v6732_v43 }
 0x2bc   : > { %6993 = vpow2.f32 %v1704_v56  ;;  %v2014_v47 = vadd.f32 %v5810_v36, %v2013_v46  ;;  %6737 = vmatpush3.bf16.xpose.msk.msra.mxu1 %vm7401_vm3, %v6732_v43 }
 0x2bd   : > { %v1706_v59 = vmul.f32 1.442695, %v1699_v58 }
 0x2be   : > { %v6738_v48 = vpack.c.bf16 %v2019_v45, %v2014_v47 }
 0x2bf   : > { %6995 = vpow2.f32 %v1706_v59 }
 0x2c0   : > { %6740 = vmatprep.subr.msk.bf16.mxu1 %vm7401_vm3, %v6738_v48 }
 0x2c1   : > { %v6990_v60 = vpop.eup %6989 }
 0x2c2   : > { %v1708_v61 = vsel %vm1683_vm4, %v6990_v60, 0.0 }
 0x2c3   : > { %1709 = vadd.xlane.f32.xlu0 %v1708_v61 }
 0x2c4   : > { %6743 = vmatpush3.bf16.xpose.msk.msra.mxu1 %vm7401_vm3, %v6738_v48 }
 0x2c5   : > { %v6992_v62 = vpop.eup %6991  ;;  %6365 = vmatprep.subr.msk.mxu1 %vm1284_vm0, %v5845_v49 }
 0x2c6   : > { %v6994_v63 = vpop.eup %6993  ;;  %v1711_v0 = vsel %vm1683_vm4, %v6992_v62, 0.0 }
 0x2c7   : > { %1712 = vadd.xlane.f32.xlu1 %v1711_v0  ;;  %v1714_v1 = vsel %vm1683_vm4, %v6994_v63, 0.0  ;;  %v5816_v0 = vld [vmem:[%s7190_s19 + $0x4] sm:$0xf] }
 0x2c8   : > { %1715 = vadd.xlane.f32.xlu0 %v1714_v1 }
 0x2c9   : > { %v6996_v6 = vpop.eup %6995 }
 0x2ca   : > { %v1717_v7 = vsel %vm1683_vm4, %v6996_v6, 0.0 }
 0x2cb   : > { %1718 = vadd.xlane.f32.xlu1 %v1717_v7 }
 0x350   : > { %v1710_v22 = vpop.xlane.xlu0 %1709 }
 0x351   : > { %6997 = vrcp.f32 %v1710_v22 }
 0x354   : > { %v1713_v23 = vpop.xlane.xlu1 %1712 }
 0x355   : > { %v1716_v24 = vpop.xlane.xlu0 %1715  ;;  %6999 = vrcp.f32 %v1713_v23 }
 0x356   : > { %7001 = vrcp.f32 %v1716_v24 }
 0x358   : > { %v1719_v25 = vpop.xlane.xlu1 %1718 }
 0x359   : > { %7003 = vrcp.f32 %v1719_v25 }
 0x35b   : > { %v6998_v26 = vpop.eup %6997 }
 0x35c   : > { %v1724_v27 = vmul.f32 %v6998_v26, %v6990_v60  ;;  %v5853_v60 = vld [vmem:[%s7180_s8 + $0x8] sm:$0xf] }
 0x35e   : > { %6291 = vmatprep.mubr.msk.f32.mxu0 %vm1683_vm4, %v1724_v27 }
 0x35f   : > { %v7000_v28 = vpop.eup %6999 }
 0x360   : > { %v7002_v29 = vpop.eup %7001  ;;  %v1725_v31 = vmul.f32 %v7000_v28, %v6992_v62  ;;  %v5855_v28 = vld [vmem:[%s7185_s14 + $0x2] ss:$0 sm:$0xff] }
 0x361   : > { %v1726_v32 = vmul.f32 %v7002_v29, %v6994_v63 }
 0x362   : > { %6292 = vmatmul.mubr.msk.f32.vlgmr.msra.gmra.mrb[8].mxu0 %vm1683_vm4, %v1725_v31 }
 0x363   : > { %v7004_v34 = vpop.eup %7003  ;;  %6294 = vmatprep.mubr.msk.f32.mxu0 %vm1683_vm4, %v1726_v32  ;;  %6298 = vmatpush3.msk.msra.mxu0 %vm1284_vm0, %v5800_v21 }
 0x364   : > { %v1727_v35 = vmul.f32 %v7004_v34, %v6996_v6  ;;  %6313 = vmatprep.subr.msk.mxu0 %vm1284_vm0, %v5816_v0 }
 0x366   : > { %6295 = vmatmul.mubr.msk.f32.gmra.mrb[10].mxu0 %vm1683_vm4, %v1727_v35 }
 0x367   : > { %6299 = vmatprep.mubr.msk.f32.mxu0 %vm1271_vm1, %v7368_v2 }
 0x36a   : > { %6300 = vmatmul.mubr.msk.f32.vlgmr.msra.gmra.mrb[12].mxu0 %vm1271_vm1, %v7371_v3 }
 0x36b   : > { %6302 = vmatprep.mubr.msk.f32.mxu0 %vm1271_vm1, %v7374_v4  ;;  %6314 = vmatpush3.msk.msra.mxu0 %vm1284_vm0, %v5816_v0 }
 0x36e   : > { %6303 = vmatmul.mubr.msk.f32.gmra.mrb[14].mxu0 %vm1271_vm1, %v7387_v5 }
 0x36f   : > { %6315 = vmatprep.mubr.msk.f32.mxu0 %vm1271_vm1, %v7368_v2 }
 0x372   : > { %6316 = vmatmul.mubr.msk.f32.vlgmr.msra.gmra.mrb[16].mxu0 %vm1271_vm1, %v7371_v3 }
 0x373   : > { %6318 = vmatprep.mubr.msk.f32.mxu0 %vm1271_vm1, %v7374_v4 }
 0x376   : > { %6319 = vmatmul.mubr.msk.f32.gmra.mrb[18].mxu0 %vm1271_vm1, %v7387_v5 }
 0x435   : > { %v7490_v50 = vpop.f32.mrb[8].mxu0 }
 0x436   : > { %v7492_v51 = vpop.f32.mrb[9].mxu0 }
 0x439   : > { %v7494_v52 = vpop.f32.mrb[10].mxu0 }
 0x43a   : > { %v7496_v53 = vpop.f32.mrb[11].mxu0 }
 0x43d   : > { %v6301_v55 = vpop.f32.mrb[12].mxu0 }
 0x43e   : > { %v1905_v56 = vpop.f32.mrb[13].mxu0  ;;  %v1911_v58 = vadd.f32 %v6301_v55, %v5802_v54 }
 0x43f   : > { %v1906_v57 = vadd.f32 %v5802_v54, %v1905_v56 }
 0x441   : > { %v6304_v59 = vpop.f32.mrb[14].mxu0  ;;  %6329 = vmatprep.mubr.msk.f32.mxu1 %vm1565_vm2, %v1906_v57 }
 0x442   : > { %v1915_v61 = vpop.f32.mrb[15].mxu0  ;;  %6330 = vmatmul.mubr.msk.f32.vlgmr.msra.gmra.mrb[12].mxu1 %vm1565_vm2, %v1911_v58  ;;  %v1921_v63 = vadd.f32 %v6304_v59, %v5802_v54 }
 0x443   : > { %v1916_v62 = vadd.f32 %v5802_v54, %v1915_v61  ;;  %6366 = vmatpush3.msk.msra.mxu1 %vm1284_vm0, %v5845_v49 }
 0x444   : > { %6373 = vmatprep.subr.msk.mxu1 %vm1284_vm0, %v5853_v60 }
 0x445   : > { %6332 = vmatprep.mubr.msk.f32.mxu1 %vm1565_vm2, %v1916_v62  ;;  %v6317_v46 = vpop.f32.mrb[16].mxu0 }
 0x446   : > { %6333 = vmatmul.mubr.msk.f32.gmra.mrb[14].mxu1 %vm1565_vm2, %v1921_v63 }
 0x447   : > { %6367 = vmatprep.mubr.msk.f32.mxu1 %vm1271_vm1, %v7368_v2 }
 0x44a   : > { %6368 = vmatmul.mubr.msk.f32.vlgmr.msra.gmra.mrb[16].mxu1 %vm1271_vm1, %v7371_v3 }
 0x44b   : > { %6370 = vmatprep.mubr.msk.f32.mxu1 %vm1271_vm1, %v7374_v4  ;;  %6374 = vmatpush3.msk.msra.mxu1 %vm1284_vm0, %v5853_v60 }
 0x44e   : > { %6371 = vmatmul.mubr.msk.f32.gmra.mrb[18].mxu1 %vm1271_vm1, %v7387_v5 }
 0x44f   : > { %6375 = vmatprep.mubr.msk.f32.mxu1 %vm1271_vm1, %v7368_v2 }
 0x452   : > { %6376 = vmatmul.mubr.msk.f32.vlgmr.msra.gmra.mrb[20].mxu1 %vm1271_vm1, %v7371_v3 }
 0x453   : > { %6378 = vmatprep.mubr.msk.f32.mxu1 %vm1271_vm1, %v7374_v4 }
 0x456   : > { %6379 = vmatmul.mubr.msk.f32.gmra.mrb[22].mxu1 %vm1271_vm1, %v7387_v5 }
 0x515   : > { %v6331_v1 = vpop.f32.mrb[12].mxu1 }
 0x516   : > { %v2230_v6 = vmul.f32 0.35355338, %v6331_v1  ;;  %v2210_v7 = vpop.f32.mrb[13].mxu1 }
 0x517   : > { %v2229_v8 = vmul.f32 0.35355338, %v2210_v7 }
 0x518   : > { %v2234_v9 = vadd.f32 %v2230_v6, %v7432_v33 }
 0x519   : > { %v6334_v10 = vpop.f32.mrb[14].mxu1  ;;  %v2233_v11 = vadd.f32 %v2229_v8, %v7429_v30 }
 0x51a   : > { %v2232_v12 = vmul.f32 0.35355338, %v6334_v10  ;;  %v2220_v13 = vpop.f32.mrb[15].mxu1  ;;  %v2240_v14 = vsel %vm1683_vm4, %v2234_v9, -inf }
 0x51b   : > { %v2231_v16 = vmul.f32 0.35355338, %v2220_v13  ;;  %2241 = vmax.xlane.f32.xlu1 %v2240_v14  ;;  %v2237_v17 = vsel %vm1683_vm4, %v2233_v11, -inf  ;;  %v2101_v13 = vpop.f32.mrb[17].mxu0 }
 0x51c   : > { %2238 = vmax.xlane.f32.xlu0 %v2237_v17  ;;  %v2236_v18 = vadd.f32 %v2232_v12, %v7441_v42  ;;  %v6320_v17 = vpop.f32.mrb[18].mxu0 }
 0x51d   : > { %v2235_v20 = vadd.f32 %v2231_v16, %v7436_v37  ;;  %v6369_v21 = vpop.f32.mrb[16].mxu1 }
 0x51e   : > { %v2246_v22 = vsel %vm1683_vm4, %v2236_v18, -inf  ;;  %v2653_v23 = vpop.f32.mrb[17].mxu1  ;;  %v2659_v43 = vadd.f32 %v6369_v21, %v5847_v19 }
 0x51f   : > { %2247 = vmax.xlane.f32.xlu1 %v2246_v22  ;;  %v2243_v24 = vsel %vm1683_vm4, %v2235_v20, -inf  ;;  %v2654_v25 = vadd.f32 %v5847_v19, %v2653_v23 }
 0x520   : > { %2244 = vmax.xlane.f32.xlu0 %v2243_v24 }
 0x521   : > { %v6372_v26 = vpop.f32.mrb[18].mxu1  ;;  %6397 = vmatprep.mubr.msk.f32.mxu1 %vm1565_vm2, %v2654_v25 }
 0x522   : > { %v2663_v27 = vpop.f32.mrb[19].mxu1  ;;  %v2669_v45 = vadd.f32 %v6372_v26, %v5847_v19 }
 0x523   : > { %v2664_v44 = vadd.f32 %v5847_v19, %v2663_v27 }
 0x525   : > { %v6377_v29 = vpop.f32.mrb[20].mxu1 }
 0x526   : > { %v2757_v31 = vadd.f32 %v6377_v29, %v5855_v28  ;;  %v2751_v32 = vpop.f32.mrb[21].mxu1 }
 0x527   : > { %v2752_v34 = vadd.f32 %v5855_v28, %v2751_v32 }
 0x529   : > { %v6752_v35 = vpack.c.bf16 %v2757_v31, %v2752_v34  ;;  %v6380_v36 = vpop.f32.mrb[22].mxu1 }
 0x52a   : > { %v2767_v38 = vadd.f32 %v6380_v36, %v5855_v28  ;;  %v2761_v39 = vpop.f32.mrb[23].mxu1 }
 0x52b   : > { %6754 = vmatprep.subr.msk.bf16.mxu1 %vm7401_vm3, %v6752_v35  ;;  %v2762_v40 = vadd.f32 %v5855_v28, %v2761_v39 }
 0x52c   : > { %6757 = vmatpush3.bf16.xpose.msk.msra.mxu1 %vm7401_vm3, %v6752_v35 }
 0x52d   : > { %v6758_v41 = vpack.c.bf16 %v2767_v38, %v2762_v40 }
 0x52f   : > { %6760 = vmatprep.subr.msk.bf16.mxu1 %vm7401_vm3, %v6758_v41 }
 0x534   : > { %6763 = vmatpush3.bf16.xpose.msk.msra.mxu1 %vm7401_vm3, %v6758_v41  ;;  %v5836_v41 = vld [vmem:[%s7200_s30 + $0x8] sm:$0xff] }
 0x53b   : > { %6398 = vmatmul.mubr.msk.f32.vlgmr.msra.gmra.mrb[24].mxu1 %vm1565_vm2, %v2659_v43 }
 0x53c   : > { %6400 = vmatprep.mubr.msk.f32.mxu1 %vm1565_vm2, %v2664_v44 }
 0x53f   : > { %6401 = vmatmul.mubr.msk.f32.gmra.mrb[26].mxu1 %vm1565_vm2, %v2669_v45 }
 0x540   : > { %6427 = vmatprep.mubr.msk.f32.mxu1 %vm1271_vm1, %v7368_v2 }
 0x5a8   : > { %v2242_v47 = vpop.xlane.xlu1 %2241 }
 0x5a9   : > { %v2250_v48 = vsub.f32 %v2234_v9, %v2242_v47  ;;  %v2239_v49 = vpop.xlane.xlu0 %2238 }
 0x5aa   : > { %v2249_v54 = vsub.f32 %v2233_v11, %v2239_v49  ;;  %v5818_v11 = vld [vmem:[%s7195_s24 + $0x1] ss:$0 sm:$0xff] }
 0x5ab   : > { %v2255_v55 = vmul.f32 1.442695, %v2250_v48  ;;  %v2107_v12 = vadd.f32 %v6317_v46, %v5818_v11  ;;  %v2102_v14 = vadd.f32 %v5818_v11, %v2101_v13  ;;  %v2117_v19 = vadd.f32 %v6320_v17, %v5818_v11 }
 0x5ac   : > { %v2253_v56 = vmul.f32 1.442695, %v2249_v54  ;;  %v2248_v57 = vpop.xlane.xlu1 %2247 }
 0x5ad   : > { %7005 = vpow2.f32 %v2255_v55  ;;  %v2252_v58 = vsub.f32 %v2236_v18, %v2248_v57  ;;  %v2245_v59 = vpop.xlane.xlu0 %2244  ;;  %v6744_v16 = vpack.c.bf16 %v2107_v12, %v2102_v14  ;;  %v2111_v18 = vpop.f32.mrb[19].mxu0 }
 0x5ae   : > { %7007 = vpow2.f32 %v2253_v56  ;;  %v2251_v60 = vsub.f32 %v2235_v20, %v2245_v59  ;;  %v2112_v20 = vadd.f32 %v5818_v11, %v2111_v18 }
 0x5af   : > { %v2259_v61 = vmul.f32 1.442695, %v2252_v58  ;;  %6745 = vmatprep.subr.bf16.mxu0 %v6744_v16 }
 0x5b0   : > { %v2257_v62 = vmul.f32 1.442695, %v2251_v60  ;;  %6747 = vmatpush3.bf16.msra.mxu0 %v6744_v16  ;;  %v6748_v21 = vpack.c.bf16 %v2117_v19, %v2112_v20 }
 0x5b1   : > { %7009 = vpow2.f32 %v2259_v61 }
 0x5b2   : > { %7011 = vpow2.f32 %v2257_v62  ;;  %6749 = vmatprep.subr.bf16.mxu0 %v6748_v21 }
 0x5b4   : > { %6751 = vmatpush3.bf16.msra.mxu0 %v6748_v21 }
 0x5b5   : > { %6349 = vmatprep.subr.mxu0 %v5836_v41 }
 0x5b7   : > { %v7006_v63 = vpop.eup %7005 }
 0x5b8   : > { %v7008_v0 = vpop.eup %7007  ;;  %v2264_v1 = vsel %vm1683_vm4, %v7006_v63, 0.0 }
 0x5b9   : > { %2265 = vadd.xlane.f32.xlu1 %v2264_v1  ;;  %v2261_v6 = vsel %vm1683_vm4, %v7008_v0, 0.0 }
 0x5ba   : > { %2262 = vadd.xlane.f32.xlu0 %v2261_v6 }
 0x5bb   : > { %v7010_v7 = vpop.eup %7009 }
 0x5bc   : > { %v7012_v8 = vpop.eup %7011  ;;  %v2270_v9 = vsel %vm1683_vm4, %v7010_v7, 0.0 }
 0x5bd   : > { %2271 = vadd.xlane.f32.xlu1 %v2270_v9  ;;  %v2267_v10 = vsel %vm1683_vm4, %v7012_v8, 0.0 }
 0x5be   : > { %2268 = vadd.xlane.f32.xlu0 %v2267_v10 }
 0x60e   : > { %v6399_v22 = vpop.f32.mrb[24].mxu1 }
 0x60f   : > { %v2978_v23 = vmul.f32 0.35355338, %v6399_v22  ;;  %v2958_v24 = vpop.f32.mrb[25].mxu1 }
 0x610   : > { %v2977_v25 = vmul.f32 0.35355338, %v2958_v24 }
 0x611   : > { %v2982_v26 = vadd.f32 %v2978_v23, %v7432_v33  ;;  %v5861_v23 = vld [vmem:[%s7190_s19 + $0x8] sm:$0xf] }
 0x612   : > { %v6402_v27 = vpop.f32.mrb[26].mxu1  ;;  %v2981_v28 = vadd.f32 %v2977_v25, %v7429_v30 }
 0x613   : > { %v2980_v29 = vmul.f32 0.35355338, %v6402_v27  ;;  %v2968_v31 = vpop.f32.mrb[27].mxu1  ;;  %v2988_v32 = vsel %vm1683_vm4, %v2982_v26, -inf  ;;  %v5863_v27 = vld [vmem:[%s7195_s24 + $0x2] ss:$0 sm:$0xff] }
 0x614   : > { %v2979_v34 = vmul.f32 0.35355338, %v2968_v31  ;;  %2989 = vmax.xlane.f32.xlu1 %v2988_v32  ;;  %v2985_v35 = vsel %vm1683_vm4, %v2981_v28, -inf }
 0x615   : > { %2986 = vmax.xlane.f32.xlu0 %v2985_v35  ;;  %v2984_v36 = vadd.f32 %v2980_v29, %v7441_v42 }
 0x616   : > { %v2983_v38 = vadd.f32 %v2979_v34, %v7436_v37 }
 0x617   : > { %v2994_v39 = vsel %vm1683_vm4, %v2984_v36, -inf }
 0x618   : > { %2995 = vmax.xlane.f32.xlu1 %v2994_v39  ;;  %v2991_v40 = vsel %vm1683_vm4, %v2983_v38, -inf }
 0x619   : > { %2992 = vmax.xlane.f32.xlu0 %v2991_v40 }
 0x646   : > { %v2266_v43 = vpop.xlane.xlu1 %2265 }
 0x647   : > { %7013 = vrcp.f32 %v2266_v43  ;;  %v2263_v44 = vpop.xlane.xlu0 %2262 }
 0x648   : > { %7015 = vrcp.f32 %v2263_v44  ;;  %v5881_v44 = vld [vmem:[%s7200_s30 + $0x10] sm:$0xff] }
 0x64a   : > { %v2272_v45 = vpop.xlane.xlu1 %2271 }
 0x64b   : > { %7017 = vrcp.f32 %v2272_v45  ;;  %v2269_v46 = vpop.xlane.xlu0 %2268 }
 0x64c   : > { %7019 = vrcp.f32 %v2269_v46 }
 0x651   : > { %v7014_v47 = vpop.eup %7013 }
 0x652   : > { %v7016_v48 = vpop.eup %7015  ;;  %v2278_v54 = vmul.f32 %v7014_v47, %v7006_v63 }
 0x653   : > { %v2277_v49 = vmul.f32 %v7016_v48, %v7008_v0 }
 0x655   : > { %v7018_v55 = vpop.eup %7017  ;;  %6343 = vmatprep.mubr.msk.f32.mxu0 %vm1683_vm4, %v2277_v49 }
 0x656   : > { %v7020_v56 = vpop.eup %7019  ;;  %6344 = vmatmul.mubr.msk.f32.vlgmr.msra.gmra.mrb[20].mxu0 %vm1683_vm4, %v2278_v54  ;;  %v2280_v58 = vmul.f32 %v7018_v55, %v7010_v7  ;;  %v1825_v7 = vld [vmem:[%s7200_s30] sm:$0xff]  ;;  %v5894_v54 = vld [vmem:[%s7180_s8 + $0xc] sm:$0xf] }
 0x657   : > { %v2279_v57 = vmul.f32 %v7020_v56, %v7012_v8  ;;  %6350 = vmatpush3.msra.mxu0 %v5836_v41  ;;  %v5886_v55 = vld [vmem:[%s7170_s29 + $0xc] sm:$0xf] }
 0x658   : > { %6357 = vmatprep.subr.mxu0 %v1825_v7  ;;  %6425 = vmatprep.subr.msk.mxu1 %vm1284_vm0, %v5886_v55 }
 0x659   : > { %6346 = vmatprep.mubr.msk.f32.mxu0 %vm1683_vm4, %v2279_v57  ;;  %6426 = vmatpush3.msk.msra.mxu1 %vm1284_vm0, %v5886_v55 }
 0x65a   : > { %6347 = vmatmul.mubr.msk.f32.gmra.mrb[22].mxu0 %vm1683_vm4, %v2280_v58  ;;  %6428 = vmatmul.mubr.msk.f32.vlgmr.msra.gmra.mrb[28].mxu1 %vm1271_vm1, %v7371_v3 }
 0x65b   : > { %6430 = vmatprep.mubr.msk.f32.mxu1 %vm1271_vm1, %v7374_v4 }
 0x65e   : > { %6431 = vmatmul.mubr.msk.f32.gmra.mrb[30].mxu1 %vm1271_vm1, %v7387_v5 }
 0x65f   : > { %6443 = vmatprep.mubr.msk.f32.mxu1 %vm1271_vm1, %v7368_v2 }
 0x6a1   : > { %v2990_v59 = vpop.xlane.xlu1 %2989 }
 0x6a2   : > { %v2998_v60 = vsub.f32 %v2982_v26, %v2990_v59  ;;  %v2987_v61 = vpop.xlane.xlu0 %2986 }
 0x6a3   : > { %v2997_v62 = vsub.f32 %v2981_v28, %v2987_v61  ;;  %v5888_v61 = vld [vmem:[%s7964_s3 + $0x3] ss:$0 sm:$0xff]  ;;  %s7987_s3 = sld [smem:[#allocation25_spill]] }
 0x6a4   : > { %v3003_v0 = vmul.f32 1.442695, %v2998_v60 }
 0x6a5   : > { %v3001_v63 = vmul.f32 1.442695, %v2997_v62  ;;  %v2996_v1 = vpop.xlane.xlu1 %2995 }
 0x6a6   : > { %7021 = vpow2.f32 %v3003_v0  ;;  %v3000_v6 = vsub.f32 %v2984_v36, %v2996_v1  ;;  %v2993_v9 = vpop.xlane.xlu0 %2992 }
 0x6a7   : > { %7023 = vpow2.f32 %v3001_v63  ;;  %v2999_v10 = vsub.f32 %v2983_v38, %v2993_v9 }
 0x6a8   : > { %v3007_v8 = vmul.f32 1.442695, %v3000_v6 }
 0x6a9   : > { %v3005_v11 = vmul.f32 1.442695, %v2999_v10  ;;  %v5896_v10 = vld [vmem:[%s7185_s14 + $0x3] ss:$0 sm:$0xff] }
 0x6aa   : > { %7025 = vpow2.f32 %v3007_v8 }
 0x6ab   : > { %7027 = vpow2.f32 %v3005_v11 }
 0x6b0   : > { %v7022_v12 = vpop.eup %7021 }
 0x6b1   : > { %v7024_v13 = vpop.eup %7023  ;;  %v3012_v14 = vsel %vm1683_vm4, %v7022_v12, 0.0 }
 0x6b2   : > { %3013 = vadd.xlane.f32.xlu1 %v3012_v14  ;;  %v3009_v16 = vsel %vm1683_vm4, %v7024_v13, 0.0 }
 0x6b3   : > { %3010 = vadd.xlane.f32.xlu0 %v3009_v16 }
 0x6b4   : > { %v7026_v17 = vpop.eup %7025 }
 0x6b5   : > { %v7028_v18 = vpop.eup %7027  ;;  %v3018_v19 = vsel %vm1683_vm4, %v7026_v17, 0.0 }
 0x6b6   : > { %3019 = vadd.xlane.f32.xlu1 %v3018_v19  ;;  %v3015_v20 = vsel %vm1683_vm4, %v7028_v18, 0.0 }
 0x6b7   : > { %3016 = vadd.xlane.f32.xlu0 %v3015_v20  ;;  %v5902_v20 = vld [vmem:[%s7190_s19 + $0xc] sm:$0xf] }
 0x6b8   : > { %6441 = vmatprep.subr.msk.mxu1 %vm1284_vm0, %v5902_v20 }
 0x6b9   : > { %6442 = vmatpush3.msk.msra.mxu1 %vm1284_vm0, %v5902_v20 }
 0x6ba   : > { %6444 = vmatmul.mubr.msk.f32.vlgmr.msra.gmra.mrb[32].mxu1 %vm1271_vm1, %v7371_v3 }
 0x6bb   : > { %6446 = vmatprep.mubr.msk.f32.mxu1 %vm1271_vm1, %v7374_v4 }
 0x6be   : > { %6447 = vmatmul.mubr.msk.f32.gmra.mrb[34].mxu1 %vm1271_vm1, %v7387_v5 }
 0x729   : > { %v6345_v21 = vpop.f32.mrb[20].mxu0 }
 0x72a   : > { %v2359_v22 = vpop.f32.mrb[21].mxu0 }
 0x72b   : > { %6351 = vmatprep.mubr.msk.f32.mxu0 %vm1565_vm2, %v2359_v22 }
 0x72c   : > { %6352 = vmatmul.mubr.msk.f32.vlgmr.msra.gmra.mrb[24].mxu0 %vm1565_vm2, %v6345_v21 }
 0x72d   : > { %v6348_v24 = vpop.f32.mrb[22].mxu0  ;;  %6358 = vmatpush3.msra.mxu0 %v1825_v7  ;;  %v6429_v60 = vpop.f32.mrb[28].mxu1 }
 0x72e   : > { %v2369_v25 = vpop.f32.mrb[23].mxu0  ;;  %6381 = vmatprep.subr.msk.mxu0 %vm1284_vm0, %v5861_v23  ;;  %v3314_v62 = vadd.f32 %v6429_v60, %v5888_v61  ;;  %v3308_v0 = vpop.f32.mrb[29].mxu1 }
 0x72f   : > { %6354 = vmatprep.mubr.msk.f32.mxu0 %vm1565_vm2, %v2369_v25  ;;  %v3309_v63 = vadd.f32 %v5888_v61, %v3308_v0 }
 0x730   : > { %6355 = vmatmul.mubr.msk.f32.gmra.mrb[26].mxu0 %vm1565_vm2, %v6348_v24 }
 0x731   : > { %6359 = vmatprep.mubr.msk.f32.mxu0 %vm1565_vm2, %v7492_v51  ;;  %v6432_v1 = vpop.f32.mrb[30].mxu1 }
 0x732   : > { %v3324_v6 = vadd.f32 %v6432_v1, %v5888_v61  ;;  %v3318_v9 = vpop.f32.mrb[31].mxu1 }
 0x734   : > { %6360 = vmatmul.mubr.msk.f32.vlgmr.msra.gmra.mrb[24].mxu0 %vm1565_vm2, %v7490_v50 }
 0x735   : > { %6362 = vmatprep.mubr.msk.f32.mxu0 %vm1565_vm2, %v7496_v53  ;;  %6382 = vmatpush3.msk.msra.mxu0 %vm1284_vm0, %v5861_v23 }
 0x738   : > { %6363 = vmatmul.mubr.msk.f32.gmra.mrb[26].mxu0 %vm1565_vm2, %v7494_v52 }
 0x739   : > { %6383 = vmatprep.mubr.msk.f32.mxu0 %vm1271_vm1, %v7368_v2 }
 0x73c   : > { %6384 = vmatmul.mubr.msk.f32.vlgmr.msra.gmra.mrb[28].mxu0 %vm1271_vm1, %v7371_v3 }
 0x73d   : > { %6386 = vmatprep.mubr.msk.f32.mxu0 %vm1271_vm1, %v7374_v4 }
 0x73f   : > { %v3014_v26 = vpop.xlane.xlu1 %3013 }
 0x740   : > { %6387 = vmatmul.mubr.msk.f32.gmra.mrb[30].mxu0 %vm1271_vm1, %v7387_v5  ;;  %v3011_v50 = vpop.xlane.xlu0 %3010 }
 0x741   : > { %7029 = vrcp.f32 %v3011_v50 }
 0x742   : > { %7031 = vrcp.f32 %v3014_v26 }
 0x743   : > { %v3020_v28 = vpop.xlane.xlu1 %3019 }
 0x744   : > { %v3017_v52 = vpop.xlane.xlu0 %3016 }
 0x745   : > { %7033 = vrcp.f32 %v3017_v52 }
 0x746   : > { %7035 = vrcp.f32 %v3020_v28 }
 0x74b   : > { %v7030_v51 = vpop.eup %7029 }
 0x74c   : > { %v3025_v53 = vmul.f32 %v7030_v51, %v7024_v13  ;;  %v7032_v43 = vpop.eup %7031 }
 0x74d   : > { %v3026_v46 = vmul.f32 %v7032_v43, %v7022_v12 }
 0x74e   : > { %6411 = vmatprep.mubr.msk.f32.mxu0 %vm1683_vm4, %v3025_v53 }
 0x74f   : > { %v7034_v45 = vpop.eup %7033 }
 0x750   : > { %v7036_v47 = vpop.eup %7035  ;;  %v3027_v48 = vmul.f32 %v7034_v45, %v7028_v18 }
 0x751   : > { %v3028_v49 = vmul.f32 %v7036_v47, %v7026_v17 }
 0x80f   : > { %v6385_v29 = vpop.f32.mrb[28].mxu0 }
 0x810   : > { %v2855_v31 = vadd.f32 %v6385_v29, %v5863_v27  ;;  %v2849_v32 = vpop.f32.mrb[29].mxu0 }
 0x811   : > { %v2850_v34 = vadd.f32 %v5863_v27, %v2849_v32 }
 0x813   : > { %v6764_v35 = vpack.c.bf16 %v2855_v31, %v2850_v34  ;;  %v6388_v36 = vpop.f32.mrb[30].mxu0 }
 0x814   : > { %v2865_v38 = vadd.f32 %v6388_v36, %v5863_v27  ;;  %v2859_v39 = vpop.f32.mrb[31].mxu0 }
 0x815   : > { %v2860_v40 = vadd.f32 %v5863_v27, %v2859_v39  ;;  %6765 = vmatprep.subr.bf16.mxu0 %v6764_v35 }
 0x816   : > { %6767 = vmatpush3.bf16.msra.mxu0 %v6764_v35 }
 0x817   : > { %v6768_v41 = vpack.c.bf16 %v2865_v38, %v2860_v40 }
 0x819   : > { %6769 = vmatprep.subr.bf16.mxu0 %v6768_v41 }
 0x81a   : > { %6771 = vmatpush3.bf16.msra.mxu0 %v6768_v41 }
 0x81b   : > { %6417 = vmatprep.subr.mxu0 %v5881_v44 }
 0x81d   : > { %6412 = vmatmul.mubr.msk.f32.vlgmr.msra.gmra.mrb[32].mxu0 %vm1683_vm4, %v3026_v46 }
 0x81e   : > { %6414 = vmatprep.mubr.msk.f32.mxu0 %vm1683_vm4, %v3027_v48  ;;  %6418 = vmatpush3.msra.mxu0 %v5881_v44 }
 0x81f   : > { %6433 = vmatprep.subr.msk.mxu0 %vm1284_vm0, %v5894_v54 }
 0x821   : > { %6415 = vmatmul.mubr.msk.f32.gmra.mrb[34].mxu0 %vm1683_vm4, %v3028_v49 }
 0x8f0   : > { %v6413_v56 = vpop.f32.mrb[32].mxu0 }
 0x8f1   : > { %v3107_v57 = vpop.f32.mrb[33].mxu0 }
 0x8f2   : > { %6419 = vmatprep.mubr.msk.f32.mxu0 %vm1565_vm2, %v3107_v57 }
 0x8f3   : > { %6420 = vmatmul.mubr.msk.f32.vlgmr.msra.gmra.mrb[24].mxu0 %vm1565_vm2, %v6413_v56 }
 0x8f4   : > { %v6416_v58 = vpop.f32.mrb[34].mxu0  ;;  %6434 = vmatpush3.msk.msra.mxu0 %vm1284_vm0, %v5894_v54  ;;  %v5904_v54 = vld [vmem:[%s7195_s24 + $0x3] ss:$0 sm:$0xff] }
 0x8f5   : > { %v3117_v59 = vpop.f32.mrb[35].mxu0 }
 0x8f6   : > { %6422 = vmatprep.mubr.msk.f32.mxu0 %vm1565_vm2, %v3117_v59 }
 0x8f7   : > { %6423 = vmatmul.mubr.msk.f32.gmra.mrb[26].mxu0 %vm1565_vm2, %v6416_v58 }
 0x8f8   : > { %6435 = vmatprep.mubr.msk.f32.mxu0 %vm1271_vm1, %v7368_v2  ;;  %v3319_v2 = vadd.f32 %v5888_v61, %v3318_v9 }
 0x8fb   : > { %6436 = vmatmul.mubr.msk.f32.vlgmr.msra.gmra.mrb[36].mxu0 %vm1271_vm1, %v7371_v3 }
 0x8fc   : > { %6438 = vmatprep.mubr.msk.f32.mxu0 %vm1271_vm1, %v7374_v4 }
 0x8ff   : > { %6439 = vmatmul.mubr.msk.f32.gmra.mrb[38].mxu0 %vm1271_vm1, %v7387_v5 }
 0x900   : > { %6457 = vmatprep.mubr.msk.f32.mxu0 %vm1565_vm2, %v3309_v63  ;;  %v5922_v63 = vld [vmem:[%s7200_s30 + $0x18] sm:$0xff] }
 0x9ce   : > { %v6437_v8 = vpop.f32.mrb[36].mxu0 }
 0x9cf   : > { %v3412_v11 = vadd.f32 %v6437_v8, %v5896_v10  ;;  %v3406_v7 = vpop.f32.mrb[37].mxu0 }
 0x9d0   : > { %v3407_v12 = vadd.f32 %v5896_v10, %v3406_v7 }
 0x9d2   : > { %v6772_v13 = vpack.c.bf16 %v3412_v11, %v3407_v12  ;;  %v6440_v14 = vpop.f32.mrb[38].mxu0 }
 0x9d3   : > { %v3422_v16 = vadd.f32 %v6440_v14, %v5896_v10  ;;  %v3416_v17 = vpop.f32.mrb[39].mxu0 }
 0x9d4   : > { %6774 = vmatprep.subr.msk.bf16.mxu0 %vm7401_vm3, %v6772_v13  ;;  %v3417_v18 = vadd.f32 %v5896_v10, %v3416_v17 }
 0x9d5   : > { %6777 = vmatpush3.bf16.xpose.msk.msra.mxu0 %vm7401_vm3, %v6772_v13 }
 0x9d6   : > { %v6778_v19 = vpack.c.bf16 %v3422_v16, %v3417_v18 }
 0x9d8   : > { %6780 = vmatprep.subr.msk.bf16.mxu0 %vm7401_vm3, %v6778_v19 }
 0x9dd   : > { %6783 = vmatpush3.bf16.xpose.msk.msra.mxu0 %vm7401_vm3, %v6778_v19 }
 0x9de   : > { %6477 = vmatprep.subr.mxu0 %v5922_v63 }
 0x9e4   : > { %6458 = vmatmul.mubr.msk.f32.vlgmr.msra.gmra.mrb[40].mxu0 %vm1565_vm2, %v3314_v62 }
 0x9e5   : > { %6460 = vmatprep.mubr.msk.f32.mxu0 %vm1565_vm2, %v3319_v2  ;;  %6478 = vmatpush3.msra.mxu0 %v5922_v63 }
 0x9e8   : > { %6461 = vmatmul.mubr.msk.f32.gmra.mrb[42].mxu0 %vm1565_vm2, %v3324_v6 }
 0xab7   : > { %v6459_v15 = vpop.f32.mrb[40].mxu0 }
 0xab8   : > { %v3633_v21 = vmul.f32 0.35355338, %v6459_v15  ;;  %v3613_v22 = vpop.f32.mrb[41].mxu0 }
 0xab9   : > { %v3632_v23 = vmul.f32 0.35355338, %v3613_v22  ;;  %v7073_v22 = vld [vmem:[%s7365_s11 + $0x8] sm:$0xff] }
 0xaba   : > { %v3637_v24 = vadd.f32 %v3633_v21, %v7432_v33  ;;  %v5927_v21 = vld [vmem:[%s7205_s6] ss:$0 sm:$0xff] }
 0xabb   : > { %v6462_v25 = vpop.f32.mrb[42].mxu0  ;;  %v3636_v50 = vadd.f32 %v3632_v23, %v7429_v30  ;;  %v6445_v30 = vpop.f32.mrb[32].mxu1 }
 0xabc   : > { %v3635_v51 = vmul.f32 0.35355338, %v6462_v25  ;;  %v3623_v53 = vpop.f32.mrb[43].mxu0  ;;  %v3643_v26 = vsel %vm1683_vm4, %v3637_v24, -inf  ;;  %v3510_v55 = vadd.f32 %v6445_v30, %v5904_v54  ;;  %v3504_v56 = vpop.f32.mrb[33].mxu1  ;;  %v7074_v25 = vld [vmem:[%s7365_s11] sm:$0xff] }
 0xabd   : > { %v3634_v3 = vmul.f32 0.35355338, %v3623_v53  ;;  %3644 = vmax.xlane.f32.xlu1 %v3643_v26  ;;  %v3640_v4 = vsel %vm1683_vm4, %v3636_v50, -inf  ;;  %v3505_v57 = vadd.f32 %v5904_v54, %v3504_v56  ;;  %v6448_v59 = vpop.f32.mrb[34].mxu1 }
 0xabe   : > { %3641 = vmax.xlane.f32.xlu0 %v3640_v4  ;;  %v3639_v5 = vadd.f32 %v3635_v51, %v7441_v42  ;;  %v3514_v60 = vpop.f32.mrb[35].mxu1  ;;  %v3520_v61 = vadd.f32 %v6448_v59, %v5904_v54  ;;  %v4084_v59 = vld [vmem:[%s7220_s27] sm:$0xff] }
 0xabf   : > { %v3638_v52 = vadd.f32 %v3634_v3, %v7436_v37  ;;  %v6784_v58 = vpack.c.bf16 %v3510_v55, %v3505_v57  ;;  %v3515_v62 = vadd.f32 %v5904_v54, %v3514_v60  ;;  %v7075_v3 = vld [vmem:[%s7365_s11 + $0x18] sm:$0xff]  ;;  %v4085_v60 = vld [vmem:[%s7220_s27 + $0x8] sm:$0xff] }
 0xac0   : > { %v3649_v27 = vsel %vm1683_vm4, %v3639_v5, -inf }
 0xac1   : > { %3650 = vmax.xlane.f32.xlu1 %v3649_v27  ;;  %v3646_v33 = vsel %vm1683_vm4, %v3638_v52, -inf  ;;  %6785 = vmatprep.subr.bf16.mxu1 %v6784_v58  ;;  %v6788_v0 = vpack.c.bf16 %v3520_v61, %v3515_v62  ;;  %v7076_v27 = vld [vmem:[%s7365_s11 + $0x10] sm:$0xff]  ;;  %v6792_v61 = vpack.c.bf16 %v4085_v60, %v4084_v59  ;;  %v4083_v59 = vld [vmem:[%s7970_s18] sm:$0xf]  ;;  %s7976_s11 = sld [smem:[#allocation9_spill]]  ;;  %s7977_s18 = sld [smem:[#allocation11_spill]] }
 0xac2   : > { %3647 = vmax.xlane.f32.xlu0 %v3646_v33  ;;  %6787 = vmatpush3.bf16.msra.mxu1 %v6784_v58  ;;  %v3974_v58 = vld [vmem:[%s7155_s17] sm:$0xf] }
 0xac3   : > { %6789 = vmatprep.subr.bf16.mxu1 %v6788_v0 }
 0xac6   : > { %6791 = vmatpush3.bf16.msra.mxu1 %v6788_v0 }
 0xac7   : > { %6485 = vmatprep.subr.msk.mxu1 %vm1284_vm0, %v3974_v58 }
 0xb4a   : > { %v3645_v28 = vpop.xlane.xlu1 %3644 }
 0xb4b   : > { %v3653_v29 = vsub.f32 %v3637_v24, %v3645_v28  ;;  %v3642_v31 = vpop.xlane.xlu0 %3641 }
 0xb4c   : > { %v3652_v32 = vsub.f32 %v3636_v50, %v3642_v31 }
 0xb4d   : > { %v3658_v34 = vmul.f32 1.442695, %v3653_v29 }
 0xb4e   : > { %v3656_v35 = vmul.f32 1.442695, %v3652_v32  ;;  %v3651_v36 = vpop.xlane.xlu1 %3650 }
 0xb4f   : > { %7037 = vpow2.f32 %v3658_v34  ;;  %v3655_v38 = vsub.f32 %v3639_v5, %v3651_v36  ;;  %v3648_v39 = vpop.xlane.xlu0 %3647 }
 0xb50   : > { %7039 = vpow2.f32 %v3656_v35  ;;  %v3654_v42 = vsub.f32 %v3638_v52, %v3648_v39 }
 0xb51   : > { %v3662_v37 = vmul.f32 1.442695, %v3655_v38 }
 0xb52   : > { %v3660_v40 = vmul.f32 1.442695, %v3654_v42 }
 0xb53   : > { %7041 = vpow2.f32 %v3662_v37 }
 0xb54   : > { %7043 = vpow2.f32 %v3660_v40 }
 0xb59   : > { %v7038_v41 = vpop.eup %7037 }
 0xb5a   : > { %v7040_v43 = vpop.eup %7039  ;;  %v3667_v44 = vsel %vm1683_vm4, %v7038_v41, 0.0 }
 0xb5b   : > { %3668 = vadd.xlane.f32.xlu1 %v3667_v44  ;;  %v3664_v45 = vsel %vm1683_vm4, %v7040_v43, 0.0 }
 0xb5c   : > { %3665 = vadd.xlane.f32.xlu0 %v3664_v45 }
 0xb5d   : > { %v7042_v46 = vpop.eup %7041 }
 0xb5e   : > { %v7044_v47 = vpop.eup %7043  ;;  %v3673_v48 = vsel %vm1683_vm4, %v7042_v46, 0.0 }
 0xb5f   : > { %3674 = vadd.xlane.f32.xlu1 %v3673_v48  ;;  %v3670_v49 = vsel %vm1683_vm4, %v7044_v47, 0.0 }
 0xb60   : > { %3671 = vadd.xlane.f32.xlu0 %v3670_v49 }
 0xbe8   : > { %v3669_v1 = vpop.xlane.xlu1 %3668 }
 0xbe9   : > { %7045 = vrcp.f32 %v3669_v1  ;;  %v3666_v6 = vpop.xlane.xlu0 %3665 }
 0xbea   : > { %7047 = vrcp.f32 %v3666_v6 }
 0xbec   : > { %v3675_v9 = vpop.xlane.xlu1 %3674 }
 0xbed   : > { %7049 = vrcp.f32 %v3675_v9  ;;  %v3672_v2 = vpop.xlane.xlu0 %3671 }
 0xbee   : > { %7051 = vrcp.f32 %v3672_v2 }
 0xbf3   : > { %v7046_v10 = vpop.eup %7045 }
 0xbf4   : > { %v7048_v8 = vpop.eup %7047  ;;  %v3681_v7 = vmul.f32 %v7046_v10, %v7038_v41 }
 0xbf5   : > { %v3680_v11 = vmul.f32 %v7048_v8, %v7040_v43 }
 0xbf7   : > { %v7050_v12 = vpop.eup %7049  ;;  %6471 = vmatprep.mubr.msk.f32.mxu1 %vm1683_vm4, %v3680_v11 }
 0xbf8   : > { %v7052_v13 = vpop.eup %7051  ;;  %6472 = vmatmul.mubr.msk.f32.vlgmr.msra.gmra.mrb[36].mxu1 %vm1683_vm4, %v3681_v7  ;;  %v3683_v16 = vmul.f32 %v7050_v12, %v7042_v46 }
 0xbf9   : > { %v3682_v14 = vmul.f32 %v7052_v13, %v7044_v47  ;;  %6486 = vmatpush3.msk.msra.mxu1 %vm1284_vm0, %v3974_v58 }
 0xbfa   : > { %6793 = vmatprep.subr.bf16.mxu1 %v6792_v61 }
 0xbfb   : > { %6474 = vmatprep.mubr.msk.f32.mxu1 %vm1683_vm4, %v3682_v14  ;;  %v5928_v14 = vld [vmem:[%s7210_s12] ss:$0 sm:$0xff] }
 0xbfc   : > { %6475 = vmatmul.mubr.msk.f32.gmra.mrb[38].mxu1 %vm1683_vm4, %v3683_v16 }
 0xccb   : > { %v6473_v17 = vpop.f32.mrb[36].mxu1 }
 0xccc   : > { %v3762_v18 = vpop.f32.mrb[37].mxu1 }
 0xccd   : > { %6479 = vmatprep.mubr.msk.f32.mxu0 %vm1565_vm2, %v3762_v18 }
 0xcce   : > { %6480 = vmatmul.mubr.msk.f32.vlgmr.msra.gmra.mrb[24].mxu0 %vm1565_vm2, %v6473_v17 }
 0xccf   : > { %v6476_v19 = vpop.f32.mrb[38].mxu1 }
 0xcd0   : > { %v3772_v20 = vpop.f32.mrb[39].mxu1 }
 0xcd1   : > { %6482 = vmatprep.mubr.msk.f32.mxu0 %vm1565_vm2, %v3772_v20  ;;  %v5929_v20 = vld [vmem:[%s7215_s20] ss:$0 sm:$0xff] }
 0xcd2   : > { %6483 = vmatmul.mubr.msk.f32.gmra.mrb[26].mxu0 %vm1565_vm2, %v6476_v19 }
 0xda1   : > { %v6481_v15 = vpop.f32.mrb[24].mxu0 }
 0xda2   : > { %v3885_v23 = vadd.f32 %v7073_v22, %v6481_v15  ;;  %v3861_v24 = vpop.f32.mrb[25].mxu0 }
 0xda3   : > { %v3884_v50 = vadd.f32 %v7074_v25, %v3861_v24 }
 0xda4   : > { %v3896_v51 = vadd.f32 %v5927_v21, %v3885_v23 }
 0xda5   : > { %v6484_v53 = vpop.f32.mrb[26].mxu0  ;;  %v3895_v26 = vadd.f32 %v5927_v21, %v3884_v50 }
 0xda6   : > { %v3887_v4 = vadd.f32 %v7075_v3, %v6484_v53  ;;  %v3871_v5 = vpop.f32.mrb[27].mxu0  ;;  %v3902_v52 = vsel %vm1271_vm1, %v3896_v51, 0.0 }
 0xda7   : > { %v3886_v33 = vadd.f32 %v7076_v27, %v3871_v5  ;;  %3903 = vadd.xlane.f32.xlu1 %v3902_v52  ;;  %v3899_v30 = vsel %vm1271_vm1, %v3895_v26, 0.0  ;;  %v4087_v5 = vld [vmem:[%s7220_s27 + $0x18] sm:$0xff]  ;;  %v4075_v27 = vld [vmem:[%s7968_s15] sm:$0xff] }
 0xda8   : > { %3900 = vadd.xlane.f32.xlu0 %v3899_v30  ;;  %v3898_v28 = vadd.f32 %v5927_v21, %v3887_v4  ;;  %v4086_v4 = vld [vmem:[%s7220_s27 + $0x10] sm:$0xff]  ;;  %v4076_v30 = vld [vmem:[%s7968_s15 + $0x8] sm:$0xff] }
 0xda9   : > { %v3897_v29 = vadd.f32 %v5927_v21, %v3886_v33  ;;  %v6796_v52 = vpack.c.bf16 %v4087_v5, %v4086_v4  ;;  %v4786_v5 = vld [vmem:[%s7974_s2] sm:$0xff] }
 0xdaa   : > { %v3908_v31 = vsel %vm1271_vm1, %v3898_v28, 0.0 }
 0xdab   : > { %3909 = vadd.xlane.f32.xlu1 %v3908_v31  ;;  %v3905_v32 = vsel %vm1271_vm1, %v3897_v29, 0.0 }
 0xdac   : > { %3906 = vadd.xlane.f32.xlu0 %v3905_v32  ;;  %v4077_v32 = vld [vmem:[%s7968_s15 + $0x10] sm:$0xff] }
 0xe34   : > { %v3904_v34 = vpop.xlane.xlu1 %3903 }
 0xe35   : > { %v3913_v35 = vmul.f32 0.25, %v3904_v34  ;;  %v3901_v36 = vpop.xlane.xlu0 %3900 }
 0xe36   : > { %v3912_v38 = vmul.f32 0.25, %v3901_v36 }
 0xe37   : > { %v3917_v39 = vsub.f32 %v3896_v51, %v3913_v35  ;;  %v4078_v35 = vld [vmem:[%s7968_s15 + $0x18] sm:$0xff] }
 0xe38   : > { %v3916_v42 = vsub.f32 %v3895_v26, %v3912_v38  ;;  %v3910_v37 = vpop.xlane.xlu1 %3909 }
 0xe39   : > { %v3915_v40 = vmul.f32 0.25, %v3910_v37  ;;  %v3907_v41 = vpop.xlane.xlu0 %3906  ;;  %v3921_v43 = vmul.f32 %v3917_v39, %v3917_v39  ;;  %v7128_v37 = vmov 0.0  }
 0xe3a   : > { %v3914_v44 = vmul.f32 0.25, %v3907_v41  ;;  %v3920_v45 = vmul.f32 %v3916_v42, %v3916_v42  ;;  %6515 = vmatprep.mubr.msk.f32.mxu0 %vm7127_vm5, %v7128_v37  ;;  %v4266_v41 = vld [vmem:[%s7969_s16 + $0x8] sm:$0xff] }
 0xe3b   : > { %v3919_v46 = vsub.f32 %v3898_v28, %v3915_v40  ;;  %v3927_v47 = vsel %vm1271_vm1, %v3921_v43, 0.0  ;;  %v4265_v40 = vld [vmem:[%s7969_s16] sm:$0xff] }
 0xe3c   : > { %v3918_v48 = vsub.f32 %v3897_v29, %v3914_v44  ;;  %3928 = vadd.xlane.f32.xlu1 %v3927_v47  ;;  %v3924_v49 = vsel %vm1271_vm1, %v3920_v45, 0.0  ;;  %v6807_v43 = vpack.c.bf16 %v4266_v41, %v4265_v40  ;;  %v4267_v44 = vld [vmem:[%s7969_s16 + $0x10] sm:$0xff]  ;;  %v4268_v45 = vld [vmem:[%s7969_s16 + $0x18] sm:$0xff]  ;;  %v5957_v40 = vld [vmem:[%s7977_s18] ss:$0 sm:$0xff] }
 0xe3d   : > { %3925 = vadd.xlane.f32.xlu0 %v3924_v49  ;;  %v3923_v54 = vmul.f32 %v3919_v46, %v3919_v46  ;;  %v5948_v41 = vld [vmem:[%s7976_s11 + $0x1] ss:$0 sm:$0xff] }
 0xe3e   : > { %v3922_v55 = vmul.f32 %v3918_v48, %v3918_v48 }
 0xe3f   : > { %v3933_v56 = vsel %vm1271_vm1, %v3923_v54, 0.0 }
 0xe40   : > { %3934 = vadd.xlane.f32.xlu1 %v3933_v56  ;;  %v3930_v57 = vsel %vm1271_vm1, %v3922_v55, 0.0  ;;  %v5943_v56 = vld [vmem:[%s7969_s16 + $0x20] sm:$0xff] }
 0xe41   : > { %3931 = vadd.xlane.f32.xlu0 %v3930_v57  ;;  %v5944_v57 = vld [vmem:[%s7969_s16 + $0x28] sm:$0xff] }
 0xe42   : > { %v6813_v60 = vpack.c.bf16 %v5944_v57, %v5943_v56 }
 0xec9   : > { %v3929_v62 = vpop.xlane.xlu1 %3928 }
 0xeca   : > { %v3937_v0 = vmul.f32 0.25, %v3929_v62  ;;  %v3926_v63 = vpop.xlane.xlu0 %3925  ;;  %v5946_v62 = vld [vmem:[%s7969_s16 + $0x38] sm:$0xff] }
 0xecb   : > { %v3936_v1 = vmul.f32 0.25, %v3926_v63  ;;  %v5950_v63 = vld [vmem:[%s7969_s16 + $0x40] sm:$0xff] }
 0xecc   : > { %v3941_v6 = vadd.f32 1e-05, %v3937_v0 }
 0xecd   : > { %v3940_v9 = vadd.f32 1e-05, %v3936_v1  ;;  %v3935_v2 = vpop.xlane.xlu1 %3934  ;;  %v5951_v1 = vld [vmem:[%s7969_s16 + $0x48] sm:$0xff] }
 0xece   : > { %7053 = vrsqrt.f32 %v3941_v6  ;;  %v3939_v10 = vmul.f32 0.25, %v3935_v2  ;;  %v3932_v8 = vpop.xlane.xlu0 %3931  ;;  %v5959_v6 = vld [vmem:[%s7971_s22 + $0x20] sm:$0xff] }
 0xecf   : > { %7055 = vrsqrt.f32 %v3940_v9  ;;  %v3938_v11 = vmul.f32 0.25, %v3932_v8  ;;  %v5960_v9 = vld [vmem:[%s7971_s22 + $0x28] sm:$0xff]  ;;  %v5939_v2 = vld [vmem:[%s7972_s23] ss:$0 sm:$0xff]  ;;  %v6819_v8 = vpack.c.bf16 %v5951_v1, %v5950_v63  ;;  %s7978_s23 = sld [smem:[#allocation17_spill]] }
 0xed0   : > { %v3943_v7 = vadd.f32 1e-05, %v3939_v10 }
 0xed1   : > { %v3942_v12 = vadd.f32 1e-05, %v3938_v11  ;;  %v6831_v11 = vpack.c.bf16 %v5960_v9, %v5959_v6  ;;  %v5955_v6 = vld [vmem:[%s7976_s11 + $0x2] ss:$0 sm:$0xff] }
 0xed2   : > { %7057 = vrsqrt.f32 %v3943_v7  ;;  %v5952_v7 = vld [vmem:[%s7969_s16 + $0x50] sm:$0xff] }
 0xed3   : > { %7059 = vrsqrt.f32 %v3942_v12 }
 0xed8   : > { %v7054_v13 = vpop.eup %7053 }
 0xed9   : > { %v7056_v16 = vpop.eup %7055  ;;  %v3949_v17 = vmul.f32 %v7054_v13, %v3917_v39 }
 0xeda   : > { %v3948_v18 = vmul.f32 %v7056_v16, %v3916_v42  ;;  %v7126_v42 = vmov 0.0|0.0   ;;  %v5961_v16 = vld [vmem:[%s7971_s22 + $0x30] sm:$0xff] }
 0xedb   : > { %v3960_v19 = vmul.f32 %v5928_v14, %v3949_v17  ;;  %6800 = vmatprep.subr.bf16.mxu0 %v7126_v42  ;;  %v5962_v17 = vld [vmem:[%s7971_s22 + $0x38] sm:$0xff] }
 0xedc   : > { %v7058_v15 = vpop.eup %7057  ;;  %v3959_v21 = vmul.f32 %v5928_v14, %v3948_v18 }
 0xedd   : > { %v7060_v22 = vpop.eup %7059  ;;  %v3951_v23 = vmul.f32 %v7058_v15, %v3919_v46  ;;  %v3971_v50 = vadd.f32 %v5929_v20, %v3960_v19  ;;  %v6810_v46 = vpack.c.bf16 %v4268_v45, %v4267_v44  ;;  %v6834_v19 = vpack.c.bf16 %v5962_v17, %v5961_v16  ;;  %v4516_v15 = vld [vmem:[%s7971_s22 + $0x8] sm:$0xff]  ;;  %v4873_v17 = vld [vmem:[%s7975_s0 + $0x10] sm:$0xff] }
 0xede   : > { %v3970_v24 = vadd.f32 %v5929_v20, %v3959_v21  ;;  %v3950_v25 = vmul.f32 %v7060_v22, %v3918_v48  ;;  %v5966_v21 = vld [vmem:[%s7971_s22 + $0x40] sm:$0xff]  ;;  %v5967_v22 = vld [vmem:[%s7971_s22 + $0x48] sm:$0xff] }
 0xedf   : > { %v3962_v51 = vmul.f32 %v5928_v14, %v3951_v23 }
 0xee0   : > { %6487 = vmatprep.mubr.msk.f32.mxu1 %vm1271_vm1, %v3970_v24  ;;  %v3961_v53 = vmul.f32 %v5928_v14, %v3950_v25  ;;  %v5953_v14 = vld [vmem:[%s7969_s16 + $0x58] sm:$0xff]  ;;  %v7762_v24 = vld [vmem:[%s1249_s1] sm:$0xf]  ;;  %v4517_v25 = vld [vmem:[%s7971_s22 + $0x10] sm:$0xff]  ;;  %s7980_s1 = sld [smem:[#allocation15_spill]] }
 0xee1   : > { %6488 = vmatmul.mubr.msk.f32.vlgmr.msra.gmra.mrb[40].mxu1 %vm1271_vm1, %v3971_v50  ;;  %v3973_v3 = vadd.f32 %v5929_v20, %v3962_v51  ;;  %v6822_v18 = vpack.c.bf16 %v5953_v14, %v5952_v7  ;;  %v4518_v50 = vld [vmem:[%s7971_s22 + $0x18] sm:$0xff]  ;;  %v6837_v51 = vpack.c.bf16 %v5967_v22, %v5966_v21  ;;  %v4959_v21 = vld [vmem:[%s7978_s23 + $0x10] sm:$0xff] }
 0xee2   : > { %v3972_v26 = vadd.f32 %v5929_v20, %v3961_v53  ;;  %6795 = vmatpush3.bf16.msra.mxu1 %v6792_v61  ;;  %v5945_v61 = vld [vmem:[%s7969_s16 + $0x30] sm:$0xff]  ;;  %v4515_v20 = vld [vmem:[%s7971_s22] sm:$0xff] }
 0xee3   : > { %6797 = vmatprep.subr.bf16.mxu1 %v6796_v52  ;;  %v6816_v0 = vpack.c.bf16 %v5946_v62, %v5945_v61  ;;  %v6825_v23 = vpack.c.bf16 %v4516_v15, %v4515_v20  ;;  %v5968_v53 = vld [vmem:[%s7971_s22 + $0x50] sm:$0xff]  ;;  %v4957_v20 = vld [vmem:[%s7978_s23] sm:$0xff]  ;;  %v4958_v15 = vld [vmem:[%s7978_s23 + $0x8] sm:$0xff] }
 0xee4   : > { %6490 = vmatprep.mubr.msk.f32.mxu1 %vm1271_vm1, %v3972_v26  ;;  %v5969_v26 = vld [vmem:[%s7971_s22 + $0x58] sm:$0xff]  ;;  %v6855_v22 = vpack.c.bf16 %v4958_v15, %v4957_v20 }
 0xee5   : > { %6491 = vmatmul.mubr.msk.f32.gmra.mrb[42].mxu1 %vm1271_vm1, %v3973_v3  ;;  %v6828_v3 = vpack.c.bf16 %v4518_v50, %v4517_v25  ;;  %v6840_v4 = vpack.c.bf16 %v5969_v26, %v5968_v53  ;;  %v4961_v25 = vld [vmem:[%s7978_s23 + $0x20] sm:$0xff]  ;;  %v4962_v50 = vld [vmem:[%s7978_s23 + $0x28] sm:$0xff]  ;;  %v4963_v53 = vld [vmem:[%s7978_s23 + $0x30] sm:$0xff] }
 0xee6   : > { %6799 = vmatpush3.bf16.msra.mxu1 %v6796_v52  ;;  %v4787_v52 = vld [vmem:[%s7974_s2 + $0x8] sm:$0xff]  ;;  %v4964_v26 = vld [vmem:[%s7978_s23 + $0x38] sm:$0xff] }
 0xee7   : > { %6806 = vmatprep.subr.bf16.mxu1 %v7126_v42 }
 0xfb4   : > { %v6489_v33 = vpop.f32.mrb[40].mxu1 }
 0xfb5   : > { %v4056_v28 = vpop.f32.mrb[41].mxu1  ;;  %v4080_v31 = vmul.f32 %v6489_v33, %v4076_v30  ;;  %v6843_v33 = vpack.c.bf16 %v4787_v52, %v4786_v5  ;;  %v4789_v30 = vld [vmem:[%s7974_s2 + $0x18] sm:$0xff]  ;;  %v4966_v5 = vld [vmem:[%s7978_s23 + $0x48] sm:$0xff] }
 0xfb6   : > { %v4079_v29 = vmul.f32 %v4075_v27, %v4056_v28  ;;  %v4788_v27 = vld [vmem:[%s7974_s2 + $0x10] sm:$0xff]  ;;  %s7986_s2 = sld [smem:[#allocation21_spill]] }
 0xfb7   : > { %v6846_v28 = vpack.c.bf16 %v4789_v30, %v4788_v27  ;;  %v4967_v27 = vld [vmem:[%s7978_s23 + $0x50] sm:$0xff] }
 0xfb8   : > { %v6492_v34 = vpop.f32.mrb[42].mxu1  ;;  %6501 = vmatprep.mubr.msk.f32.mxu1 %vm1683_vm4, %v4079_v29  ;;  %v4871_v29 = vld [vmem:[%s7975_s0] sm:$0xff] }
 0xfb9   : > { %v4066_v36 = vpop.f32.mrb[43].mxu1  ;;  %6502 = vmatmul.mubr.msk.f32.vlgmr.msra.gmra.mrb[44].mxu1 %vm1683_vm4, %v4080_v31  ;;  %v4082_v39 = vmul.f32 %v6492_v34, %v4078_v35  ;;  %v4872_v31 = vld [vmem:[%s7975_s0 + $0x8] sm:$0xff] }
 0xfba   : > { %v4081_v38 = vmul.f32 %v4077_v32, %v4066_v36  ;;  %6808 = vmatpush3.bf16.msra.mxu1 %v6807_v43  ;;  %v6849_v32 = vpack.c.bf16 %v4872_v31, %v4871_v29  ;;  %v5964_v43 = vld [vmem:[%s7977_s18 + $0x1] ss:$0 sm:$0xff]  ;;  %v4970_v29 = vld [vmem:[%s7978_s23 + $0x68] sm:$0xff] }
 0xfbb   : > { %6809 = vmatprep.subr.bf16.mxu1 %v7126_v42  ;;  %v6916_v45 = vadd.f32 %v5964_v43, %v5948_v41  ;;  %v5975_v43 = vld [vmem:[%s7980_s1] ss:$0 sm:$0xff]  ;;  %s7985_s1 = sld [smem:[#allocation19_spill]] }
 0xfbc   : > { %6504 = vmatprep.mubr.msk.f32.mxu1 %vm1683_vm4, %v4081_v38 }
 0xfbd   : > { %6505 = vmatmul.mubr.msk.f32.gmra.mrb[46].mxu1 %vm1683_vm4, %v4082_v39  ;;  %v5941_v39 = vld [vmem:[%s7976_s11] ss:$0 sm:$0xff] }
 0xfbe   : > { %6526 = vmatprep.mubr.msk.f32.mxu1 %vm7127_vm5, %v7128_v37  ;;  %6811 = vmatpush3.bf16.msra.mxu1 %v6810_v46  ;;  %v6914_v44 = vadd.f32 %v5957_v40, %v5941_v39  ;;  %v4971_v39 = vld [vmem:[%s7978_s23 + $0x70] sm:$0xff]  ;;  %v4972_v40 = vld [vmem:[%s7978_s23 + $0x78] sm:$0xff] }
 0xfbf   : > { %6818 = vmatprep.subr.bf16.mxu1 %v7126_v42  ;;  %v6876_v41 = vpack.c.bf16 %v4972_v40, %v4971_v39 }
0x108c   : > { %v6503_v47 = vpop.f32.mrb[44].mxu1 }
0x108d   : > { %v4166_v48 = vpop.f32.mrb[45].mxu1 }
0x108e   : > { %v6801_v49 = vpack.c.bf16 %v6503_v47, %v4166_v48 }
0x1090   : > { %v6506_v54 = vpop.f32.mrb[46].mxu1  ;;  %6802 = vmatpush3.bf16.msra.mxu0 %v6801_v49 }
0x1091   : > { %v4176_v55 = vpop.f32.mrb[47].mxu1  ;;  %6803 = vmatprep.subr.bf16.mxu0 %v7126_v42 }
0x1092   : > { %v6804_v58 = vpack.c.bf16 %v6506_v54, %v4176_v55 }
0x1094   : > { %6805 = vmatpush3.bf16.msra.mxu0 %v6804_v58 }
0x1095   : > { %6812 = vmatprep.subr.bf16.mxu0 %v7126_v42 }
0x1097   : > { %6516 = vmatmul.mubr.msk.f32.vlgmr.msra.gmra.mrb[44].mxu0 %vm1683_vm4, %v4083_v59 }
0x1098   : > { %6814 = vmatpush3.bf16.msra.mxu0 %v6813_v60  ;;  %6537 = vmatprep.mubr.msk.f32.mxu0 %vm7127_vm5, %v7128_v37 }
0x1099   : > { %6815 = vmatprep.subr.bf16.mxu0 %v7126_v42 }
0x109c   : > { %6817 = vmatpush3.bf16.msra.mxu0 %v6816_v0  ;;  %v5971_v0 = vld [vmem:[%s7977_s18 + $0x2] ss:$0 sm:$0xff] }
0x109d   : > { %6830 = vmatprep.subr.bf16.mxu0 %v7126_v42 }
0x116a   : > { %v4261_v10 = vpop.f32.mrb[44].mxu0 }
0x116b   : > { %v4262_v12 = vadd.f32 %v5939_v2, %v4261_v10  ;;  %v6517_v13 = vpop.f32.mrb[45].mxu0 }
0x116d   : > { %6527 = vmatmul.mubr.msk.f32.vlgmr.msra.gmra.mrb[48].mxu1 %vm1683_vm4, %v4262_v12  ;;  %6538 = vmatmul.mubr.msk.f32.vlgmr.msra.gmra.mrb[46].mxu0 %vm1683_vm4, %v4262_v12 }
0x116e   : > { %6820 = vmatpush3.bf16.msra.mxu1 %v6819_v8  ;;  %6832 = vmatpush3.bf16.msra.mxu0 %v6831_v11 }
0x116f   : > { %6821 = vmatprep.subr.bf16.mxu1 %v7126_v42  ;;  %6833 = vmatprep.subr.bf16.mxu0 %v7126_v42 }
0x1170   : > { %6548 = vmatprep.mubr.msk.f32.mxu1 %vm7127_vm5, %v7128_v37  ;;  %6570 = vmatprep.mubr.msk.f32.mxu0 %vm7127_vm5, %v7128_v37 }
0x1172   : > { %6823 = vmatpush3.bf16.msra.mxu1 %v6822_v18  ;;  %6835 = vmatpush3.bf16.msra.mxu0 %v6834_v19  ;;  %v4874_v18 = vld [vmem:[%s7975_s0 + $0x18] sm:$0xff]  ;;  %s7982_s0 = sld [smem:[#allocation16_spill]] }
0x1173   : > { %6824 = vmatprep.subr.bf16.mxu1 %v7126_v42  ;;  %6836 = vmatprep.subr.bf16.mxu0 %v7126_v42  ;;  %v6852_v19 = vpack.c.bf16 %v4874_v18, %v4873_v17 }
0x1175   : > { %6549 = vmatmul.mubr.msk.f32.vlgmr.msra.gmra.mrb[50].mxu1 %vm1683_vm4, %v4262_v12  ;;  %6571 = vmatmul.mubr.msk.f32.vlgmr.msra.gmra.mrb[46].mxu0 %vm1683_vm4, %v7762_v24 }
0x1176   : > { %6826 = vmatpush3.bf16.msra.mxu1 %v6825_v23  ;;  %6559 = vmatprep.mubr.msk.f32.mxu1 %vm7127_vm5, %v7128_v37  ;;  %v4960_v23 = vld [vmem:[%s7978_s23 + $0x18] sm:$0xff] }
0x1177   : > { %6827 = vmatprep.subr.bf16.mxu1 %v7126_v42  ;;  %6838 = vmatpush3.bf16.msra.mxu0 %v6837_v51  ;;  %v6861_v51 = vpack.c.bf16 %v4962_v50, %v4961_v25 }
0x1178   : > { %6839 = vmatprep.subr.bf16.mxu0 %v7126_v42  ;;  %6581 = vmatprep.mubr.msk.f32.mxu0 %vm7127_vm5, %v7128_v37 }
0x117a   : > { %6829 = vmatpush3.bf16.msra.mxu1 %v6828_v3  ;;  %v6864_v3 = vpack.c.bf16 %v4964_v26, %v4963_v53 }
0x117b   : > { %6841 = vmatpush3.bf16.msra.mxu0 %v6840_v4  ;;  %6842 = vmatprep.subr.bf16.mxu1 %v7126_v42  ;;  %v4965_v4 = vld [vmem:[%s7978_s23 + $0x40] sm:$0xff] }
0x117c   : > { %6848 = vmatprep.subr.bf16.mxu0 %v7126_v42  ;;  %v6867_v52 = vpack.c.bf16 %v4966_v5, %v4965_v4 }
0x117d   : > { %6560 = vmatmul.mubr.msk.f32.vlgmr.msra.gmra.mrb[48].mxu1 %vm1683_vm4, %v7762_v24 }
0x117e   : > { %6582 = vmatmul.mubr.msk.f32.vlgmr.msra.gmra.mrb[48].mxu0 %vm1683_vm4, %v7762_v24  ;;  %6592 = vmatprep.mubr.msk.f32.mxu1 %vm7127_vm5, %v7128_v37 }
0x117f   : > { %6603 = vmatprep.mubr.msk.f32.mxu0 %vm7127_vm5, %v7128_v37  ;;  %6844 = vmatpush3.bf16.msra.mxu1 %v6843_v33  ;;  %v4968_v33 = vld [vmem:[%s7978_s23 + $0x58] sm:$0xff] }
0x1180   : > { %6845 = vmatprep.subr.bf16.mxu1 %v7126_v42  ;;  %6850 = vmatpush3.bf16.msra.mxu0 %v6849_v32  ;;  %v6870_v30 = vpack.c.bf16 %v4968_v33, %v4967_v27  ;;  %v5973_v32 = vld [vmem:[%s7979_s26] ss:$0 sm:$0xff]  ;;  %s7983_s26 = sld [smem:[#allocation18_spill]]  ;;  %v5324_v27 = vld [vmem:[%s7987_s3 + $0x8] sm:$0xff] }
0x1181   : > { %6851 = vmatprep.subr.bf16.mxu0 %v7126_v42 }
0x1183   : > { %6847 = vmatpush3.bf16.msra.mxu1 %v6846_v28  ;;  %v4969_v28 = vld [vmem:[%s7978_s23 + $0x60] sm:$0xff] }
0x1184   : > { %6854 = vmatprep.subr.bf16.mxu1 %v7126_v42  ;;  %6853 = vmatpush3.bf16.msra.mxu0 %v6852_v19  ;;  %v6873_v31 = vpack.c.bf16 %v4970_v29, %v4969_v28  ;;  %v5979_v19 = vld [vmem:[%s7985_s1] ss:$0 sm:$0xff]  ;;  %s7130_s1 = smov 32   ;;  %v5326_v28 = vld [vmem:[%s7987_s3 + $0x18] sm:$0xff] }
0x1185   : > { %6641 = vmatprep.subr.mxu0 %v7128_v37 }
0x1248   : > { %v4511_v34 = vpop.f32.mrb[50].mxu1  ;;  %v4678_v35 = vpop.f32.mrb[46].mxu0 }
0x1249   : > { %v6550_v36 = vpop.f32.mrb[51].mxu1  ;;  %v6572_v38 = vpop.f32.mrb[47].mxu0  ;;  %v6917_v54 = vadd.f32 %v6916_v45, %v4678_v35  ;;  %v4512_v2 = vadd.f32 %v5955_v6, %v4511_v34  ;;  %v5320_v45 = vld [vmem:[%s7981_s28 + $0x8] sm:$0xff]  ;;  %v7129_v6 = vmov 0.25  }
0x124b   : > { %v4773_v58 = vsub.f32 0.0, %v6917_v54 }
0x124d   : > { %v4774_v59 = vmul.f32 1.442695, %v4773_v58 }
0x1250   : > { %v4595_v46 = vpop.f32.mrb[48].mxu1 }
0x1251   : > { %v6915_v47 = vadd.f32 %v6914_v44, %v4595_v46  ;;  %v6561_v48 = vpop.f32.mrb[49].mxu1  ;;  %v4761_v49 = vpop.f32.mrb[48].mxu0  ;;  %v5319_v44 = vld [vmem:[%s7981_s28] sm:$0xff] }
0x1252   : > { %v6583_v55 = vpop.f32.mrb[49].mxu0  ;;  %v4762_v1 = vadd.f32 %v5971_v0, %v4761_v49  ;;  %v6897_v54 = vpack.c.bf16 %v5320_v45, %v5319_v44  ;;  %v5121_v0 = vld [vmem:[%s7983_s26 + $0x10] sm:$0xff]  ;;  %v5480_v44 = vld [vmem:[%s7990_s5 + $0x8] sm:$0xff] }
0x1253   : > { %v4766_v56 = vsub.f32 0.0, %v6915_v47  ;;  %v4955_v47 = vld [vmem:[%s7982_s0] sm:$0xf]  ;;  %s7984_s0 = sld [smem:[#allocation20_spill]] }
0x1255   : > { %v4767_v57 = vmul.f32 1.442695, %v4766_v56  ;;  %v5321_v56 = vld [vmem:[%s7981_s28 + $0x10] sm:$0xff] }
0x1257   : > { %7061 = vpow2.f32 %v4767_v57  ;;  %v5322_v57 = vld [vmem:[%s7981_s28 + $0x18] sm:$0xff] }
0x1258   : > { %7063 = vpow2.f32 %v4774_v59  ;;  %v6900_v58 = vpack.c.bf16 %v5322_v57, %v5321_v56  ;;  %v5119_v59 = vld [vmem:[%s7983_s26] sm:$0xff] }
0x1259   : > { %v5206_v17 = vld [vmem:[%s7984_s0 + $0x18] sm:$0xff] }
0x1261   : > { %v7062_v60 = vpop.eup %7061 }
0x1262   : > { %v4769_v61 = vadd.f32 1.0, %v7062_v60  ;;  %v7064_v62 = vpop.eup %7063  ;;  %v5120_v60 = vld [vmem:[%s7983_s26 + $0x8] sm:$0xff] }
0x1263   : > { %v4776_v63 = vadd.f32 1.0, %v7064_v62 }
0x1264   : > { %7065 = vrcp.f32 %v4769_v61  ;;  %v6879_v61 = vpack.c.bf16 %v5120_v60, %v5119_v59 }
0x1265   : > { %7067 = vrcp.f32 %v4776_v63  ;;  %v5122_v63 = vld [vmem:[%s7983_s26 + $0x18] sm:$0xff] }
0x126e   : > { %v7066_v9 = vpop.eup %7065 }
0x126f   : > { %v4779_v10 = vmul.f32 %v7066_v9, %v4762_v1  ;;  %v7068_v11 = vpop.eup %7067  ;;  %v6882_v9 = vpack.c.bf16 %v5122_v63, %v5121_v0  ;;  %v5988_v63 = vld [vmem:[%s7330_s9] ss:$0 sm:$0xff] }
0x1270   : > { %v4782_v7 = vsub.f32 1.0, %v7068_v11  ;;  %v4784_v14 = vmul.f32 %v7068_v11, %v7762_v24  ;;  %v6858_v24 = vpack.c.bf16 %v4960_v23, %v4959_v21  ;;  %v5204_v11 = vld [vmem:[%s7984_s0 + $0x8] sm:$0xff] }
0x1271   : > { %v4780_v8 = vadd.f32 %v4779_v10, %v4512_v2 }
0x1273   : > { %7069 = vtanh.f32 %v4780_v8  ;;  %v5203_v8 = vld [vmem:[%s7984_s0] sm:$0xff] }
0x127d   : > { %v7070_v12 = vpop.eup %7069 }
0x127e   : > { %v4783_v13 = vmul.f32 %v7070_v12, %v4782_v7  ;;  %v6885_v7 = vpack.c.bf16 %v5204_v11, %v5203_v8 }
0x1280   : > { %v7805_v16 = vadd.f32 %v4784_v14, %v4783_v13  ;;  %v5205_v14 = vld [vmem:[%s7984_s0 + $0x10] sm:$0xff]  ;;  %s7989_s0 = sld [smem:[#allocation23_spill]] }
0x1281   : > { %v6888_v18 = vpack.c.bf16 %v5206_v17, %v5205_v14 }
0x1282   : > { %6593 = vmatmul.mubr.msk.f32.vlgmr.msra.gmra.mrb[52].mxu1 %vm1683_vm4, %v7805_v16 }
0x1283   : > { %6638 = vmatprep.mubr.msk.f32.mxu1 %vm7127_vm5, %v7128_v37  ;;  %6856 = vmatpush3.bf16.msra.mxu1 %v6855_v22  ;;  %v5981_v22 = vld [vmem:[%s7986_s2] ss:$0 sm:$0xff]  ;;  %s7988_s2 = sld [smem:[#allocation22_spill]] }
0x1284   : > { %6857 = vmatprep.subr.bf16.mxu1 %v7126_v42 }
0x1286   : > { %v5984_v39 = vld [vmem:[%s7989_s0] ss:$0 sm:$0xff]  ;;  %s7131_s0 = smov 64  }
0x1287   : > { %6859 = vmatpush3.bf16.msra.mxu1 %v6858_v24 }
0x1288   : > { %6860 = vmatprep.subr.bf16.mxu1 %v7126_v42 }
0x128b   : > { %6862 = vmatpush3.bf16.msra.mxu1 %v6861_v51 }
0x128c   : > { %6863 = vmatprep.subr.bf16.mxu1 %v7126_v42 }
0x128f   : > { %6865 = vmatpush3.bf16.msra.mxu1 %v6864_v3 }
0x1290   : > { %6866 = vmatprep.subr.bf16.mxu1 %v7126_v42 }
0x1293   : > { %6868 = vmatpush3.bf16.msra.mxu1 %v6867_v52  ;;  %v5323_v52 = vld [vmem:[%s7987_s3] sm:$0xff] }
0x1294   : > { %6869 = vmatprep.subr.bf16.mxu1 %v7126_v42  ;;  %v6891_v33 = vpack.c.bf16 %v5324_v27, %v5323_v52 }
0x1297   : > { %6871 = vmatpush3.bf16.msra.mxu1 %v6870_v30  ;;  %v5325_v30 = vld [vmem:[%s7987_s3 + $0x10] sm:$0xff] }
0x1298   : > { %6872 = vmatprep.subr.bf16.mxu1 %v7126_v42  ;;  %v6894_v29 = vpack.c.bf16 %v5326_v28, %v5325_v30 }
0x129b   : > { %6874 = vmatpush3.bf16.msra.mxu1 %v6873_v31 }
0x129c   : > { %6875 = vmatprep.subr.bf16.mxu1 %v7126_v42 }
0x129f   : > { %6877 = vmatpush3.bf16.msra.mxu1 %v6876_v41 }
0x12a0   : > { %6896 = vmatprep.subr.bf16.mxu1 %v7126_v42 }
0x1355   : > { %v4866_v34 = vpop.f32.mrb[52].mxu1 }
0x1356   : > { %v4867_v35 = vadd.f32 %v5973_v32, %v4866_v34  ;;  %v6594_v36 = vpop.f32.mrb[53].mxu1 }
0x1357   : > { %v5983_v36 = vld [vmem:[%s7988_s2] ss:$0 sm:$0xff]  ;;  %s7992_s2 = sshll.u32 %s7994_s10, 2 }
0x1358   : > { %v4870_v38 = vmax.f32 %v4867_v35, 0.0 }
0x135a   : > { %6604 = vmatmul.mubr.msk.f32.vlgmr.msra.gmra.mrb[50].mxu0 %vm1683_vm4, %v4870_v38 }
0x135b   : > { %6643 = vmatprep.mubr.msk.f32.mxu0 %vm7127_vm5, %v7128_v37 }
0x142d   : > { %v4951_v46 = vpop.f32.mrb[50].mxu0 }
0x142e   : > { %v4952_v48 = vadd.f32 %v5975_v43, %v4951_v46  ;;  %v6605_v49 = vpop.f32.mrb[51].mxu0  ;;  %v5479_v43 = vld [vmem:[%s7990_s5] sm:$0xff]  ;;  %v5481_v46 = vld [vmem:[%s7990_s5 + $0x10] sm:$0xff] }
0x142f   : > { %v6903_v45 = vpack.c.bf16 %v5480_v44, %v5479_v43  ;;  %v5565_v49 = vld [vmem:[%s7340_s21] sm:$0xff] }
0x1430   : > { %v4956_v55 = vmul.f32 %v4955_v47, %v4952_v48  ;;  %v5482_v47 = vld [vmem:[%s7990_s5 + $0x18] sm:$0xff] }
0x1431   : > { %v6906_v48 = vpack.c.bf16 %v5482_v47, %v5481_v46 }
0x1432   : > { %6639 = vmatmul.mubr.f32.vlgmr.msra.gmra.mrb[54].mxu1 %v4956_v55 }
0x1433   : > { %6898 = vmatpush3.bf16.msra.mxu1 %v6897_v54  ;;  %6687 = vmatprep.mubr.msk.f32.mxu1 %vm7127_vm5, %v7128_v37  ;;  %v5566_v54 = vld [vmem:[%s7340_s21 + $0x8] sm:$0xff] }
0x1434   : > { %6899 = vmatprep.subr.bf16.mxu1 %v7126_v42  ;;  %v6909_v55 = vpack.c.bf16 %v5566_v54, %v5565_v49 }
0x1437   : > { %6901 = vmatpush3.bf16.msra.mxu1 %v6900_v58 }
0x1438   : > { %6908 = vmatprep.subr.bf16.mxu1 %v7126_v42 }
0x143a   : > { %6688 = vmatmul.mubr.msk.f32.vlgmr.msra.gmra.mrb[56].mxu1 %vm1683_vm4, %v7805_v16 }
0x143b   : > { %6709 = vmatprep.mubr.msk.f32.mxu1 %vm7127_vm5, %v7128_v37  ;;  %6910 = vmatpush3.bf16.msra.mxu1 %v6909_v55 }
0x143c   : > { %6911 = vmatprep.subr.bf16.mxu1 %v7126_v42 }
0x1505   : > { %v5039_v62 = vpop.f32.mrb[54].mxu1 }
0x1506   : > { %v6640_v1 = vpop.f32.mrb[55].mxu1  ;;  %6642 = vmatpush3.msk.msra.mxu0 %vm1284_vm0, %v5039_v62  ;;  %v5568_v62 = vld [vmem:[%s7340_s21 + $0x18] sm:$0xff] }
0x1507   : > { %6644 = vmatmul.mubr.msk.f32.vlgmr.msra.gmra.mrb[52].mxu0 %vm1271_vm1, %v7129_v6  ;;  %6878 = vmatprep.subr.bf16.mxu0 %v7126_v42  ;;  %v5563_v6 = vld [vmem:[%s7335_s25] sm:$0xf] }
0x1508   : > { %6880 = vmatpush3.bf16.msra.mxu0 %v6879_v61  ;;  %6654 = vmatprep.mubr.msk.f32.mxu0 %vm7127_vm5, %v7128_v37  ;;  %v5567_v61 = vld [vmem:[%s7340_s21 + $0x10] sm:$0xff] }
0x1509   : > { %6881 = vmatprep.subr.bf16.mxu0 %v7126_v42  ;;  %v6912_v0 = vpack.c.bf16 %v5568_v62, %v5567_v61 }
0x150b   : > { %6913 = vmatpush3.bf16.msra.mxu1 %v6912_v0 }
0x150c   : > { %6883 = vmatpush3.bf16.msra.mxu0 %v6882_v9 }
0x150d   : > { %v7866_v2 = vpop.f32.mrb[56].mxu1  ;;  %6884 = vmatprep.subr.bf16.mxu0 %v7126_v42 }
0x150e   : > { %v6689_v10 = vpop.f32.mrb[57].mxu1 }
0x15da   : > { %v5115_v12 = vpop.f32.mrb[52].mxu0 }
0x15db   : > { %6655 = vmatmul.mubr.msk.f32.vlgmr.msra.gmra.mrb[54].mxu0 %vm1683_vm4, %v5115_v12  ;;  %v6645_v13 = vpop.f32.mrb[53].mxu0 }
0x15dc   : > { %6886 = vmatpush3.bf16.msra.mxu0 %v6885_v7  ;;  %6665 = vmatprep.mubr.msk.f32.mxu0 %vm7127_vm5, %v7128_v37 }
0x15dd   : > { %6887 = vmatprep.subr.bf16.mxu0 %v7126_v42 }
0x15e0   : > { %6889 = vmatpush3.bf16.msra.mxu0 %v6888_v18 }
0x15e1   : > { %6890 = vmatprep.subr.bf16.mxu0 %v7126_v42 }
0x16ae   : > { %v5199_v20 = vpop.f32.mrb[54].mxu0 }
0x16af   : > { %v5200_v15 = vadd.f32 %v5979_v19, %v5199_v20  ;;  %v6656_v21 = vpop.f32.mrb[55].mxu0 }
0x16b1   : > { %6666 = vmatmul.mubr.msk.f32.vlgmr.msra.gmra.mrb[56].mxu0 %vm1683_vm4, %v5200_v15 }
0x16b2   : > { %6676 = vmatprep.mubr.msk.f32.mxu0 %vm7127_vm5, %v7128_v37  ;;  %6892 = vmatpush3.bf16.msra.mxu0 %v6891_v33 }
0x16b3   : > { %6893 = vmatprep.subr.bf16.mxu0 %v7126_v42 }
0x16b6   : > { %6895 = vmatpush3.bf16.msra.mxu0 %v6894_v29 }
0x16b7   : > { %6902 = vmatprep.subr.bf16.mxu0 %v7126_v42 }
0x1784   : > { %v5283_v23 = vpop.f32.mrb[56].mxu0 }
0x1785   : > { %v5284_v24 = vadd.f32 %v5981_v22, %v5283_v23  ;;  %v6667_v25 = vpop.f32.mrb[57].mxu0 }
0x1787   : > { %v5287_v50 = vadd.f32 %v5284_v24, %v7805_v16 }
0x1789   : > { %v5289_v51 = vsel %vm5288_vm6, %v5287_v50, 0.0 }
0x178a   : > { %5290 = vadd.xlane.f32.xlu0 %v5289_v51 }
0x17a0   : > { %5642 = vrot.lane.b32.xlu0 %v5115_v12, %s7130_s1  ;;  %s7991_s1 = sld [smem:[#allocation26_spill]] }
0x17a6   : > { %v5987_v56 = vld [vmem:[%s7991_s1] ss:$0 sm:$0xff]  ;;  %s1253_s1 = scalar_lea.vmem %s7345_s4, %s7992_s2 }
0x1817   : > { %v5291_v53 = vpop.xlane.xlu0 %5290 }
0x1818   : > { %v5293_v26 = vmul.f32 0.03125, %v5291_v53 }
0x181a   : > { %v5294_v3 = vsub.f32 %v5287_v50, %v5293_v26 }
0x181b   : > { %v5643_v11 = vpop.permute.xlu0 %5642 }
0x181c   : > { %v5295_v4 = vmul.f32 %v5294_v3, %v5294_v3  ;;  %v5649_v7 = vsel %vm1683_vm4, %v7805_v16, %v5643_v11 }
0x181e   : > { %v5296_v5 = vsel %vm5288_vm6, %v5295_v4, 0.0 }
0x181f   : > { %5297 = vadd.xlane.f32.xlu1 %v5296_v5 }
0x18ac   : > { %v5298_v31 = vpop.xlane.xlu1 %5297 }
0x18ad   : > { %v5299_v32 = vmul.f32 0.03125, %v5298_v31 }
0x18af   : > { %v5300_v34 = vadd.f32 1e-05, %v5299_v32 }
0x18b1   : > { %7071 = vrsqrt.f32 %v5300_v34 }
0x18bb   : > { %v7072_v35 = vpop.eup %7071 }
0x18bc   : > { %v5302_v38 = vmul.f32 %v7072_v35, %v5294_v3 }
0x18be   : > { %v5310_v40 = vmul.f32 %v5983_v36, %v5302_v38 }
0x18c0   : > { %v5318_v41 = vadd.f32 %v5984_v39, %v5310_v40 }
0x18c2   : > { %6677 = vmatmul.mubr.msk.f32.vlgmr.msra.gmra.mrb[58].mxu0 %vm1683_vm4, %v5318_v41 }
0x18c3   : > { %6698 = vmatprep.mubr.msk.f32.mxu0 %vm7127_vm5, %v7128_v37  ;;  %6904 = vmatpush3.bf16.msra.mxu0 %v6903_v45 }
0x18c4   : > { %6905 = vmatprep.subr.bf16.mxu0 %v7126_v42 }
0x18c7   : > { %6907 = vmatpush3.bf16.msra.mxu0 %v6906_v48 }
0x1995   : > { %v5396_v37 = vpop.f32.mrb[58].mxu0 }
0x1996   : > { %v5467_v57 = vadd.f32 %v7866_v2, %v5396_v37  ;;  %v6678_v58 = vpop.f32.mrb[59].mxu0 }
0x1998   : > { %v5477_v59 = vadd.f32 %v5987_v56, %v5467_v57 }
0x199a   : > { %v5478_v60 = vmax.f32 %v5477_v59, 0.0 }
0x199c   : > { %6699 = vmatmul.mubr.msk.f32.vlgmr.msra.gmra.mrb[60].mxu0 %vm1683_vm4, %v5478_v60 }
0x1a6f   : > { %v5559_v1 = vpop.f32.mrb[60].mxu0 }
0x1a70   : > { %v5560_v9 = vadd.f32 %v5988_v63, %v5559_v1  ;;  %v6700_v42 = vpop.f32.mrb[61].mxu0 }
0x1a72   : > { %v5564_v10 = vmul.f32 %v5563_v6, %v5560_v9 }
0x1a74   : > { %6710 = vmatmul.mubr.msk.f32.vlgmr.msra.gmra.mrb[58].mxu1 %vm1683_vm4, %v5564_v10 }
0x1b47   : > { %v5638_v2 = vpop.f32.mrb[58].mxu1 }
0x1b48   : > { %5646 = vrot.lane.b32.xlu1 %v5638_v2, %s7131_s0  ;;  %v6711_v8 = vpop.f32.mrb[59].mxu1 }
0x1bba   : > { %v5647_v12 = vpop.permute.xlu1 %5646 }
0x1bbb   : > { %v5651_v13 = vsel %vm5650_vm7, %v5649_v7, %v5647_v12 }
0x1bbc   : > { %v5653_v14 = vsel %vm5652_vm8, %v5651_v13, 0.0 }
0x1bbd   : > { %5654 = vst [vmem:[%s1253_s1] sm:$0xf] %v5653_v14 }
0x1bbe PF: > { %s93_s7 = sadd.s32 1, %s7083_s7  }
0x1bbf   : > { %p90_p4 = scmp.ge.s32.totalorder %s93_s7, 4  }
0x1bc1   :  { %92 = sbr.rel (!%p90_p4) target bundleno = 81 (0x51), region = 287 }

</bundles_post_ra>
